<compile_context>
chip_gen: v6e
topology: v6e:2x2x1
jax: 0.10.0
libtpu: 0.0.40
codegen_flags: <defaults>
</compile_context>

<pallas_src>
import functools

import jax
import jax.numpy as jnp
from jax import lax
from jax.experimental import pallas as pl
from jax.experimental.pallas import tpu as pltpu


# ---------------------------------------------------------------------------
# helpers
# ---------------------------------------------------------------------------
def _round_up(n, m):
    return (n + m - 1) // m * m


def _largest_divisor_tile(dim, cap, mult):
    """Largest t dividing `dim` with t <= cap and t % mult == 0.

    Falls back to `dim` itself (full-extent block, always a legal BlockSpec
    trailing dim) when dim <= cap or no such divisor exists.
    """
    if dim <= cap:
        return dim
    t = (cap // mult) * mult
    while t >= mult:
        if dim % t == 0:
            return t
        t -= mult
    return dim


# ---------------------------------------------------------------------------
# Pallas kernels
# ---------------------------------------------------------------------------
def _mm_single_kernel(x_ref, w_ref, b_ref, o_ref, *, activation):
    """out = act(x @ w + b); whole K in one block -> no accumulator scratch."""
    out = jnp.dot(x_ref[...], w_ref[...], preferred_element_type=jnp.float32)
    out = out + b_ref[...]
    if activation == "relu":
        out = jnp.maximum(out, 0.0)
    o_ref[...] = out.astype(o_ref.dtype)


def _mm_acc_kernel(x_ref, w_ref, b_ref, o_ref, acc_ref, *, activation):
    """K-tiled GEMM with f32 accumulator (fallback path for very large K)."""
    @pl.when(pl.program_id(2) == 0)
    def _():
        acc_ref[...] = jnp.zeros_like(acc_ref)

    acc_ref[...] += jnp.dot(x_ref[...], w_ref[...],
                            preferred_element_type=jnp.float32)

    @pl.when(pl.program_id(2) == pl.num_programs(2) - 1)
    def _():
        out = acc_ref[...] + b_ref[...]
        if activation == "relu":
            out = jnp.maximum(out, 0.0)
        o_ref[...] = out.astype(o_ref.dtype)


def _max4_kernel(a_ref, b_ref, c_ref, d_ref, o_ref):
    """Elementwise max of the four lane-dense pool-tap slabs."""
    o_ref[...] = jnp.maximum(jnp.maximum(a_ref[...], b_ref[...]),
                             jnp.maximum(c_ref[...], d_ref[...]))


def _fc_fused_kernel(x_ref, w1_ref, b1_ref, w2_ref, b2_ref, o_ref):
    """out = relu(x @ w1 + b1) @ w2 + b2, both GEMMs in one kernel."""
    h = jnp.dot(x_ref[...], w1_ref[...], preferred_element_type=jnp.float32)
    h = jnp.maximum(h + b1_ref[...], 0.0)
    out = jnp.dot(h.astype(w2_ref.dtype), w2_ref[...],
                  preferred_element_type=jnp.float32)
    o_ref[...] = (out + b2_ref[...]).astype(o_ref.dtype)


# ---------------------------------------------------------------------------
# GEMM wrapper (bias + optional ReLU fused), bf16 MXU operands, f32 epilogue
# ---------------------------------------------------------------------------
def matmul_bias_act(x, w, b, activation="none", out_dtype=jnp.float32):
    M, K = x.shape
    Kw, N = w.shape
    assert K == Kw and b.shape == (N,)
    assert N % 128 == 0, "pad the output dim to a multiple of 128 (lane-dense)"

    x = x.astype(jnp.bfloat16)
    w = w.astype(jnp.bfloat16)
    b2 = b.reshape(1, N).astype(jnp.float32)

    tn = 128
    tk = _largest_divisor_tile(K, 4096, 128)
    # keep the x block under ~4 MiB so double-buffering fits any generation
    m_cap = max(16, min(2048, ((4 << 20) // max(2 * tk, 1)) // 16 * 16))
    tm = _largest_divisor_tile(M, m_cap, 16)
    gm, gn, gk = M // tm, N // tn, K // tk

    if gk == 1:
        kernel = functools.partial(_mm_single_kernel, activation=activation)
        return pl.pallas_call(
            kernel,
            out_shape=jax.ShapeDtypeStruct((M, N), out_dtype),
            grid_spec=pltpu.PrefetchScalarGridSpec(
                num_scalar_prefetch=0,
                grid=(gm, gn),
                in_specs=[
                    pl.BlockSpec((tm, K), lambda i, j: (i, 0)),
                    pl.BlockSpec((K, tn), lambda i, j: (0, j)),
                    pl.BlockSpec((1, tn), lambda i, j: (0, j)),
                ],
                out_specs=pl.BlockSpec((tm, tn), lambda i, j: (i, j)),
            ),
            compiler_params=pltpu.CompilerParams(
                dimension_semantics=("parallel", "parallel")),
        )(x, w, b2)

    kernel = functools.partial(_mm_acc_kernel, activation=activation)
    return pl.pallas_call(
        kernel,
        out_shape=jax.ShapeDtypeStruct((M, N), out_dtype),
        grid_spec=pltpu.PrefetchScalarGridSpec(
            num_scalar_prefetch=0,
            grid=(gm, gn, gk),
            in_specs=[
                pl.BlockSpec((tm, tk), lambda i, j, k: (i, k)),
                pl.BlockSpec((tk, tn), lambda i, j, k: (k, j)),
                pl.BlockSpec((1, tn), lambda i, j, k: (0, j)),
            ],
            out_specs=pl.BlockSpec((tm, tn), lambda i, j, k: (i, j)),
            scratch_shapes=[pltpu.VMEM((tm, tn), jnp.float32)],
        ),
        compiler_params=pltpu.CompilerParams(
            dimension_semantics=("parallel", "parallel", "arbitrary")),
    )(x, w, b2)


# ---------------------------------------------------------------------------
# 2x2 max-pool over four contiguous lane-dense slabs
# ---------------------------------------------------------------------------
def _pool_slab_spec(g, tmp, c):
    return pl.BlockSpec((None, tmp, c), lambda i: (g, i, 0))


def maxpool_groups(y, m_pooled):
    """y: (4 * m_pooled, C) with tap-major row order -> (m_pooled, C)."""
    c = y.shape[-1]
    y3 = y.reshape(4, m_pooled, c)          # free metadata reshape
    tmp = _largest_divisor_tile(m_pooled, 2048, 8)
    return pl.pallas_call(
        _max4_kernel,
        out_shape=jax.ShapeDtypeStruct((m_pooled, c), y.dtype),
        grid_spec=pltpu.PrefetchScalarGridSpec(
            num_scalar_prefetch=0,
            grid=(m_pooled // tmp,),
            in_specs=[_pool_slab_spec(0, tmp, c), _pool_slab_spec(1, tmp, c),
                      _pool_slab_spec(2, tmp, c), _pool_slab_spec(3, tmp, c)],
            out_specs=pl.BlockSpec((tmp, c), lambda i: (i, 0)),
        ),
        compiler_params=pltpu.CompilerParams(
            dimension_semantics=("parallel",)),
    )(y3, y3, y3, y3)


# ---------------------------------------------------------------------------
# Conv layer = im2col (glue, pool-tap-major row order) + Pallas GEMM + pool
# ---------------------------------------------------------------------------
def conv3x3_relu_pool(x_nhwc, w_hwio, bias):
    """3x3 same conv + bias + ReLU + 2x2/stride-2 max-pool."""
    B, H, W, Cin = x_nhwc.shape
    assert H % 2 == 0 and W % 2 == 0
    Cout = w_hwio.shape[-1]
    Hp, Wp = H // 2, W // 2
    K = 9 * Cin
    Mp = B * Hp * Wp

    # im2col in (dy, dx, ci) column order, matching w_hwio.reshape(9*Cin, Cout)
    xp = jnp.pad(x_nhwc, ((0, 0), (1, 1), (1, 1), (0, 0)))
    cols = [xp[:, dy:dy + H, dx:dx + W, :]
            for dy in range(3) for dx in range(3)]
    pat = jnp.concatenate(cols, axis=-1)                      # (B, H, W, 9*Cin)
    # reorder rows tap-major: (r, s, b, i, j) with y = 2i+r, x = 2j+s, so the
    # four 2x2-window members land in four contiguous (Mp, Cpad) slabs.
    pat = pat.reshape(B, Hp, 2, Wp, 2, K).transpose(2, 4, 0, 1, 3, 5)
    pat = pat.reshape(4 * Mp, K)

    w_mat = w_hwio.reshape(K, Cout)

    # pad K (contraction dim) to a multiple of 16 for clean bf16 sublane tiling
    kp = -K % 16
    if kp:
        pat = jnp.pad(pat, ((0, 0), (0, kp)))
        w_mat = jnp.pad(w_mat, ((0, kp), (0, 0)))

    # pad Cout to 128 -> lane-dense GEMM output and lane-dense pool
    Cp = _round_up(Cout, 128)
    if Cp != Cout:
        w_mat = jnp.pad(w_mat, ((0, 0), (0, Cp - Cout)))
        bias = jnp.pad(bias, (0, Cp - Cout))

    y = matmul_bias_act(pat, w_mat, bias, activation="relu")  # (4*Mp, Cp) f32
    pooled = maxpool_groups(y, Mp)                            # (Mp, Cp)
    return pooled.reshape(B, Hp, Wp, Cp)[..., :Cout]


# ---------------------------------------------------------------------------
# Fused fc1 + fc2 (single Pallas call, fc2 padded to 128 lanes)
# ---------------------------------------------------------------------------
def fc_fused(x, w1, b1, w2, b2):
    B, K1 = x.shape
    N1 = w1.shape[1]
    N2 = w2.shape[1]
    n1p = _round_up(N1, 128)
    n2p = _round_up(N2, 128)
    if n1p != N1:
        w1 = jnp.pad(w1, ((0, 0), (0, n1p - N1)))
        b1 = jnp.pad(b1, (0, n1p - N1))
        w2 = jnp.pad(w2, ((0, n1p - N1), (0, 0)))
    if n2p != N2:
        w2 = jnp.pad(w2, ((0, 0), (0, n2p - N2)))
        b2 = jnp.pad(b2, (0, n2p - N2))

    tm = _largest_divisor_tile(B, 256, 8)
    out = pl.pallas_call(
        _fc_fused_kernel,
        out_shape=jax.ShapeDtypeStruct((B, n2p), jnp.float32),
        grid_spec=pltpu.PrefetchScalarGridSpec(
            num_scalar_prefetch=0,
            grid=(B // tm,),
            in_specs=[
                pl.BlockSpec((tm, K1), lambda i: (i, 0)),
                pl.BlockSpec((K1, n1p), lambda i: (0, 0)),
                pl.BlockSpec((1, n1p), lambda i: (0, 0)),
                pl.BlockSpec((n1p, n2p), lambda i: (0, 0)),
                pl.BlockSpec((1, n2p), lambda i: (0, 0)),
            ],
            out_specs=pl.BlockSpec((tm, n2p), lambda i: (i, 0)),
        ),
        compiler_params=pltpu.CompilerParams(
            dimension_semantics=("parallel",)),
    )(x.astype(jnp.bfloat16), w1.astype(jnp.bfloat16),
      b1.reshape(1, n1p).astype(jnp.float32),
      w2.astype(jnp.bfloat16), b2.reshape(1, n2p).astype(jnp.float32))
    return out[:, :N2]


# ---------------------------------------------------------------------------
# Model: parameters + forward
# ---------------------------------------------------------------------------
def init_params(key):
    keys = jax.random.split(key, 8)

    def init(k, shape, fan_in):
        return jax.random.normal(k, shape, jnp.float32) / jnp.sqrt(float(fan_in))

    return {
        "w1": init(keys[0], (3, 3, 3, 32), 3 * 3 * 3),      # HWIO
        "b1": init(keys[1], (32,), 3 * 3 * 3),
        "w2": init(keys[2], (3, 3, 32, 64), 3 * 3 * 32),    # HWIO
        "b2": init(keys[3], (64,), 3 * 3 * 32),
        "wf1": init(keys[4], (64 * 8 * 8, 128), 64 * 8 * 8),
        "bf1": init(keys[5], (128,), 64 * 8 * 8),
        "wf2": init(keys[6], (128, 10), 128),
        "bf2": init(keys[7], (10,), 128),
    }


def cnn_forward(params, x_nchw):
    x = jnp.transpose(x_nchw, (0, 2, 3, 1))                       # NCHW -> NHWC
    x = conv3x3_relu_pool(x, params["w1"], params["b1"])          # [B,16,16,32]
    x = conv3x3_relu_pool(x, params["w2"], params["b2"])          # [B, 8, 8,64]
    B = x.shape[0]
    # match torch's x.view(-1, 64*8*8) on an NCHW tensor: flatten (C, H, W)
    x = jnp.transpose(x, (0, 3, 1, 2)).reshape(B, 64 * 8 * 8)
    return fc_fused(x, params["wf1"], params["bf1"],
                    params["wf2"], params["bf2"])                 # [B, 10]


def cnn_reference(params, x_nchw):
    """Pure-JAX float32 reference for validation."""
    x = jnp.transpose(x_nchw, (0, 2, 3, 1))

    def conv(x, w, b):
        y = lax.conv_general_dilated(
            x, w, (1, 1), "SAME", dimension_numbers=("NHWC", "HWIO", "NHWC"))
        return jax.nn.relu(y + b)

    def pool(x):
        return lax.reduce_window(x, -jnp.inf, lax.max,
                                 (1, 2, 2, 1), (1, 2, 2, 1), "VALID")

    x = pool(conv(x, params["w1"], params["b1"]))
    x = pool(conv(x, params["w2"], params["b2"]))
    B = x.shape[0]
    x = jnp.transpose(x, (0, 3, 1, 2)).reshape(B, -1)
    x = jax.nn.relu(x @ params["wf1"] + params["bf1"])
    return x @ params["wf2"] + params["bf2"]


if __name__ == "__main__":
    key = jax.random.PRNGKey(0)
    pkey, xkey = jax.random.split(key)
    params = init_params(pkey)

    # batch=2, channels=3, spatial=32x32 (forced by fc1 = Linear(64*8*8, 128))
    x = jax.random.normal(xkey, (2, 3, 32, 32), jnp.float32)

    out = jax.jit(cnn_forward)(params, x)
    out = jax.block_until_ready(out)
    assert out.shape == (2, 10)

    ref = cnn_reference(params, x)
    # GEMM operands are bf16 (accumulation f32) -> slightly loosened tolerance
    # vs the pure-f32 reference.
    if not bool(jnp.allclose(out, ref, atol=2e-2, rtol=2e-2)):
        raise AssertionError("Pallas output does not match JAX reference")

    print("KERNEL_OK")
</pallas_src>

<mosaic_0001>
module attributes {stable_mosaic.version = 11 : i64} {
  func.func @_mm_single_kernel(%arg0: i32, %arg1: i32, %arg2: memref<2048x32xbf16, #tpu.memory_space<vmem>>, %arg3: memref<32x128xbf16, #tpu.memory_space<vmem>>, %arg4: memref<1x128xf32, #tpu.memory_space<vmem>>, %arg5: memref<2048x128xf32, #tpu.memory_space<vmem>>) attributes {dimension_semantics = [#tpu.dimension_semantics<parallel>, #tpu.dimension_semantics<parallel>], iteration_bounds = array<i64: 1, 1>, scalar_prefetch = 0 : i64, scratch_operands = 0 : i64, tpu.core_type = #tpu.core_type<tc>, window_params = [{transform_indices = @transform_0, window_bounds = array<i64: 2048, 32>}, {transform_indices = @transform_1, window_bounds = array<i64: 32, 128>}, {transform_indices = @transform_2, window_bounds = array<i64: 1, 128>}, {transform_indices = @transform_3, window_bounds = array<i64: 2048, 128>}]} {
    %c0 = arith.constant 0 : index
    %c0_0 = arith.constant 0 : index
    %0 = vector.load %arg2[%c0, %c0_0] : memref<2048x32xbf16, #tpu.memory_space<vmem>>, vector<2048x32xbf16>
    %c0_1 = arith.constant 0 : index
    %c0_2 = arith.constant 0 : index
    %1 = vector.load %arg3[%c0_1, %c0_2] : memref<32x128xbf16, #tpu.memory_space<vmem>>, vector<32x128xbf16>
    %cst = arith.constant dense<0.000000e+00> : vector<2048x128xf32>
    %2 = tpu.matmul %0, %1, %cst {dimension_numbers = #tpu.dot_dimension_numbers<[1], [0], [0], [1], [0, 0, 1, 1], [], []>} : vector<2048x32xbf16>, vector<32x128xbf16>, vector<2048x128xf32> -> vector<2048x128xf32>
    %c0_3 = arith.constant 0 : index
    %c0_4 = arith.constant 0 : index
    %3 = vector.load %arg4[%c0_3, %c0_4] : memref<1x128xf32, #tpu.memory_space<vmem>>, vector<1x128xf32>
    %4 = vector.broadcast %3 : vector<1x128xf32> to vector<2048x128xf32>
    %5 = arith.addf %2, %4 : vector<2048x128xf32>
    %cst_5 = arith.constant 0.000000e+00 : f32
    %6 = vector.broadcast %cst_5 : f32 to vector<2048x128xf32>
    %7 = arith.maximumf %5, %6 : vector<2048x128xf32>
    %c0_6 = arith.constant 0 : index
    %c0_7 = arith.constant 0 : index
    %8 = vector.load %arg5[%c0_6, %c0_7] : memref<2048x128xf32, #tpu.memory_space<vmem>>, vector<2048x128xf32>
    tpu.vector_store %arg5[%c0_6, %c0_7], %7 {strides = array<i32>} : memref<2048x128xf32, #tpu.memory_space<vmem>>, vector<2048x128xf32>,
    return
  }
  func.func @transform_0(%arg0: i32, %arg1: i32) -> (i32, i32) {
    %c0_i32 = arith.constant 0 : i32
    %c0_i32_0 = arith.constant 0 : i32
    return %arg0, %c0_i32 : i32, i32
  }
  func.func @transform_1(%arg0: i32, %arg1: i32) -> (i32, i32) {
    %c0_i32 = arith.constant 0 : i32
    %c0_i32_0 = arith.constant 0 : i32
    return %c0_i32, %arg1 : i32, i32
  }
  func.func @transform_2(%arg0: i32, %arg1: i32) -> (i32, i32) {
    %c0_i32 = arith.constant 0 : i32
    %c0_i32_0 = arith.constant 0 : i32
    return %c0_i32, %arg1 : i32, i32
  }
  func.func @transform_3(%arg0: i32, %arg1: i32) -> (i32, i32) {
    %c0_i32 = arith.constant 0 : i32
    return %arg0, %arg1 : i32, i32
  }
}

module attributes {stable_mosaic.version = 11 : i64} {
  func.func @_max4_kernel(%arg0: i32, %arg1: memref<1x512x128xf32, #tpu.memory_space<vmem>>, %arg2: memref<1x512x128xf32, #tpu.memory_space<vmem>>, %arg3: memref<1x512x128xf32, #tpu.memory_space<vmem>>, %arg4: memref<1x512x128xf32, #tpu.memory_space<vmem>>, %arg5: memref<512x128xf32, #tpu.memory_space<vmem>>) attributes {dimension_semantics = [#tpu.dimension_semantics<parallel>], iteration_bounds = array<i64: 1>, scalar_prefetch = 0 : i64, scratch_operands = 0 : i64, tpu.core_type = #tpu.core_type<tc>, window_params = [{transform_indices = @transform_0, window_bounds = array<i64: 1, 512, 128>}, {transform_indices = @transform_1, window_bounds = array<i64: 1, 512, 128>}, {transform_indices = @transform_2, window_bounds = array<i64: 1, 512, 128>}, {transform_indices = @transform_3, window_bounds = array<i64: 1, 512, 128>}, {transform_indices = @transform_4, window_bounds = array<i64: 512, 128>}]} {
    %c0 = arith.constant 0 : index
    %c0_0 = arith.constant 0 : index
    %c0_1 = arith.constant 0 : index
    %0 = vector.load %arg1[%c0, %c0_0, %c0_1] : memref<1x512x128xf32, #tpu.memory_space<vmem>>, vector<1x512x128xf32>
    %1 = vector.shape_cast %0 : vector<1x512x128xf32> to vector<512x128xf32>
    %c0_2 = arith.constant 0 : index
    %c0_3 = arith.constant 0 : index
    %c0_4 = arith.constant 0 : index
    %2 = vector.load %arg2[%c0_2, %c0_3, %c0_4] : memref<1x512x128xf32, #tpu.memory_space<vmem>>, vector<1x512x128xf32>
    %3 = vector.shape_cast %2 : vector<1x512x128xf32> to vector<512x128xf32>
    %4 = arith.maximumf %1, %3 : vector<512x128xf32>
    %c0_5 = arith.constant 0 : index
    %c0_6 = arith.constant 0 : index
    %c0_7 = arith.constant 0 : index
    %5 = vector.load %arg3[%c0_5, %c0_6, %c0_7] : memref<1x512x128xf32, #tpu.memory_space<vmem>>, vector<1x512x128xf32>
    %6 = vector.shape_cast %5 : vector<1x512x128xf32> to vector<512x128xf32>
    %c0_8 = arith.constant 0 : index
    %c0_9 = arith.constant 0 : index
    %c0_10 = arith.constant 0 : index
    %7 = vector.load %arg4[%c0_8, %c0_9, %c0_10] : memref<1x512x128xf32, #tpu.memory_space<vmem>>, vector<1x512x128xf32>
    %8 = vector.shape_cast %7 : vector<1x512x128xf32> to vector<512x128xf32>
    %9 = arith.maximumf %6, %8 : vector<512x128xf32>
    %10 = arith.maximumf %4, %9 : vector<512x128xf32>
    %c0_11 = arith.constant 0 : index
    %c0_12 = arith.constant 0 : index
    %11 = vector.load %arg5[%c0_11, %c0_12] : memref<512x128xf32, #tpu.memory_space<vmem>>, vector<512x128xf32>
    tpu.vector_store %arg5[%c0_11, %c0_12], %10 {strides = array<i32>} : memref<512x128xf32, #tpu.memory_space<vmem>>, vector<512x128xf32>,
    return
  }
  func.func @transform_0(%arg0: i32) -> (i32, i32, i32) {
    %c0_i32 = arith.constant 0 : i32
    %c0_i32_0 = arith.constant 0 : i32
    %c0_i32_1 = arith.constant 0 : i32
    return %c0_i32, %arg0, %c0_i32_0 : i32, i32, i32
  }
  func.func @transform_1(%arg0: i32) -> (i32, i32, i32) {
    %c1_i32 = arith.constant 1 : i32
    %c0_i32 = arith.constant 0 : i32
    %c0_i32_0 = arith.constant 0 : i32
    return %c1_i32, %arg0, %c0_i32 : i32, i32, i32
  }
  func.func @transform_2(%arg0: i32) -> (i32, i32, i32) {
    %c2_i32 = arith.constant 2 : i32
    %c0_i32 = arith.constant 0 : i32
    %c0_i32_0 = arith.constant 0 : i32
    return %c2_i32, %arg0, %c0_i32 : i32, i32, i32
  }
  func.func @transform_3(%arg0: i32) -> (i32, i32, i32) {
    %c3_i32 = arith.constant 3 : i32
    %c0_i32 = arith.constant 0 : i32
    %c0_i32_0 = arith.constant 0 : i32
    return %c3_i32, %arg0, %c0_i32 : i32, i32, i32
  }
  func.func @transform_4(%arg0: i32) -> (i32, i32) {
    %c0_i32 = arith.constant 0 : i32
    %c0_i32_0 = arith.constant 0 : i32
    return %arg0, %c0_i32 : i32, i32
  }
}

module attributes {stable_mosaic.version = 11 : i64} {
  func.func @_mm_single_kernel(%arg0: i32, %arg1: i32, %arg2: memref<512x288xbf16, #tpu.memory_space<vmem>>, %arg3: memref<288x128xbf16, #tpu.memory_space<vmem>>, %arg4: memref<1x128xf32, #tpu.memory_space<vmem>>, %arg5: memref<512x128xf32, #tpu.memory_space<vmem>>) attributes {dimension_semantics = [#tpu.dimension_semantics<parallel>, #tpu.dimension_semantics<parallel>], iteration_bounds = array<i64: 1, 1>, scalar_prefetch = 0 : i64, scratch_operands = 0 : i64, tpu.core_type = #tpu.core_type<tc>, window_params = [{transform_indices = @transform_0, window_bounds = array<i64: 512, 288>}, {transform_indices = @transform_1, window_bounds = array<i64: 288, 128>}, {transform_indices = @transform_2, window_bounds = array<i64: 1, 128>}, {transform_indices = @transform_3, window_bounds = array<i64: 512, 128>}]} {
    %c0 = arith.constant 0 : index
    %c0_0 = arith.constant 0 : index
    %0 = vector.load %arg2[%c0, %c0_0] : memref<512x288xbf16, #tpu.memory_space<vmem>>, vector<512x288xbf16>
    %c0_1 = arith.constant 0 : index
    %c0_2 = arith.constant 0 : index
    %1 = vector.load %arg3[%c0_1, %c0_2] : memref<288x128xbf16, #tpu.memory_space<vmem>>, vector<288x128xbf16>
    %cst = arith.constant dense<0.000000e+00> : vector<512x128xf32>
    %2 = tpu.matmul %0, %1, %cst {dimension_numbers = #tpu.dot_dimension_numbers<[1], [0], [0], [1], [0, 0, 1, 1], [], []>} : vector<512x288xbf16>, vector<288x128xbf16>, vector<512x128xf32> -> vector<512x128xf32>
    %c0_3 = arith.constant 0 : index
    %c0_4 = arith.constant 0 : index
    %3 = vector.load %arg4[%c0_3, %c0_4] : memref<1x128xf32, #tpu.memory_space<vmem>>, vector<1x128xf32>
    %4 = vector.broadcast %3 : vector<1x128xf32> to vector<512x128xf32>
    %5 = arith.addf %2, %4 : vector<512x128xf32>
    %cst_5 = arith.constant 0.000000e+00 : f32
    %6 = vector.broadcast %cst_5 : f32 to vector<512x128xf32>
    %7 = arith.maximumf %5, %6 : vector<512x128xf32>
    %c0_6 = arith.constant 0 : index
    %c0_7 = arith.constant 0 : index
    %8 = vector.load %arg5[%c0_6, %c0_7] : memref<512x128xf32, #tpu.memory_space<vmem>>, vector<512x128xf32>
    tpu.vector_store %arg5[%c0_6, %c0_7], %7 {strides = array<i32>} : memref<512x128xf32, #tpu.memory_space<vmem>>, vector<512x128xf32>,
    return
  }
  func.func @transform_0(%arg0: i32, %arg1: i32) -> (i32, i32) {
    %c0_i32 = arith.constant 0 : i32
    %c0_i32_0 = arith.constant 0 : i32
    return %arg0, %c0_i32 : i32, i32
  }
  func.func @transform_1(%arg0: i32, %arg1: i32) -> (i32, i32) {
    %c0_i32 = arith.constant 0 : i32
    %c0_i32_0 = arith.constant 0 : i32
    return %c0_i32, %arg1 : i32, i32
  }
  func.func @transform_2(%arg0: i32, %arg1: i32) -> (i32, i32) {
    %c0_i32 = arith.constant 0 : i32
    %c0_i32_0 = arith.constant 0 : i32
    return %c0_i32, %arg1 : i32, i32
  }
  func.func @transform_3(%arg0: i32, %arg1: i32) -> (i32, i32) {
    %c0_i32 = arith.constant 0 : i32
    return %arg0, %arg1 : i32, i32
  }
}

module attributes {stable_mosaic.version = 11 : i64} {
  func.func @_max4_kernel(%arg0: i32, %arg1: memref<1x128x128xf32, #tpu.memory_space<vmem>>, %arg2: memref<1x128x128xf32, #tpu.memory_space<vmem>>, %arg3: memref<1x128x128xf32, #tpu.memory_space<vmem>>, %arg4: memref<1x128x128xf32, #tpu.memory_space<vmem>>, %arg5: memref<128x128xf32, #tpu.memory_space<vmem>>) attributes {dimension_semantics = [#tpu.dimension_semantics<parallel>], iteration_bounds = array<i64: 1>, scalar_prefetch = 0 : i64, scratch_operands = 0 : i64, tpu.core_type = #tpu.core_type<tc>, window_params = [{transform_indices = @transform_0, window_bounds = array<i64: 1, 128, 128>}, {transform_indices = @transform_1, window_bounds = array<i64: 1, 128, 128>}, {transform_indices = @transform_2, window_bounds = array<i64: 1, 128, 128>}, {transform_indices = @transform_3, window_bounds = array<i64: 1, 128, 128>}, {transform_indices = @transform_4, window_bounds = array<i64: 128, 128>}]} {
    %c0 = arith.constant 0 : index
    %c0_0 = arith.constant 0 : index
    %c0_1 = arith.constant 0 : index
    %0 = vector.load %arg1[%c0, %c0_0, %c0_1] : memref<1x128x128xf32, #tpu.memory_space<vmem>>, vector<1x128x128xf32>
    %1 = vector.shape_cast %0 : vector<1x128x128xf32> to vector<128x128xf32>
    %c0_2 = arith.constant 0 : index
    %c0_3 = arith.constant 0 : index
    %c0_4 = arith.constant 0 : index
    %2 = vector.load %arg2[%c0_2, %c0_3, %c0_4] : memref<1x128x128xf32, #tpu.memory_space<vmem>>, vector<1x128x128xf32>
    %3 = vector.shape_cast %2 : vector<1x128x128xf32> to vector<128x128xf32>
    %4 = arith.maximumf %1, %3 : vector<128x128xf32>
    %c0_5 = arith.constant 0 : index
    %c0_6 = arith.constant 0 : index
    %c0_7 = arith.constant 0 : index
    %5 = vector.load %arg3[%c0_5, %c0_6, %c0_7] : memref<1x128x128xf32, #tpu.memory_space<vmem>>, vector<1x128x128xf32>
    %6 = vector.shape_cast %5 : vector<1x128x128xf32> to vector<128x128xf32>
    %c0_8 = arith.constant 0 : index
    %c0_9 = arith.constant 0 : index
    %c0_10 = arith.constant 0 : index
    %7 = vector.load %arg4[%c0_8, %c0_9, %c0_10] : memref<1x128x128xf32, #tpu.memory_space<vmem>>, vector<1x128x128xf32>
    %8 = vector.shape_cast %7 : vector<1x128x128xf32> to vector<128x128xf32>
    %9 = arith.maximumf %6, %8 : vector<128x128xf32>
    %10 = arith.maximumf %4, %9 : vector<128x128xf32>
    %c0_11 = arith.constant 0 : index
    %c0_12 = arith.constant 0 : index
    %11 = vector.load %arg5[%c0_11, %c0_12] : memref<128x128xf32, #tpu.memory_space<vmem>>, vector<128x128xf32>
    tpu.vector_store %arg5[%c0_11, %c0_12], %10 {strides = array<i32>} : memref<128x128xf32, #tpu.memory_space<vmem>>, vector<128x128xf32>,
    return
  }
  func.func @transform_0(%arg0: i32) -> (i32, i32, i32) {
    %c0_i32 = arith.constant 0 : i32
    %c0_i32_0 = arith.constant 0 : i32
    %c0_i32_1 = arith.constant 0 : i32
    return %c0_i32, %arg0, %c0_i32_0 : i32, i32, i32
  }
  func.func @transform_1(%arg0: i32) -> (i32, i32, i32) {
    %c1_i32 = arith.constant 1 : i32
    %c0_i32 = arith.constant 0 : i32
    %c0_i32_0 = arith.constant 0 : i32
    return %c1_i32, %arg0, %c0_i32 : i32, i32, i32
  }
  func.func @transform_2(%arg0: i32) -> (i32, i32, i32) {
    %c2_i32 = arith.constant 2 : i32
    %c0_i32 = arith.constant 0 : i32
    %c0_i32_0 = arith.constant 0 : i32
    return %c2_i32, %arg0, %c0_i32 : i32, i32, i32
  }
  func.func @transform_3(%arg0: i32) -> (i32, i32, i32) {
    %c3_i32 = arith.constant 3 : i32
    %c0_i32 = arith.constant 0 : i32
    %c0_i32_0 = arith.constant 0 : i32
    return %c3_i32, %arg0, %c0_i32 : i32, i32, i32
  }
  func.func @transform_4(%arg0: i32) -> (i32, i32) {
    %c0_i32 = arith.constant 0 : i32
    %c0_i32_0 = arith.constant 0 : i32
    return %arg0, %c0_i32 : i32, i32
  }
}

module attributes {stable_mosaic.version = 11 : i64} {
  func.func @_fc_fused_kernel(%arg0: i32, %arg1: memref<2x4096xbf16, #tpu.memory_space<vmem>>, %arg2: memref<4096x128xbf16, #tpu.memory_space<vmem>>, %arg3: memref<1x128xf32, #tpu.memory_space<vmem>>, %arg4: memref<128x128xbf16, #tpu.memory_space<vmem>>, %arg5: memref<1x128xf32, #tpu.memory_space<vmem>>, %arg6: memref<2x128xf32, #tpu.memory_space<vmem>>) attributes {dimension_semantics = [#tpu.dimension_semantics<parallel>], iteration_bounds = array<i64: 1>, scalar_prefetch = 0 : i64, scratch_operands = 0 : i64, tpu.core_type = #tpu.core_type<tc>, window_params = [{transform_indices = @transform_0, window_bounds = array<i64: 2, 4096>}, {pipeline_mode = #tpu.pipeline_mode<synchronous>, transform_indices = @transform_1, window_bounds = array<i64: 4096, 128>}, {pipeline_mode = #tpu.pipeline_mode<synchronous>, transform_indices = @transform_2, window_bounds = array<i64: 1, 128>}, {pipeline_mode = #tpu.pipeline_mode<synchronous>, transform_indices = @transform_3, window_bounds = array<i64: 128, 128>}, {pipeline_mode = #tpu.pipeline_mode<synchronous>, transform_indices = @transform_4, window_bounds = array<i64: 1, 128>}, {transform_indices = @transform_5, window_bounds = array<i64: 2, 128>}]} {
    %c0 = arith.constant 0 : index
    %c0_0 = arith.constant 0 : index
    %0 = vector.load %arg1[%c0, %c0_0] : memref<2x4096xbf16, #tpu.memory_space<vmem>>, vector<2x4096xbf16>
    %c0_1 = arith.constant 0 : index
    %c0_2 = arith.constant 0 : index
    %1 = vector.load %arg2[%c0_1, %c0_2] : memref<4096x128xbf16, #tpu.memory_space<vmem>>, vector<4096x128xbf16>
    %cst = arith.constant dense<0.000000e+00> : vector<2x128xf32>
    %2 = tpu.matmul %0, %1, %cst {dimension_numbers = #tpu.dot_dimension_numbers<[1], [0], [0], [1], [0, 0, 1, 1], [], []>} : vector<2x4096xbf16>, vector<4096x128xbf16>, vector<2x128xf32> -> vector<2x128xf32>
    %c0_3 = arith.constant 0 : index
    %c0_4 = arith.constant 0 : index
    %3 = vector.load %arg3[%c0_3, %c0_4] : memref<1x128xf32, #tpu.memory_space<vmem>>, vector<1x128xf32>
    %4 = vector.broadcast %3 : vector<1x128xf32> to vector<2x128xf32>
    %5 = arith.addf %2, %4 : vector<2x128xf32>
    %cst_5 = arith.constant 0.000000e+00 : f32
    %6 = vector.broadcast %cst_5 : f32 to vector<2x128xf32>
    %7 = arith.maximumf %5, %6 : vector<2x128xf32>
    %8 = arith.truncf %7 : vector<2x128xf32> to vector<2x128xbf16>
    %c0_6 = arith.constant 0 : index
    %c0_7 = arith.constant 0 : index
    %9 = vector.load %arg4[%c0_6, %c0_7] : memref<128x128xbf16, #tpu.memory_space<vmem>>, vector<128x128xbf16>
    %cst_8 = arith.constant dense<0.000000e+00> : vector<2x128xf32>
    %10 = tpu.matmul %8, %9, %cst_8 {dimension_numbers = #tpu.dot_dimension_numbers<[1], [0], [0], [1], [0, 0, 1, 1], [], []>} : vector<2x128xbf16>, vector<128x128xbf16>, vector<2x128xf32> -> vector<2x128xf32>
    %c0_9 = arith.constant 0 : index
    %c0_10 = arith.constant 0 : index
    %11 = vector.load %arg5[%c0_9, %c0_10] : memref<1x128xf32, #tpu.memory_space<vmem>>, vector<1x128xf32>
    %12 = vector.broadcast %11 : vector<1x128xf32> to vector<2x128xf32>
    %13 = arith.addf %10, %12 : vector<2x128xf32>
    %c0_11 = arith.constant 0 : index
    %c0_12 = arith.constant 0 : index
    %14 = vector.load %arg6[%c0_11, %c0_12] : memref<2x128xf32, #tpu.memory_space<vmem>>, vector<2x128xf32>
    tpu.vector_store %arg6[%c0_11, %c0_12], %13 {strides = array<i32>} : memref<2x128xf32, #tpu.memory_space<vmem>>, vector<2x128xf32>,
    return
  }
  func.func @transform_0(%arg0: i32) -> (i32, i32) {
    %c0_i32 = arith.constant 0 : i32
    %c0_i32_0 = arith.constant 0 : i32
    return %arg0, %c0_i32 : i32, i32
  }
  func.func @transform_1(%arg0: i32) -> (i32, i32) {
    %c0_i32 = arith.constant 0 : i32
    %c0_i32_0 = arith.constant 0 : i32
    %c0_i32_1 = arith.constant 0 : i32
    return %c0_i32, %c0_i32_0 : i32, i32
  }
  func.func @transform_2(%arg0: i32) -> (i32, i32) {
    %c0_i32 = arith.constant 0 : i32
    %c0_i32_0 = arith.constant 0 : i32
    %c0_i32_1 = arith.constant 0 : i32
    return %c0_i32, %c0_i32_0 : i32, i32
  }
  func.func @transform_3(%arg0: i32) -> (i32, i32) {
    %c0_i32 = arith.constant 0 : i32
    %c0_i32_0 = arith.constant 0 : i32
    %c0_i32_1 = arith.constant 0 : i32
    return %c0_i32, %c0_i32_0 : i32, i32
  }
  func.func @transform_4(%arg0: i32) -> (i32, i32) {
    %c0_i32 = arith.constant 0 : i32
    %c0_i32_0 = arith.constant 0 : i32
    %c0_i32_1 = arith.constant 0 : i32
    return %c0_i32, %c0_i32_0 : i32, i32
  }
  func.func @transform_5(%arg0: i32) -> (i32, i32) {
    %c0_i32 = arith.constant 0 : i32
    %c0_i32_0 = arith.constant 0 : i32
    return %arg0, %c0_i32 : i32, i32
  }
}

</mosaic_0001>

<bundles_post_ra>
// kernel: cnn_forward.6
= control target key start
LH: loop header
LB: loop body
LE: loop exit
PB: predicated region body
PF: predicated region fallthrough
CT: control target
= control target key end

     0   :  { %s1719_s0 = inlined_call_operand.vmem [shape: f32[4,512,128], index: 0, kind: input, shape index: {}, may-alias: {0,1,2,3}]   ;;  %s1720_s1 = inlined_call_operand.vmem [shape: f32[4,512,128], index: 1, kind: input, shape index: {}, may-alias: {0,1,2,3}]   ;;  %s1721_s2 = inlined_call_operand.vmem [shape: f32[4,512,128], index: 2, kind: input, shape index: {}, may-alias: {0,1,2,3}]   ;;  %s1722_s3 = inlined_call_operand.vmem [shape: f32[4,512,128], index: 3, kind: input, shape index: {}, may-alias: {0,1,2,3}]   ;;  %s1723_s4 = inlined_call_operand.vmem [shape: f32[512,128], index: 4, kind: output, shape index: {}]  }
   0x1   :  { %v26_v0 = vld [vmem:[%s1719_s0] sm:$0xff]  ;;  %v27_v5 = vld [vmem:[%s1719_s0 + $0x8] sm:$0xff]  ;;  %v28_v11 = vld [vmem:[%s1719_s0 + $0x10] sm:$0xff] }
   0x2   :  { %v542_v1 = vld [vmem:[%s1720_s1 + $0x200] sm:$0xff]  ;;  %v543_v6 = vld [vmem:[%s1720_s1 + $0x208] sm:$0xff]  ;;  %v544_v13 = vld [vmem:[%s1720_s1 + $0x210] sm:$0xff] }
   0x3   :  { %v606_v2 = vld [vmem:[%s1721_s2 + $0x400] sm:$0xff]  ;;  %v154_v3 = vmax.f32 %v26_v0, %v542_v1  ;;  %v155_v8 = vmax.f32 %v27_v5, %v543_v6  ;;  %v607_v9 = vld [vmem:[%s1721_s2 + $0x408] sm:$0xff]  ;;  %v608_v14 = vld [vmem:[%s1721_s2 + $0x410] sm:$0xff]  ;;  %v156_v17 = vmax.f32 %v28_v11, %v544_v13 }
   0x4   :  { %v670_v4 = vld [vmem:[%s1722_s3 + $0x600] sm:$0xff]  ;;  %v671_v10 = vld [vmem:[%s1722_s3 + $0x608] sm:$0xff]  ;;  %v672_v15 = vld [vmem:[%s1722_s3 + $0x610] sm:$0xff] }
   0x5   :  { %v346_v7 = vmax.f32 %v606_v2, %v670_v4  ;;  %v347_v12 = vmax.f32 %v607_v9, %v671_v10  ;;  %v348_v18 = vmax.f32 %v608_v14, %v672_v15  ;;  %v29_v19 = vld [vmem:[%s1719_s0 + $0x18] sm:$0xff]  ;;  %v30_v25 = vld [vmem:[%s1719_s0 + $0x20] sm:$0xff]  ;;  %v31_v32 = vld [vmem:[%s1719_s0 + $0x28] sm:$0xff] }
   0x6   :  { %v545_v20 = vld [vmem:[%s1720_s1 + $0x218] sm:$0xff]  ;;  %v546_v26 = vld [vmem:[%s1720_s1 + $0x220] sm:$0xff]  ;;  %v547_v34 = vld [vmem:[%s1720_s1 + $0x228] sm:$0xff] }
   0x7   :  { %v410_v16 = vmax.f32 %v154_v3, %v346_v7  ;;  %v609_v21 = vld [vmem:[%s1721_s2 + $0x418] sm:$0xff]  ;;  %v411_v22 = vmax.f32 %v155_v8, %v347_v12  ;;  %v157_v23 = vmax.f32 %v29_v19, %v545_v20  ;;  %v412_v27 = vmax.f32 %v156_v17, %v348_v18  ;;  %v610_v30 = vld [vmem:[%s1721_s2 + $0x420] sm:$0xff]  ;;  %v611_v35 = vld [vmem:[%s1721_s2 + $0x428] sm:$0xff] }
   0x8   :  { %v673_v24 = vld [vmem:[%s1722_s3 + $0x618] sm:$0xff]  ;;  %v158_v29 = vmax.f32 %v30_v25, %v546_v26  ;;  %v674_v31 = vld [vmem:[%s1722_s3 + $0x620] sm:$0xff]  ;;  %v675_v36 = vld [vmem:[%s1722_s3 + $0x628] sm:$0xff]  ;;  %v159_v38 = vmax.f32 %v31_v32, %v547_v34 }
   0x9   :  { %474 = vst [vmem:[%s1723_s4] sm:$0xff] %v410_v16  ;;  %v349_v28 = vmax.f32 %v609_v21, %v673_v24  ;;  %475 = vst [vmem:[%s1723_s4 + $0x8] sm:$0xff] %v411_v22  ;;  %v350_v33 = vmax.f32 %v610_v30, %v674_v31  ;;  %v351_v39 = vmax.f32 %v611_v35, %v675_v36  ;;  %v32_v40 = vld [vmem:[%s1719_s0 + $0x30] sm:$0xff]  ;;  %v33_v46 = vld [vmem:[%s1719_s0 + $0x38] sm:$0xff] }
   0xa   :  { %476 = vst [vmem:[%s1723_s4 + $0x10] sm:$0xff] %v412_v27  ;;  %v548_v41 = vld [vmem:[%s1720_s1 + $0x230] sm:$0xff]  ;;  %v549_v47 = vld [vmem:[%s1720_s1 + $0x238] sm:$0xff]  ;;  %v34_v53 = vld [vmem:[%s1719_s0 + $0x40] sm:$0xff] }
   0xb   :  { %v413_v37 = vmax.f32 %v157_v23, %v349_v28  ;;  %v612_v42 = vld [vmem:[%s1721_s2 + $0x430] sm:$0xff]  ;;  %v414_v43 = vmax.f32 %v158_v29, %v350_v33  ;;  %v160_v44 = vmax.f32 %v32_v40, %v548_v41  ;;  %v415_v48 = vmax.f32 %v159_v38, %v351_v39  ;;  %v613_v51 = vld [vmem:[%s1721_s2 + $0x438] sm:$0xff]  ;;  %v550_v55 = vld [vmem:[%s1720_s1 + $0x240] sm:$0xff] }
   0xc   :  { %v676_v45 = vld [vmem:[%s1722_s3 + $0x630] sm:$0xff]  ;;  %v161_v50 = vmax.f32 %v33_v46, %v549_v47  ;;  %v677_v52 = vld [vmem:[%s1722_s3 + $0x638] sm:$0xff]  ;;  %v614_v56 = vld [vmem:[%s1721_s2 + $0x440] sm:$0xff]  ;;  %v162_v59 = vmax.f32 %v34_v53, %v550_v55 }
   0xd   :  { %477 = vst [vmem:[%s1723_s4 + $0x18] sm:$0xff] %v413_v37  ;;  %v352_v49 = vmax.f32 %v612_v42, %v676_v45  ;;  %478 = vst [vmem:[%s1723_s4 + $0x20] sm:$0xff] %v414_v43  ;;  %v353_v54 = vmax.f32 %v613_v51, %v677_v52  ;;  %v678_v57 = vld [vmem:[%s1722_s3 + $0x640] sm:$0xff]  ;;  %v35_v61 = vld [vmem:[%s1719_s0 + $0x48] sm:$0xff] }
   0xe   :  { %479 = vst [vmem:[%s1723_s4 + $0x28] sm:$0xff] %v415_v48  ;;  %v354_v60 = vmax.f32 %v614_v56, %v678_v57  ;;  %v551_v62 = vld [vmem:[%s1720_s1 + $0x248] sm:$0xff]  ;;  %v36_v3 = vld [vmem:[%s1719_s0 + $0x50] sm:$0xff]  ;;  %v37_v10 = vld [vmem:[%s1719_s0 + $0x58] sm:$0xff] }
   0xf   :  { %v416_v58 = vmax.f32 %v160_v44, %v352_v49  ;;  %v615_v63 = vld [vmem:[%s1721_s2 + $0x448] sm:$0xff]  ;;  %v417_v0 = vmax.f32 %v161_v50, %v353_v54  ;;  %v163_v1 = vmax.f32 %v35_v61, %v551_v62  ;;  %v552_v4 = vld [vmem:[%s1720_s1 + $0x250] sm:$0xff]  ;;  %v553_v12 = vld [vmem:[%s1720_s1 + $0x258] sm:$0xff] }
  0x10   :  { %v679_v2 = vld [vmem:[%s1722_s3 + $0x648] sm:$0xff]  ;;  %v418_v5 = vmax.f32 %v162_v59, %v354_v60  ;;  %v164_v7 = vmax.f32 %v36_v3, %v552_v4  ;;  %v616_v8 = vld [vmem:[%s1721_s2 + $0x450] sm:$0xff]  ;;  %v617_v13 = vld [vmem:[%s1721_s2 + $0x458] sm:$0xff]  ;;  %v165_v16 = vmax.f32 %v37_v10, %v553_v12 }
  0x11   :  { %480 = vst [vmem:[%s1723_s4 + $0x30] sm:$0xff] %v416_v58  ;;  %v355_v6 = vmax.f32 %v615_v63, %v679_v2  ;;  %v680_v9 = vld [vmem:[%s1722_s3 + $0x650] sm:$0xff]  ;;  %481 = vst [vmem:[%s1723_s4 + $0x38] sm:$0xff] %v417_v0  ;;  %v681_v14 = vld [vmem:[%s1722_s3 + $0x658] sm:$0xff] }
  0x12   :  { %v356_v11 = vmax.f32 %v616_v8, %v680_v9  ;;  %482 = vst [vmem:[%s1723_s4 + $0x40] sm:$0xff] %v418_v5  ;;  %v357_v17 = vmax.f32 %v617_v13, %v681_v14  ;;  %v38_v18 = vld [vmem:[%s1719_s0 + $0x60] sm:$0xff]  ;;  %v39_v24 = vld [vmem:[%s1719_s0 + $0x68] sm:$0xff]  ;;  %v40_v31 = vld [vmem:[%s1719_s0 + $0x70] sm:$0xff] }
  0x13   :  { %v419_v15 = vmax.f32 %v163_v1, %v355_v6  ;;  %v554_v19 = vld [vmem:[%s1720_s1 + $0x260] sm:$0xff]  ;;  %v555_v25 = vld [vmem:[%s1720_s1 + $0x268] sm:$0xff]  ;;  %v556_v33 = vld [vmem:[%s1720_s1 + $0x270] sm:$0xff] }
  0x14   :  { %v618_v20 = vld [vmem:[%s1721_s2 + $0x460] sm:$0xff]  ;;  %v420_v21 = vmax.f32 %v164_v7, %v356_v11  ;;  %v166_v22 = vmax.f32 %v38_v18, %v554_v19  ;;  %v421_v26 = vmax.f32 %v165_v16, %v357_v17  ;;  %v167_v28 = vmax.f32 %v39_v24, %v555_v25  ;;  %v619_v29 = vld [vmem:[%s1721_s2 + $0x468] sm:$0xff]  ;;  %v620_v34 = vld [vmem:[%s1721_s2 + $0x470] sm:$0xff] }
  0x15   :  { %v682_v23 = vld [vmem:[%s1722_s3 + $0x660] sm:$0xff]  ;;  %483 = vst [vmem:[%s1723_s4 + $0x48] sm:$0xff] %v419_v15  ;;  %v683_v30 = vld [vmem:[%s1722_s3 + $0x668] sm:$0xff]  ;;  %v684_v35 = vld [vmem:[%s1722_s3 + $0x670] sm:$0xff]  ;;  %v168_v37 = vmax.f32 %v40_v31, %v556_v33 }
  0x16   :  { %v358_v27 = vmax.f32 %v618_v20, %v682_v23  ;;  %484 = vst [vmem:[%s1723_s4 + $0x50] sm:$0xff] %v420_v21  ;;  %v359_v32 = vmax.f32 %v619_v29, %v683_v30  ;;  %485 = vst [vmem:[%s1723_s4 + $0x58] sm:$0xff] %v421_v26  ;;  %v360_v38 = vmax.f32 %v620_v34, %v684_v35  ;;  %v41_v39 = vld [vmem:[%s1719_s0 + $0x78] sm:$0xff]  ;;  %v42_v45 = vld [vmem:[%s1719_s0 + $0x80] sm:$0xff] }
  0x17   :  { %v557_v40 = vld [vmem:[%s1720_s1 + $0x278] sm:$0xff]  ;;  %v558_v46 = vld [vmem:[%s1720_s1 + $0x280] sm:$0xff]  ;;  %v43_v52 = vld [vmem:[%s1719_s0 + $0x88] sm:$0xff] }
  0x18   :  { %v422_v36 = vmax.f32 %v166_v22, %v358_v27  ;;  %v621_v41 = vld [vmem:[%s1721_s2 + $0x478] sm:$0xff]  ;;  %v423_v42 = vmax.f32 %v167_v28, %v359_v32  ;;  %v169_v43 = vmax.f32 %v41_v39, %v557_v40  ;;  %v424_v47 = vmax.f32 %v168_v37, %v360_v38  ;;  %v622_v50 = vld [vmem:[%s1721_s2 + $0x480] sm:$0xff]  ;;  %v559_v54 = vld [vmem:[%s1720_s1 + $0x288] sm:$0xff] }
  0x19   :  { %v685_v44 = vld [vmem:[%s1722_s3 + $0x678] sm:$0xff]  ;;  %v170_v49 = vmax.f32 %v42_v45, %v558_v46  ;;  %v686_v51 = vld [vmem:[%s1722_s3 + $0x680] sm:$0xff]  ;;  %v623_v55 = vld [vmem:[%s1721_s2 + $0x488] sm:$0xff]  ;;  %v171_v58 = vmax.f32 %v43_v52, %v559_v54 }
  0x1a   :  { %486 = vst [vmem:[%s1723_s4 + $0x60] sm:$0xff] %v422_v36  ;;  %v361_v48 = vmax.f32 %v621_v41, %v685_v44  ;;  %487 = vst [vmem:[%s1723_s4 + $0x68] sm:$0xff] %v423_v42  ;;  %v362_v53 = vmax.f32 %v622_v50, %v686_v51  ;;  %v687_v56 = vld [vmem:[%s1722_s3 + $0x688] sm:$0xff]  ;;  %v44_v60 = vld [vmem:[%s1719_s0 + $0x90] sm:$0xff] }
  0x1b   :  { %488 = vst [vmem:[%s1723_s4 + $0x70] sm:$0xff] %v424_v47  ;;  %v363_v59 = vmax.f32 %v623_v55, %v687_v56  ;;  %v560_v61 = vld [vmem:[%s1720_s1 + $0x290] sm:$0xff]  ;;  %v45_v2 = vld [vmem:[%s1719_s0 + $0x98] sm:$0xff]  ;;  %v46_v9 = vld [vmem:[%s1719_s0 + $0xa0] sm:$0xff] }
  0x1c   :  { %v425_v57 = vmax.f32 %v169_v43, %v361_v48  ;;  %v624_v62 = vld [vmem:[%s1721_s2 + $0x490] sm:$0xff]  ;;  %v426_v63 = vmax.f32 %v170_v49, %v362_v53  ;;  %v172_v0 = vmax.f32 %v44_v60, %v560_v61  ;;  %v561_v3 = vld [vmem:[%s1720_s1 + $0x298] sm:$0xff]  ;;  %v562_v11 = vld [vmem:[%s1720_s1 + $0x2a0] sm:$0xff] }
  0x1d   :  { %v688_v1 = vld [vmem:[%s1722_s3 + $0x690] sm:$0xff]  ;;  %v427_v4 = vmax.f32 %v171_v58, %v363_v59  ;;  %v173_v6 = vmax.f32 %v45_v2, %v561_v3  ;;  %v625_v7 = vld [vmem:[%s1721_s2 + $0x498] sm:$0xff]  ;;  %v626_v12 = vld [vmem:[%s1721_s2 + $0x4a0] sm:$0xff]  ;;  %v174_v15 = vmax.f32 %v46_v9, %v562_v11 }
  0x1e   :  { %489 = vst [vmem:[%s1723_s4 + $0x78] sm:$0xff] %v425_v57  ;;  %v364_v5 = vmax.f32 %v624_v62, %v688_v1  ;;  %v689_v8 = vld [vmem:[%s1722_s3 + $0x698] sm:$0xff]  ;;  %490 = vst [vmem:[%s1723_s4 + $0x80] sm:$0xff] %v426_v63  ;;  %v690_v13 = vld [vmem:[%s1722_s3 + $0x6a0] sm:$0xff] }
  0x1f   :  { %v365_v10 = vmax.f32 %v625_v7, %v689_v8  ;;  %491 = vst [vmem:[%s1723_s4 + $0x88] sm:$0xff] %v427_v4  ;;  %v366_v16 = vmax.f32 %v626_v12, %v690_v13  ;;  %v47_v17 = vld [vmem:[%s1719_s0 + $0xa8] sm:$0xff]  ;;  %v48_v23 = vld [vmem:[%s1719_s0 + $0xb0] sm:$0xff]  ;;  %v49_v30 = vld [vmem:[%s1719_s0 + $0xb8] sm:$0xff] }
  0x20   :  { %v428_v14 = vmax.f32 %v172_v0, %v364_v5  ;;  %v563_v18 = vld [vmem:[%s1720_s1 + $0x2a8] sm:$0xff]  ;;  %v564_v24 = vld [vmem:[%s1720_s1 + $0x2b0] sm:$0xff]  ;;  %v565_v32 = vld [vmem:[%s1720_s1 + $0x2b8] sm:$0xff] }
  0x21   :  { %v627_v19 = vld [vmem:[%s1721_s2 + $0x4a8] sm:$0xff]  ;;  %v429_v20 = vmax.f32 %v173_v6, %v365_v10  ;;  %v175_v21 = vmax.f32 %v47_v17, %v563_v18  ;;  %v430_v25 = vmax.f32 %v174_v15, %v366_v16  ;;  %v176_v27 = vmax.f32 %v48_v23, %v564_v24  ;;  %v628_v28 = vld [vmem:[%s1721_s2 + $0x4b0] sm:$0xff]  ;;  %v629_v33 = vld [vmem:[%s1721_s2 + $0x4b8] sm:$0xff] }
  0x22   :  { %v691_v22 = vld [vmem:[%s1722_s3 + $0x6a8] sm:$0xff]  ;;  %492 = vst [vmem:[%s1723_s4 + $0x90] sm:$0xff] %v428_v14  ;;  %v692_v29 = vld [vmem:[%s1722_s3 + $0x6b0] sm:$0xff]  ;;  %v693_v34 = vld [vmem:[%s1722_s3 + $0x6b8] sm:$0xff]  ;;  %v177_v36 = vmax.f32 %v49_v30, %v565_v32 }
  0x23   :  { %v367_v26 = vmax.f32 %v627_v19, %v691_v22  ;;  %493 = vst [vmem:[%s1723_s4 + $0x98] sm:$0xff] %v429_v20  ;;  %v368_v31 = vmax.f32 %v628_v28, %v692_v29  ;;  %494 = vst [vmem:[%s1723_s4 + $0xa0] sm:$0xff] %v430_v25  ;;  %v369_v37 = vmax.f32 %v629_v33, %v693_v34  ;;  %v50_v38 = vld [vmem:[%s1719_s0 + $0xc0] sm:$0xff]  ;;  %v51_v44 = vld [vmem:[%s1719_s0 + $0xc8] sm:$0xff] }
  0x24   :  { %v566_v39 = vld [vmem:[%s1720_s1 + $0x2c0] sm:$0xff]  ;;  %v567_v45 = vld [vmem:[%s1720_s1 + $0x2c8] sm:$0xff]  ;;  %v52_v51 = vld [vmem:[%s1719_s0 + $0xd0] sm:$0xff] }
  0x25   :  { %v431_v35 = vmax.f32 %v175_v21, %v367_v26  ;;  %v630_v40 = vld [vmem:[%s1721_s2 + $0x4c0] sm:$0xff]  ;;  %v432_v41 = vmax.f32 %v176_v27, %v368_v31  ;;  %v178_v42 = vmax.f32 %v50_v38, %v566_v39  ;;  %v433_v46 = vmax.f32 %v177_v36, %v369_v37  ;;  %v631_v49 = vld [vmem:[%s1721_s2 + $0x4c8] sm:$0xff]  ;;  %v568_v53 = vld [vmem:[%s1720_s1 + $0x2d0] sm:$0xff] }
  0x26   :  { %v694_v43 = vld [vmem:[%s1722_s3 + $0x6c0] sm:$0xff]  ;;  %v179_v48 = vmax.f32 %v51_v44, %v567_v45  ;;  %v695_v50 = vld [vmem:[%s1722_s3 + $0x6c8] sm:$0xff]  ;;  %v632_v54 = vld [vmem:[%s1721_s2 + $0x4d0] sm:$0xff]  ;;  %v180_v57 = vmax.f32 %v52_v51, %v568_v53 }
  0x27   :  { %495 = vst [vmem:[%s1723_s4 + $0xa8] sm:$0xff] %v431_v35  ;;  %v370_v47 = vmax.f32 %v630_v40, %v694_v43  ;;  %496 = vst [vmem:[%s1723_s4 + $0xb0] sm:$0xff] %v432_v41  ;;  %v371_v52 = vmax.f32 %v631_v49, %v695_v50  ;;  %v696_v55 = vld [vmem:[%s1722_s3 + $0x6d0] sm:$0xff]  ;;  %v53_v59 = vld [vmem:[%s1719_s0 + $0xd8] sm:$0xff] }
  0x28   :  { %497 = vst [vmem:[%s1723_s4 + $0xb8] sm:$0xff] %v433_v46  ;;  %v372_v58 = vmax.f32 %v632_v54, %v696_v55  ;;  %v569_v60 = vld [vmem:[%s1720_s1 + $0x2d8] sm:$0xff]  ;;  %v54_v1 = vld [vmem:[%s1719_s0 + $0xe0] sm:$0xff]  ;;  %v55_v8 = vld [vmem:[%s1719_s0 + $0xe8] sm:$0xff] }
  0x29   :  { %v434_v56 = vmax.f32 %v178_v42, %v370_v47  ;;  %v633_v61 = vld [vmem:[%s1721_s2 + $0x4d8] sm:$0xff]  ;;  %v435_v62 = vmax.f32 %v179_v48, %v371_v52  ;;  %v181_v63 = vmax.f32 %v53_v59, %v569_v60  ;;  %v570_v2 = vld [vmem:[%s1720_s1 + $0x2e0] sm:$0xff]  ;;  %v571_v10 = vld [vmem:[%s1720_s1 + $0x2e8] sm:$0xff] }
  0x2a   :  { %v697_v0 = vld [vmem:[%s1722_s3 + $0x6d8] sm:$0xff]  ;;  %v436_v3 = vmax.f32 %v180_v57, %v372_v58  ;;  %v182_v5 = vmax.f32 %v54_v1, %v570_v2  ;;  %v634_v6 = vld [vmem:[%s1721_s2 + $0x4e0] sm:$0xff]  ;;  %v635_v11 = vld [vmem:[%s1721_s2 + $0x4e8] sm:$0xff]  ;;  %v183_v14 = vmax.f32 %v55_v8, %v571_v10 }
  0x2b   :  { %498 = vst [vmem:[%s1723_s4 + $0xc0] sm:$0xff] %v434_v56  ;;  %v373_v4 = vmax.f32 %v633_v61, %v697_v0  ;;  %v698_v7 = vld [vmem:[%s1722_s3 + $0x6e0] sm:$0xff]  ;;  %499 = vst [vmem:[%s1723_s4 + $0xc8] sm:$0xff] %v435_v62  ;;  %v699_v12 = vld [vmem:[%s1722_s3 + $0x6e8] sm:$0xff] }
  0x2c   :  { %v374_v9 = vmax.f32 %v634_v6, %v698_v7  ;;  %500 = vst [vmem:[%s1723_s4 + $0xd0] sm:$0xff] %v436_v3  ;;  %v375_v15 = vmax.f32 %v635_v11, %v699_v12  ;;  %v56_v16 = vld [vmem:[%s1719_s0 + $0xf0] sm:$0xff]  ;;  %v57_v22 = vld [vmem:[%s1719_s0 + $0xf8] sm:$0xff]  ;;  %v58_v29 = vld [vmem:[%s1719_s0 + $0x100] sm:$0xff] }
  0x2d   :  { %v437_v13 = vmax.f32 %v181_v63, %v373_v4  ;;  %v572_v17 = vld [vmem:[%s1720_s1 + $0x2f0] sm:$0xff]  ;;  %v573_v23 = vld [vmem:[%s1720_s1 + $0x2f8] sm:$0xff]  ;;  %v574_v31 = vld [vmem:[%s1720_s1 + $0x300] sm:$0xff] }
  0x2e   :  { %v636_v18 = vld [vmem:[%s1721_s2 + $0x4f0] sm:$0xff]  ;;  %v438_v19 = vmax.f32 %v182_v5, %v374_v9  ;;  %v184_v20 = vmax.f32 %v56_v16, %v572_v17  ;;  %v439_v24 = vmax.f32 %v183_v14, %v375_v15  ;;  %v185_v26 = vmax.f32 %v57_v22, %v573_v23  ;;  %v637_v27 = vld [vmem:[%s1721_s2 + $0x4f8] sm:$0xff]  ;;  %v638_v32 = vld [vmem:[%s1721_s2 + $0x500] sm:$0xff] }
  0x2f   :  { %v700_v21 = vld [vmem:[%s1722_s3 + $0x6f0] sm:$0xff]  ;;  %501 = vst [vmem:[%s1723_s4 + $0xd8] sm:$0xff] %v437_v13  ;;  %v701_v28 = vld [vmem:[%s1722_s3 + $0x6f8] sm:$0xff]  ;;  %v702_v33 = vld [vmem:[%s1722_s3 + $0x700] sm:$0xff]  ;;  %v186_v35 = vmax.f32 %v58_v29, %v574_v31 }
  0x30   :  { %v376_v25 = vmax.f32 %v636_v18, %v700_v21  ;;  %502 = vst [vmem:[%s1723_s4 + $0xe0] sm:$0xff] %v438_v19  ;;  %v377_v30 = vmax.f32 %v637_v27, %v701_v28  ;;  %503 = vst [vmem:[%s1723_s4 + $0xe8] sm:$0xff] %v439_v24  ;;  %v378_v36 = vmax.f32 %v638_v32, %v702_v33  ;;  %v59_v37 = vld [vmem:[%s1719_s0 + $0x108] sm:$0xff]  ;;  %v60_v43 = vld [vmem:[%s1719_s0 + $0x110] sm:$0xff] }
  0x31   :  { %v575_v38 = vld [vmem:[%s1720_s1 + $0x308] sm:$0xff]  ;;  %v576_v44 = vld [vmem:[%s1720_s1 + $0x310] sm:$0xff]  ;;  %v61_v50 = vld [vmem:[%s1719_s0 + $0x118] sm:$0xff] }
  0x32   :  { %v440_v34 = vmax.f32 %v184_v20, %v376_v25  ;;  %v639_v39 = vld [vmem:[%s1721_s2 + $0x508] sm:$0xff]  ;;  %v441_v40 = vmax.f32 %v185_v26, %v377_v30  ;;  %v187_v41 = vmax.f32 %v59_v37, %v575_v38  ;;  %v442_v45 = vmax.f32 %v186_v35, %v378_v36  ;;  %v640_v48 = vld [vmem:[%s1721_s2 + $0x510] sm:$0xff]  ;;  %v577_v52 = vld [vmem:[%s1720_s1 + $0x318] sm:$0xff] }
  0x33   :  { %v703_v42 = vld [vmem:[%s1722_s3 + $0x708] sm:$0xff]  ;;  %v188_v47 = vmax.f32 %v60_v43, %v576_v44  ;;  %v704_v49 = vld [vmem:[%s1722_s3 + $0x710] sm:$0xff]  ;;  %v641_v53 = vld [vmem:[%s1721_s2 + $0x518] sm:$0xff]  ;;  %v189_v56 = vmax.f32 %v61_v50, %v577_v52 }
  0x34   :  { %504 = vst [vmem:[%s1723_s4 + $0xf0] sm:$0xff] %v440_v34  ;;  %v379_v46 = vmax.f32 %v639_v39, %v703_v42  ;;  %505 = vst [vmem:[%s1723_s4 + $0xf8] sm:$0xff] %v441_v40  ;;  %v380_v51 = vmax.f32 %v640_v48, %v704_v49  ;;  %v705_v54 = vld [vmem:[%s1722_s3 + $0x718] sm:$0xff]  ;;  %v62_v58 = vld [vmem:[%s1719_s0 + $0x120] sm:$0xff] }
  0x35   :  { %506 = vst [vmem:[%s1723_s4 + $0x100] sm:$0xff] %v442_v45  ;;  %v381_v57 = vmax.f32 %v641_v53, %v705_v54  ;;  %v578_v59 = vld [vmem:[%s1720_s1 + $0x320] sm:$0xff]  ;;  %v63_v0 = vld [vmem:[%s1719_s0 + $0x128] sm:$0xff]  ;;  %v64_v7 = vld [vmem:[%s1719_s0 + $0x130] sm:$0xff] }
  0x36   :  { %v443_v55 = vmax.f32 %v187_v41, %v379_v46  ;;  %v642_v60 = vld [vmem:[%s1721_s2 + $0x520] sm:$0xff]  ;;  %v444_v61 = vmax.f32 %v188_v47, %v380_v51  ;;  %v190_v62 = vmax.f32 %v62_v58, %v578_v59  ;;  %v579_v1 = vld [vmem:[%s1720_s1 + $0x328] sm:$0xff]  ;;  %v580_v9 = vld [vmem:[%s1720_s1 + $0x330] sm:$0xff] }
  0x37   :  { %v706_v63 = vld [vmem:[%s1722_s3 + $0x720] sm:$0xff]  ;;  %v445_v2 = vmax.f32 %v189_v56, %v381_v57  ;;  %v191_v4 = vmax.f32 %v63_v0, %v579_v1  ;;  %v643_v5 = vld [vmem:[%s1721_s2 + $0x528] sm:$0xff]  ;;  %v644_v10 = vld [vmem:[%s1721_s2 + $0x530] sm:$0xff]  ;;  %v192_v13 = vmax.f32 %v64_v7, %v580_v9 }
  0x38   :  { %507 = vst [vmem:[%s1723_s4 + $0x108] sm:$0xff] %v443_v55  ;;  %v382_v3 = vmax.f32 %v642_v60, %v706_v63  ;;  %v707_v6 = vld [vmem:[%s1722_s3 + $0x728] sm:$0xff]  ;;  %508 = vst [vmem:[%s1723_s4 + $0x110] sm:$0xff] %v444_v61  ;;  %v708_v11 = vld [vmem:[%s1722_s3 + $0x730] sm:$0xff] }
  0x39   :  { %v383_v8 = vmax.f32 %v643_v5, %v707_v6  ;;  %509 = vst [vmem:[%s1723_s4 + $0x118] sm:$0xff] %v445_v2  ;;  %v384_v14 = vmax.f32 %v644_v10, %v708_v11  ;;  %v65_v15 = vld [vmem:[%s1719_s0 + $0x138] sm:$0xff]  ;;  %v66_v21 = vld [vmem:[%s1719_s0 + $0x140] sm:$0xff]  ;;  %v67_v28 = vld [vmem:[%s1719_s0 + $0x148] sm:$0xff] }
  0x3a   :  { %v446_v12 = vmax.f32 %v190_v62, %v382_v3  ;;  %v581_v16 = vld [vmem:[%s1720_s1 + $0x338] sm:$0xff]  ;;  %v582_v22 = vld [vmem:[%s1720_s1 + $0x340] sm:$0xff]  ;;  %v583_v30 = vld [vmem:[%s1720_s1 + $0x348] sm:$0xff] }
  0x3b   :  { %v645_v17 = vld [vmem:[%s1721_s2 + $0x538] sm:$0xff]  ;;  %v447_v18 = vmax.f32 %v191_v4, %v383_v8  ;;  %v193_v19 = vmax.f32 %v65_v15, %v581_v16  ;;  %v448_v23 = vmax.f32 %v192_v13, %v384_v14  ;;  %v194_v25 = vmax.f32 %v66_v21, %v582_v22  ;;  %v646_v26 = vld [vmem:[%s1721_s2 + $0x540] sm:$0xff]  ;;  %v647_v31 = vld [vmem:[%s1721_s2 + $0x548] sm:$0xff] }
  0x3c   :  { %v709_v20 = vld [vmem:[%s1722_s3 + $0x738] sm:$0xff]  ;;  %510 = vst [vmem:[%s1723_s4 + $0x120] sm:$0xff] %v446_v12  ;;  %v710_v27 = vld [vmem:[%s1722_s3 + $0x740] sm:$0xff]  ;;  %v711_v32 = vld [vmem:[%s1722_s3 + $0x748] sm:$0xff]  ;;  %v195_v34 = vmax.f32 %v67_v28, %v583_v30 }
  0x3d   :  { %v385_v24 = vmax.f32 %v645_v17, %v709_v20  ;;  %511 = vst [vmem:[%s1723_s4 + $0x128] sm:$0xff] %v447_v18  ;;  %v386_v29 = vmax.f32 %v646_v26, %v710_v27  ;;  %512 = vst [vmem:[%s1723_s4 + $0x130] sm:$0xff] %v448_v23  ;;  %v387_v35 = vmax.f32 %v647_v31, %v711_v32  ;;  %v68_v36 = vld [vmem:[%s1719_s0 + $0x150] sm:$0xff]  ;;  %v69_v42 = vld [vmem:[%s1719_s0 + $0x158] sm:$0xff] }
  0x3e   :  { %v584_v37 = vld [vmem:[%s1720_s1 + $0x350] sm:$0xff]  ;;  %v585_v43 = vld [vmem:[%s1720_s1 + $0x358] sm:$0xff]  ;;  %v70_v49 = vld [vmem:[%s1719_s0 + $0x160] sm:$0xff] }
  0x3f   :  { %v449_v33 = vmax.f32 %v193_v19, %v385_v24  ;;  %v648_v38 = vld [vmem:[%s1721_s2 + $0x550] sm:$0xff]  ;;  %v450_v39 = vmax.f32 %v194_v25, %v386_v29  ;;  %v196_v40 = vmax.f32 %v68_v36, %v584_v37  ;;  %v451_v44 = vmax.f32 %v195_v34, %v387_v35  ;;  %v649_v47 = vld [vmem:[%s1721_s2 + $0x558] sm:$0xff]  ;;  %v586_v51 = vld [vmem:[%s1720_s1 + $0x360] sm:$0xff] }
  0x40   :  { %v712_v41 = vld [vmem:[%s1722_s3 + $0x750] sm:$0xff]  ;;  %v197_v46 = vmax.f32 %v69_v42, %v585_v43  ;;  %v713_v48 = vld [vmem:[%s1722_s3 + $0x758] sm:$0xff]  ;;  %v650_v52 = vld [vmem:[%s1721_s2 + $0x560] sm:$0xff]  ;;  %v198_v55 = vmax.f32 %v70_v49, %v586_v51 }
  0x41   :  { %513 = vst [vmem:[%s1723_s4 + $0x138] sm:$0xff] %v449_v33  ;;  %v388_v45 = vmax.f32 %v648_v38, %v712_v41  ;;  %514 = vst [vmem:[%s1723_s4 + $0x140] sm:$0xff] %v450_v39  ;;  %v389_v50 = vmax.f32 %v649_v47, %v713_v48  ;;  %v714_v53 = vld [vmem:[%s1722_s3 + $0x760] sm:$0xff]  ;;  %v71_v57 = vld [vmem:[%s1719_s0 + $0x168] sm:$0xff] }
  0x42   :  { %515 = vst [vmem:[%s1723_s4 + $0x148] sm:$0xff] %v451_v44  ;;  %v390_v56 = vmax.f32 %v650_v52, %v714_v53  ;;  %v587_v58 = vld [vmem:[%s1720_s1 + $0x368] sm:$0xff]  ;;  %v72_v63 = vld [vmem:[%s1719_s0 + $0x170] sm:$0xff]  ;;  %v73_v6 = vld [vmem:[%s1719_s0 + $0x178] sm:$0xff] }
  0x43   :  { %v452_v54 = vmax.f32 %v196_v40, %v388_v45  ;;  %v651_v59 = vld [vmem:[%s1721_s2 + $0x568] sm:$0xff]  ;;  %v453_v60 = vmax.f32 %v197_v46, %v389_v50  ;;  %v199_v61 = vmax.f32 %v71_v57, %v587_v58  ;;  %v588_v0 = vld [vmem:[%s1720_s1 + $0x370] sm:$0xff]  ;;  %v589_v8 = vld [vmem:[%s1720_s1 + $0x378] sm:$0xff] }
  0x44   :  { %v715_v62 = vld [vmem:[%s1722_s3 + $0x768] sm:$0xff]  ;;  %v454_v1 = vmax.f32 %v198_v55, %v390_v56  ;;  %v200_v3 = vmax.f32 %v72_v63, %v588_v0  ;;  %v652_v4 = vld [vmem:[%s1721_s2 + $0x570] sm:$0xff]  ;;  %v653_v9 = vld [vmem:[%s1721_s2 + $0x578] sm:$0xff]  ;;  %v201_v12 = vmax.f32 %v73_v6, %v589_v8 }
  0x45   :  { %516 = vst [vmem:[%s1723_s4 + $0x150] sm:$0xff] %v452_v54  ;;  %v391_v2 = vmax.f32 %v651_v59, %v715_v62  ;;  %v716_v5 = vld [vmem:[%s1722_s3 + $0x770] sm:$0xff]  ;;  %517 = vst [vmem:[%s1723_s4 + $0x158] sm:$0xff] %v453_v60  ;;  %v717_v10 = vld [vmem:[%s1722_s3 + $0x778] sm:$0xff] }
  0x46   :  { %v392_v7 = vmax.f32 %v652_v4, %v716_v5  ;;  %518 = vst [vmem:[%s1723_s4 + $0x160] sm:$0xff] %v454_v1  ;;  %v393_v13 = vmax.f32 %v653_v9, %v717_v10  ;;  %v74_v14 = vld [vmem:[%s1719_s0 + $0x180] sm:$0xff]  ;;  %v75_v20 = vld [vmem:[%s1719_s0 + $0x188] sm:$0xff]  ;;  %v76_v27 = vld [vmem:[%s1719_s0 + $0x190] sm:$0xff] }
  0x47   :  { %v455_v11 = vmax.f32 %v199_v61, %v391_v2  ;;  %v590_v15 = vld [vmem:[%s1720_s1 + $0x380] sm:$0xff]  ;;  %v591_v21 = vld [vmem:[%s1720_s1 + $0x388] sm:$0xff]  ;;  %v592_v29 = vld [vmem:[%s1720_s1 + $0x390] sm:$0xff] }
  0x48   :  { %v654_v16 = vld [vmem:[%s1721_s2 + $0x580] sm:$0xff]  ;;  %v456_v17 = vmax.f32 %v200_v3, %v392_v7  ;;  %v202_v18 = vmax.f32 %v74_v14, %v590_v15  ;;  %v457_v22 = vmax.f32 %v201_v12, %v393_v13  ;;  %v203_v24 = vmax.f32 %v75_v20, %v591_v21  ;;  %v655_v25 = vld [vmem:[%s1721_s2 + $0x588] sm:$0xff]  ;;  %v656_v30 = vld [vmem:[%s1721_s2 + $0x590] sm:$0xff] }
  0x49   :  { %v718_v19 = vld [vmem:[%s1722_s3 + $0x780] sm:$0xff]  ;;  %519 = vst [vmem:[%s1723_s4 + $0x168] sm:$0xff] %v455_v11  ;;  %v719_v26 = vld [vmem:[%s1722_s3 + $0x788] sm:$0xff]  ;;  %v720_v31 = vld [vmem:[%s1722_s3 + $0x790] sm:$0xff]  ;;  %v204_v33 = vmax.f32 %v76_v27, %v592_v29 }
  0x4a   :  { %v394_v23 = vmax.f32 %v654_v16, %v718_v19  ;;  %520 = vst [vmem:[%s1723_s4 + $0x170] sm:$0xff] %v456_v17  ;;  %v395_v28 = vmax.f32 %v655_v25, %v719_v26  ;;  %521 = vst [vmem:[%s1723_s4 + $0x178] sm:$0xff] %v457_v22  ;;  %v396_v34 = vmax.f32 %v656_v30, %v720_v31  ;;  %v77_v35 = vld [vmem:[%s1719_s0 + $0x198] sm:$0xff]  ;;  %v78_v41 = vld [vmem:[%s1719_s0 + $0x1a0] sm:$0xff] }
  0x4b   :  { %v593_v36 = vld [vmem:[%s1720_s1 + $0x398] sm:$0xff]  ;;  %v594_v42 = vld [vmem:[%s1720_s1 + $0x3a0] sm:$0xff]  ;;  %v79_v48 = vld [vmem:[%s1719_s0 + $0x1a8] sm:$0xff] }
  0x4c   :  { %v458_v32 = vmax.f32 %v202_v18, %v394_v23  ;;  %v657_v37 = vld [vmem:[%s1721_s2 + $0x598] sm:$0xff]  ;;  %v459_v38 = vmax.f32 %v203_v24, %v395_v28  ;;  %v205_v39 = vmax.f32 %v77_v35, %v593_v36  ;;  %v460_v43 = vmax.f32 %v204_v33, %v396_v34  ;;  %v658_v46 = vld [vmem:[%s1721_s2 + $0x5a0] sm:$0xff]  ;;  %v595_v50 = vld [vmem:[%s1720_s1 + $0x3a8] sm:$0xff] }
  0x4d   :  { %v721_v40 = vld [vmem:[%s1722_s3 + $0x798] sm:$0xff]  ;;  %v206_v45 = vmax.f32 %v78_v41, %v594_v42  ;;  %v722_v47 = vld [vmem:[%s1722_s3 + $0x7a0] sm:$0xff]  ;;  %v659_v51 = vld [vmem:[%s1721_s2 + $0x5a8] sm:$0xff]  ;;  %v207_v54 = vmax.f32 %v79_v48, %v595_v50 }
  0x4e   :  { %522 = vst [vmem:[%s1723_s4 + $0x180] sm:$0xff] %v458_v32  ;;  %v397_v44 = vmax.f32 %v657_v37, %v721_v40  ;;  %523 = vst [vmem:[%s1723_s4 + $0x188] sm:$0xff] %v459_v38  ;;  %v398_v49 = vmax.f32 %v658_v46, %v722_v47  ;;  %v723_v52 = vld [vmem:[%s1722_s3 + $0x7a8] sm:$0xff]  ;;  %v80_v56 = vld [vmem:[%s1719_s0 + $0x1b0] sm:$0xff] }
  0x4f   :  { %524 = vst [vmem:[%s1723_s4 + $0x190] sm:$0xff] %v460_v43  ;;  %v399_v55 = vmax.f32 %v659_v51, %v723_v52  ;;  %v596_v57 = vld [vmem:[%s1720_s1 + $0x3b0] sm:$0xff]  ;;  %v81_v62 = vld [vmem:[%s1719_s0 + $0x1b8] sm:$0xff]  ;;  %v82_v5 = vld [vmem:[%s1719_s0 + $0x1c0] sm:$0xff] }
  0x50   :  { %v461_v53 = vmax.f32 %v205_v39, %v397_v44  ;;  %v660_v58 = vld [vmem:[%s1721_s2 + $0x5b0] sm:$0xff]  ;;  %v462_v59 = vmax.f32 %v206_v45, %v398_v49  ;;  %v208_v60 = vmax.f32 %v80_v56, %v596_v57  ;;  %v597_v63 = vld [vmem:[%s1720_s1 + $0x3b8] sm:$0xff]  ;;  %v598_v7 = vld [vmem:[%s1720_s1 + $0x3c0] sm:$0xff] }
  0x51   :  { %v724_v61 = vld [vmem:[%s1722_s3 + $0x7b0] sm:$0xff]  ;;  %v463_v0 = vmax.f32 %v207_v54, %v399_v55  ;;  %v209_v2 = vmax.f32 %v81_v62, %v597_v63  ;;  %v661_v3 = vld [vmem:[%s1721_s2 + $0x5b8] sm:$0xff]  ;;  %v662_v8 = vld [vmem:[%s1721_s2 + $0x5c0] sm:$0xff]  ;;  %v210_v11 = vmax.f32 %v82_v5, %v598_v7 }
  0x52   :  { %525 = vst [vmem:[%s1723_s4 + $0x198] sm:$0xff] %v461_v53  ;;  %v400_v1 = vmax.f32 %v660_v58, %v724_v61  ;;  %v725_v4 = vld [vmem:[%s1722_s3 + $0x7b8] sm:$0xff]  ;;  %526 = vst [vmem:[%s1723_s4 + $0x1a0] sm:$0xff] %v462_v59  ;;  %v726_v9 = vld [vmem:[%s1722_s3 + $0x7c0] sm:$0xff] }
  0x53   :  { %v401_v6 = vmax.f32 %v661_v3, %v725_v4  ;;  %527 = vst [vmem:[%s1723_s4 + $0x1a8] sm:$0xff] %v463_v0  ;;  %v402_v12 = vmax.f32 %v662_v8, %v726_v9  ;;  %v83_v13 = vld [vmem:[%s1719_s0 + $0x1c8] sm:$0xff]  ;;  %v84_v19 = vld [vmem:[%s1719_s0 + $0x1d0] sm:$0xff]  ;;  %v85_v26 = vld [vmem:[%s1719_s0 + $0x1d8] sm:$0xff] }
  0x54   :  { %v464_v10 = vmax.f32 %v208_v60, %v400_v1  ;;  %v599_v14 = vld [vmem:[%s1720_s1 + $0x3c8] sm:$0xff]  ;;  %v600_v20 = vld [vmem:[%s1720_s1 + $0x3d0] sm:$0xff]  ;;  %v601_v28 = vld [vmem:[%s1720_s1 + $0x3d8] sm:$0xff] }
  0x55   :  { %v663_v15 = vld [vmem:[%s1721_s2 + $0x5c8] sm:$0xff]  ;;  %v465_v16 = vmax.f32 %v209_v2, %v401_v6  ;;  %v211_v17 = vmax.f32 %v83_v13, %v599_v14  ;;  %v466_v21 = vmax.f32 %v210_v11, %v402_v12  ;;  %v212_v23 = vmax.f32 %v84_v19, %v600_v20  ;;  %v664_v24 = vld [vmem:[%s1721_s2 + $0x5d0] sm:$0xff]  ;;  %v665_v29 = vld [vmem:[%s1721_s2 + $0x5d8] sm:$0xff] }
  0x56   :  { %v727_v18 = vld [vmem:[%s1722_s3 + $0x7c8] sm:$0xff]  ;;  %528 = vst [vmem:[%s1723_s4 + $0x1b0] sm:$0xff] %v464_v10  ;;  %v728_v25 = vld [vmem:[%s1722_s3 + $0x7d0] sm:$0xff]  ;;  %v729_v30 = vld [vmem:[%s1722_s3 + $0x7d8] sm:$0xff]  ;;  %v213_v32 = vmax.f32 %v85_v26, %v601_v28 }
  0x57   :  { %v403_v22 = vmax.f32 %v663_v15, %v727_v18  ;;  %529 = vst [vmem:[%s1723_s4 + $0x1b8] sm:$0xff] %v465_v16  ;;  %v404_v27 = vmax.f32 %v664_v24, %v728_v25  ;;  %530 = vst [vmem:[%s1723_s4 + $0x1c0] sm:$0xff] %v466_v21  ;;  %v405_v33 = vmax.f32 %v665_v29, %v729_v30  ;;  %v86_v34 = vld [vmem:[%s1719_s0 + $0x1e0] sm:$0xff]  ;;  %v87_v40 = vld [vmem:[%s1719_s0 + $0x1e8] sm:$0xff] }
  0x58   :  { %v602_v35 = vld [vmem:[%s1720_s1 + $0x3e0] sm:$0xff]  ;;  %v603_v41 = vld [vmem:[%s1720_s1 + $0x3e8] sm:$0xff]  ;;  %v88_v47 = vld [vmem:[%s1719_s0 + $0x1f0] sm:$0xff] }
  0x59   :  { %v467_v31 = vmax.f32 %v211_v17, %v403_v22  ;;  %v666_v36 = vld [vmem:[%s1721_s2 + $0x5e0] sm:$0xff]  ;;  %v468_v37 = vmax.f32 %v212_v23, %v404_v27  ;;  %v214_v38 = vmax.f32 %v86_v34, %v602_v35  ;;  %v469_v42 = vmax.f32 %v213_v32, %v405_v33  ;;  %v667_v45 = vld [vmem:[%s1721_s2 + $0x5e8] sm:$0xff]  ;;  %v604_v49 = vld [vmem:[%s1720_s1 + $0x3f0] sm:$0xff] }
  0x5a   :  { %v730_v39 = vld [vmem:[%s1722_s3 + $0x7e0] sm:$0xff]  ;;  %v215_v44 = vmax.f32 %v87_v40, %v603_v41  ;;  %v731_v46 = vld [vmem:[%s1722_s3 + $0x7e8] sm:$0xff]  ;;  %v668_v50 = vld [vmem:[%s1721_s2 + $0x5f0] sm:$0xff]  ;;  %v216_v53 = vmax.f32 %v88_v47, %v604_v49 }
  0x5b   :  { %531 = vst [vmem:[%s1723_s4 + $0x1c8] sm:$0xff] %v467_v31  ;;  %v406_v43 = vmax.f32 %v666_v36, %v730_v39  ;;  %532 = vst [vmem:[%s1723_s4 + $0x1d0] sm:$0xff] %v468_v37  ;;  %v407_v48 = vmax.f32 %v667_v45, %v731_v46  ;;  %v732_v51 = vld [vmem:[%s1722_s3 + $0x7f0] sm:$0xff]  ;;  %v89_v55 = vld [vmem:[%s1719_s0 + $0x1f8] sm:$0xff] }
  0x5c   :  { %533 = vst [vmem:[%s1723_s4 + $0x1d8] sm:$0xff] %v469_v42  ;;  %v408_v54 = vmax.f32 %v668_v50, %v732_v51  ;;  %v605_v56 = vld [vmem:[%s1720_s1 + $0x3f8] sm:$0xff] }
  0x5d   :  { %v470_v52 = vmax.f32 %v214_v38, %v406_v43  ;;  %v669_v57 = vld [vmem:[%s1721_s2 + $0x5f8] sm:$0xff]  ;;  %v471_v58 = vmax.f32 %v215_v44, %v407_v48  ;;  %v217_v59 = vmax.f32 %v89_v55, %v605_v56 }
  0x5e   :  { %v733_v60 = vld [vmem:[%s1722_s3 + $0x7f8] sm:$0xff]  ;;  %v472_v61 = vmax.f32 %v216_v53, %v408_v54 }
  0x5f   :  { %534 = vst [vmem:[%s1723_s4 + $0x1e0] sm:$0xff] %v470_v52  ;;  %v409_v62 = vmax.f32 %v669_v57, %v733_v60  ;;  %535 = vst [vmem:[%s1723_s4 + $0x1e8] sm:$0xff] %v471_v58 }
  0x60   :  { %536 = vst [vmem:[%s1723_s4 + $0x1f0] sm:$0xff] %v472_v61 }
  0x61   :  { %v473_v63 = vmax.f32 %v217_v59, %v409_v62 }
  0x63   :  { %537 = vst [vmem:[%s1723_s4 + $0x1f8] sm:$0xff] %v473_v63 }

// kernel: cnn_forward.5
= control target key start
LH: loop header
LB: loop body
LE: loop exit
PB: predicated region body
PF: predicated region fallthrough
CT: control target
= control target key end

     0   :  { %vm934_vm0 = vcmask 261120   ;;  %s5238_s1 = inlined_call_operand.vmem [shape: bf16[32,128], index: 1, kind: input, shape index: {}]   ;;  %s5239_s0 = inlined_call_operand.vmem [shape: bf16[2048,32], index: 0, kind: input, shape index: {}]   ;;  %s5240_s2 = inlined_call_operand.vmem [shape: f32[1,128], index: 2, kind: input, shape index: {}]   ;;  %s5241_s3 = inlined_call_operand.vmem [shape: f32[2048,128], index: 3, kind: output, shape index: {}]  }
   0x1   :  { %v3545_v0 = vld [vmem:[%s5238_s1 + $0x8] sm:$0xff]   ;;  %v3546_v1 = vld [vmem:[%s5238_s1] sm:$0xff]   ;;  %v3551_v6 = vld [vmem:[%s5239_s0 + $0x10] sm:$0xff]  }
   0x2   :  { %3281 = vmatprep.subr.bf16.mxu0 %v3545_v0  ;;  %3541 = vmatprep.subr.bf16.mxu1 %v3545_v0  ;;  %v3547_v2 = vld [vmem:[%s5239_s0] sm:$0xff]   ;;  %v3549_v4 = vld [vmem:[%s5239_s0 + $0x8] sm:$0xff]   ;;  %v3552_v7 = vld [vmem:[%s5239_s0 + $0x210] sm:$0xff]  }
   0x3   :  { %3282 = vmatpush3.bf16.msra.mxu0 %v3545_v0  ;;  %3543 = vmatpush3.bf16.msra.mxu1 %v3545_v0  ;;  %v3548_v3 = vld [vmem:[%s5239_s0 + $0x200] sm:$0xff]   ;;  %v3550_v5 = vld [vmem:[%s5239_s0 + $0x208] sm:$0xff]   ;;  %v3553_v8 = vld [vmem:[%s5239_s0 + $0x18] sm:$0xff]  }
   0x4   :  { %3283 = vmatprep.subr.bf16.mxu0 %v3546_v1  ;;  %3542 = vmatprep.subr.bf16.mxu1 %v3546_v1  ;;  %v3554_v9 = vld [vmem:[%s5239_s0 + $0x218] sm:$0xff]   ;;  %v3555_v10 = vld [vmem:[%s5239_s0 + $0x20] sm:$0xff]   ;;  %v3557_v12 = vld [vmem:[%s5239_s0 + $0x28] sm:$0xff]  }
   0x5   :  { %3285 = vmatprep.mubr.msk.bf16.mxu0 %vm934_vm0, %v3547_v2  ;;  %3413 = vmatprep.mubr.msk.bf16.mxu1 %vm934_vm0, %v3548_v3  ;;  %v3556_v11 = vld [vmem:[%s5239_s0 + $0x220] sm:$0xff]   ;;  %v3558_v13 = vld [vmem:[%s5239_s0 + $0x228] sm:$0xff]   ;;  %v3559_v14 = vld [vmem:[%s5239_s0 + $0x30] sm:$0xff]  }
   0x6   :  { %v3560_v15 = vld [vmem:[%s5239_s0 + $0x230] sm:$0xff]   ;;  %v3561_v16 = vld [vmem:[%s5239_s0 + $0x38] sm:$0xff]   ;;  %v3563_v18 = vld [vmem:[%s5239_s0 + $0x40] sm:$0xff]  }
   0x7   :  { %3284 = vmatpush3.bf16.msra.mxu0 %v3546_v1  ;;  %3544 = vmatpush3.bf16.msra.mxu1 %v3546_v1  ;;  %v3562_v17 = vld [vmem:[%s5239_s0 + $0x238] sm:$0xff]   ;;  %v3564_v19 = vld [vmem:[%s5239_s0 + $0x240] sm:$0xff]   ;;  %v3565_v20 = vld [vmem:[%s5239_s0 + $0x48] sm:$0xff]  }
   0x8   :  { %v3566_v21 = vld [vmem:[%s5239_s0 + $0x248] sm:$0xff]   ;;  %v3567_v22 = vld [vmem:[%s5239_s0 + $0x50] sm:$0xff]   ;;  %v3569_v24 = vld [vmem:[%s5239_s0 + $0x58] sm:$0xff]  }
   0x9   :  { %v3568_v23 = vld [vmem:[%s5239_s0 + $0x250] sm:$0xff]   ;;  %v3570_v25 = vld [vmem:[%s5239_s0 + $0x258] sm:$0xff]   ;;  %v3571_v26 = vld [vmem:[%s5239_s0 + $0x60] sm:$0xff]  }
   0xa   :  { %3286 = vmatmul.mubr.msk.bf16.vlgmr.msra.gmra.mxu0 %vm934_vm0, %v3549_v4  ;;  %3414 = vmatmul.mubr.msk.bf16.vlgmr.msra.gmra.mxu1 %vm934_vm0, %v3550_v5  ;;  %v3572_v27 = vld [vmem:[%s5239_s0 + $0x260] sm:$0xff]   ;;  %v3573_v28 = vld [vmem:[%s5239_s0 + $0x68] sm:$0xff]   ;;  %v3575_v30 = vld [vmem:[%s5239_s0 + $0x70] sm:$0xff]  }
   0xb   :  { %3289 = vmatprep.mubr.msk.bf16.mxu0 %vm934_vm0, %v3551_v6  ;;  %3417 = vmatprep.mubr.msk.bf16.mxu1 %vm934_vm0, %v3552_v7  ;;  %v3574_v29 = vld [vmem:[%s5239_s0 + $0x268] sm:$0xff]   ;;  %v3576_v31 = vld [vmem:[%s5239_s0 + $0x270] sm:$0xff]   ;;  %v3577_v32 = vld [vmem:[%s5239_s0 + $0x78] sm:$0xff]  }
   0xc   :  { %v3578_v33 = vld [vmem:[%s5239_s0 + $0x278] sm:$0xff]   ;;  %v3579_v34 = vld [vmem:[%s5239_s0 + $0x80] sm:$0xff]   ;;  %v3581_v36 = vld [vmem:[%s5239_s0 + $0x88] sm:$0xff]  }
   0xd   :  { %v3580_v35 = vld [vmem:[%s5239_s0 + $0x280] sm:$0xff]   ;;  %v3582_v37 = vld [vmem:[%s5239_s0 + $0x288] sm:$0xff]   ;;  %v3583_v38 = vld [vmem:[%s5239_s0 + $0x90] sm:$0xff]  }
   0xe   :  { %v3584_v39 = vld [vmem:[%s5239_s0 + $0x290] sm:$0xff]   ;;  %v3585_v40 = vld [vmem:[%s5239_s0 + $0x98] sm:$0xff]   ;;  %v3587_v42 = vld [vmem:[%s5239_s0 + $0xa0] sm:$0xff]  }
   0xf   :  { %v3586_v41 = vld [vmem:[%s5239_s0 + $0x298] sm:$0xff]   ;;  %v3588_v43 = vld [vmem:[%s5239_s0 + $0x2a0] sm:$0xff]   ;;  %v3589_v44 = vld [vmem:[%s5239_s0 + $0xa8] sm:$0xff]  }
  0x10   :  { %v3590_v45 = vld [vmem:[%s5239_s0 + $0x2a8] sm:$0xff]   ;;  %v3591_v46 = vld [vmem:[%s5239_s0 + $0xb0] sm:$0xff]   ;;  %v3593_v48 = vld [vmem:[%s5239_s0 + $0xb8] sm:$0xff]  }
  0x11   :  { %v3592_v47 = vld [vmem:[%s5239_s0 + $0x2b0] sm:$0xff]   ;;  %v3594_v49 = vld [vmem:[%s5239_s0 + $0x2b8] sm:$0xff]   ;;  %v3595_v50 = vld [vmem:[%s5239_s0 + $0xc0] sm:$0xff]  }
  0x12   :  { %3290 = vmatmul.mubr.msk.bf16.gmra.mxu0 %vm934_vm0, %v3553_v8  ;;  %3418 = vmatmul.mubr.msk.bf16.gmra.mxu1 %vm934_vm0, %v3554_v9  ;;  %v3596_v51 = vld [vmem:[%s5239_s0 + $0x2c0] sm:$0xff]   ;;  %v3597_v52 = vld [vmem:[%s5239_s0 + $0xc8] sm:$0xff]   ;;  %v3599_v54 = vld [vmem:[%s5239_s0 + $0xd0] sm:$0xff]  }
  0x13   :  { %3293 = vmatprep.mubr.msk.bf16.mxu0 %vm934_vm0, %v3555_v10  ;;  %3421 = vmatprep.mubr.msk.bf16.mxu1 %vm934_vm0, %v3556_v11  ;;  %v3598_v53 = vld [vmem:[%s5239_s0 + $0x2c8] sm:$0xff]   ;;  %v3600_v55 = vld [vmem:[%s5239_s0 + $0x2d0] sm:$0xff]   ;;  %v3601_v56 = vld [vmem:[%s5239_s0 + $0xd8] sm:$0xff]  }
  0x14   :  { %v3602_v57 = vld [vmem:[%s5239_s0 + $0x2d8] sm:$0xff]   ;;  %v3603_v58 = vld [vmem:[%s5239_s0 + $0xe0] sm:$0xff]   ;;  %v3605_v60 = vld [vmem:[%s5239_s0 + $0xe8] sm:$0xff]  }
  0x15   :  { %v3604_v59 = vld [vmem:[%s5239_s0 + $0x2e0] sm:$0xff]   ;;  %v3606_v61 = vld [vmem:[%s5239_s0 + $0x2e8] sm:$0xff]   ;;  %v3607_v62 = vld [vmem:[%s5239_s0 + $0xf0] sm:$0xff]  }
  0x16   :  { %v3608_v63 = vld [vmem:[%s5239_s0 + $0x2f0] sm:$0xff]   ;;  %v3609_v0 = vld [vmem:[%s5239_s0 + $0xf8] sm:$0xff]   ;;  %v3611_v2 = vld [vmem:[%s5239_s0 + $0x100] sm:$0xff]  }
  0x17   :  { %v3610_v1 = vld [vmem:[%s5239_s0 + $0x2f8] sm:$0xff]   ;;  %v3612_v3 = vld [vmem:[%s5239_s0 + $0x300] sm:$0xff]   ;;  %v3613_v4 = vld [vmem:[%s5239_s0 + $0x108] sm:$0xff]  }
  0x18   :  { %v3614_v5 = vld [vmem:[%s5239_s0 + $0x308] sm:$0xff]   ;;  %v3615_v6 = vld [vmem:[%s5239_s0 + $0x110] sm:$0xff]   ;;  %v3617_v8 = vld [vmem:[%s5239_s0 + $0x118] sm:$0xff]  }
  0x19   :  { %v3616_v7 = vld [vmem:[%s5239_s0 + $0x310] sm:$0xff]   ;;  %v3618_v9 = vld [vmem:[%s5239_s0 + $0x318] sm:$0xff]   ;;  %v3619_v10 = vld [vmem:[%s5239_s0 + $0x120] sm:$0xff]  }
  0x1a   :  { %3294 = vmatmul.mubr.msk.bf16.gmra.mxu0 %vm934_vm0, %v3557_v12  ;;  %3422 = vmatmul.mubr.msk.bf16.gmra.mxu1 %vm934_vm0, %v3558_v13  ;;  %v3620_v11 = vld [vmem:[%s5239_s0 + $0x320] sm:$0xff]   ;;  %v3621_v12 = vld [vmem:[%s5239_s0 + $0x128] sm:$0xff]  }
  0x1b   :  { %3297 = vmatprep.mubr.msk.bf16.mxu0 %vm934_vm0, %v3559_v14  ;;  %3425 = vmatprep.mubr.msk.bf16.mxu1 %vm934_vm0, %v3560_v15  ;;  %v3622_v13 = vld [vmem:[%s5239_s0 + $0x328] sm:$0xff]   ;;  %v3623_v14 = vld [vmem:[%s5239_s0 + $0x130] sm:$0xff]  }
  0x1c   :  { %v3624_v15 = vld [vmem:[%s5239_s0 + $0x330] sm:$0xff]  }
  0x22   :  { %3298 = vmatmul.mubr.msk.bf16.gmra.mxu0 %vm934_vm0, %v3561_v16  ;;  %3426 = vmatmul.mubr.msk.bf16.gmra.mxu1 %vm934_vm0, %v3562_v17  ;;  %v3625_v16 = vld [vmem:[%s5239_s0 + $0x138] sm:$0xff]  }
  0x23   :  { %3301 = vmatprep.mubr.msk.bf16.mxu0 %vm934_vm0, %v3563_v18  ;;  %3429 = vmatprep.mubr.msk.bf16.mxu1 %vm934_vm0, %v3564_v19  ;;  %v3626_v17 = vld [vmem:[%s5239_s0 + $0x338] sm:$0xff]   ;;  %v3627_v18 = vld [vmem:[%s5239_s0 + $0x140] sm:$0xff]  }
  0x24   :  { %v3628_v19 = vld [vmem:[%s5239_s0 + $0x340] sm:$0xff]  }
  0x2a   :  { %3302 = vmatmul.mubr.msk.bf16.gmra.mxu0 %vm934_vm0, %v3565_v20  ;;  %3430 = vmatmul.mubr.msk.bf16.gmra.mxu1 %vm934_vm0, %v3566_v21  ;;  %v3629_v20 = vld [vmem:[%s5239_s0 + $0x148] sm:$0xff]  }
  0x2b   :  { %3305 = vmatprep.mubr.msk.bf16.mxu0 %vm934_vm0, %v3567_v22  ;;  %3433 = vmatprep.mubr.msk.bf16.mxu1 %vm934_vm0, %v3568_v23  ;;  %v3630_v21 = vld [vmem:[%s5239_s0 + $0x348] sm:$0xff]   ;;  %v3631_v22 = vld [vmem:[%s5239_s0 + $0x150] sm:$0xff]  }
  0x2c   :  { %v3632_v23 = vld [vmem:[%s5239_s0 + $0x350] sm:$0xff]  }
  0x32   :  { %3306 = vmatmul.mubr.msk.bf16.gmra.mxu0 %vm934_vm0, %v3569_v24  ;;  %3434 = vmatmul.mubr.msk.bf16.gmra.mxu1 %vm934_vm0, %v3570_v25  ;;  %v3633_v24 = vld [vmem:[%s5239_s0 + $0x158] sm:$0xff]  }
  0x33   :  { %3309 = vmatprep.mubr.msk.bf16.mxu0 %vm934_vm0, %v3571_v26  ;;  %3437 = vmatprep.mubr.msk.bf16.mxu1 %vm934_vm0, %v3572_v27  ;;  %v3634_v25 = vld [vmem:[%s5239_s0 + $0x358] sm:$0xff]   ;;  %v3635_v26 = vld [vmem:[%s5239_s0 + $0x160] sm:$0xff]  }
  0x34   :  { %v3636_v27 = vld [vmem:[%s5239_s0 + $0x360] sm:$0xff]  }
  0x3a   :  { %3310 = vmatmul.mubr.msk.bf16.gmra.mxu0 %vm934_vm0, %v3573_v28  ;;  %3438 = vmatmul.mubr.msk.bf16.gmra.mxu1 %vm934_vm0, %v3574_v29  ;;  %v3637_v28 = vld [vmem:[%s5239_s0 + $0x168] sm:$0xff]  }
  0x3b   :  { %3313 = vmatprep.mubr.msk.bf16.mxu0 %vm934_vm0, %v3575_v30  ;;  %3441 = vmatprep.mubr.msk.bf16.mxu1 %vm934_vm0, %v3576_v31  ;;  %v3638_v29 = vld [vmem:[%s5239_s0 + $0x368] sm:$0xff]   ;;  %v3639_v30 = vld [vmem:[%s5239_s0 + $0x170] sm:$0xff]  }
  0x3c   :  { %v3640_v31 = vld [vmem:[%s5239_s0 + $0x370] sm:$0xff]  }
  0x42   :  { %3314 = vmatmul.mubr.msk.bf16.gmra.mxu0 %vm934_vm0, %v3577_v32  ;;  %3442 = vmatmul.mubr.msk.bf16.gmra.mxu1 %vm934_vm0, %v3578_v33  ;;  %v3641_v32 = vld [vmem:[%s5239_s0 + $0x178] sm:$0xff]  }
  0x43   :  { %3317 = vmatprep.mubr.msk.bf16.mxu0 %vm934_vm0, %v3579_v34  ;;  %3445 = vmatprep.mubr.msk.bf16.mxu1 %vm934_vm0, %v3580_v35  ;;  %v3642_v33 = vld [vmem:[%s5239_s0 + $0x378] sm:$0xff]   ;;  %v3643_v34 = vld [vmem:[%s5239_s0 + $0x180] sm:$0xff]  }
  0x44   :  { %v3644_v35 = vld [vmem:[%s5239_s0 + $0x380] sm:$0xff]  }
  0x4a   :  { %3318 = vmatmul.mubr.msk.bf16.gmra.mxu0 %vm934_vm0, %v3581_v36  ;;  %3446 = vmatmul.mubr.msk.bf16.gmra.mxu1 %vm934_vm0, %v3582_v37  ;;  %v3645_v36 = vld [vmem:[%s5239_s0 + $0x188] sm:$0xff]  }
  0x4b   :  { %3321 = vmatprep.mubr.msk.bf16.mxu0 %vm934_vm0, %v3583_v38  ;;  %3449 = vmatprep.mubr.msk.bf16.mxu1 %vm934_vm0, %v3584_v39  ;;  %v3646_v37 = vld [vmem:[%s5239_s0 + $0x388] sm:$0xff]   ;;  %v3647_v38 = vld [vmem:[%s5239_s0 + $0x190] sm:$0xff]  }
  0x4c   :  { %v3648_v39 = vld [vmem:[%s5239_s0 + $0x390] sm:$0xff]  }
  0x52   :  { %3322 = vmatmul.mubr.msk.bf16.gmra.mxu0 %vm934_vm0, %v3585_v40  ;;  %3450 = vmatmul.mubr.msk.bf16.gmra.mxu1 %vm934_vm0, %v3586_v41  ;;  %v4110_v40 = vld [vmem:[%s5240_s2] ss:$0 sm:$0xff] }
  0x53   :  { %3325 = vmatprep.mubr.msk.bf16.mxu0 %vm934_vm0, %v3587_v42  ;;  %3453 = vmatprep.mubr.msk.bf16.mxu1 %vm934_vm0, %v3588_v43 }
  0x5a   :  { %3326 = vmatmul.mubr.msk.bf16.gmra.mxu0 %vm934_vm0, %v3589_v44  ;;  %3454 = vmatmul.mubr.msk.bf16.gmra.mxu1 %vm934_vm0, %v3590_v45 }
  0x5b   :  { %3329 = vmatprep.mubr.msk.bf16.mxu0 %vm934_vm0, %v3591_v46  ;;  %3457 = vmatprep.mubr.msk.bf16.mxu1 %vm934_vm0, %v3592_v47 }
  0x62   :  { %3330 = vmatmul.mubr.msk.bf16.gmra.mxu0 %vm934_vm0, %v3593_v48  ;;  %3458 = vmatmul.mubr.msk.bf16.gmra.mxu1 %vm934_vm0, %v3594_v49 }
  0x63   :  { %3333 = vmatprep.mubr.msk.bf16.mxu0 %vm934_vm0, %v3595_v50  ;;  %3461 = vmatprep.mubr.msk.bf16.mxu1 %vm934_vm0, %v3596_v51 }
  0x6a   :  { %3334 = vmatmul.mubr.msk.bf16.gmra.mxu0 %vm934_vm0, %v3597_v52  ;;  %3462 = vmatmul.mubr.msk.bf16.gmra.mxu1 %vm934_vm0, %v3598_v53  ;;  %v3649_v53 = vld [vmem:[%s5239_s0 + $0x198] sm:$0xff]  }
  0x6b   :  { %3337 = vmatprep.mubr.msk.bf16.mxu0 %vm934_vm0, %v3599_v54  ;;  %3465 = vmatprep.mubr.msk.bf16.mxu1 %vm934_vm0, %v3600_v55  ;;  %v3650_v54 = vld [vmem:[%s5239_s0 + $0x398] sm:$0xff]  }
  0x72   :  { %3338 = vmatmul.mubr.msk.bf16.gmra.mxu0 %vm934_vm0, %v3601_v56  ;;  %3466 = vmatmul.mubr.msk.bf16.gmra.mxu1 %vm934_vm0, %v3602_v57 }
  0x73   :  { %3341 = vmatprep.mubr.msk.bf16.mxu0 %vm934_vm0, %v3603_v58  ;;  %3469 = vmatprep.mubr.msk.bf16.mxu1 %vm934_vm0, %v3604_v59  ;;  %v3651_v59 = vld [vmem:[%s5239_s0 + $0x1a0] sm:$0xff]  }
  0x7a   :  { %3342 = vmatmul.mubr.msk.bf16.gmra.mxu0 %vm934_vm0, %v3605_v60  ;;  %3470 = vmatmul.mubr.msk.bf16.gmra.mxu1 %vm934_vm0, %v3606_v61  ;;  %v3652_v60 = vld [vmem:[%s5239_s0 + $0x3a0] sm:$0xff]  }
  0x7b   :  { %3345 = vmatprep.mubr.msk.bf16.mxu0 %vm934_vm0, %v3607_v62  ;;  %3473 = vmatprep.mubr.msk.bf16.mxu1 %vm934_vm0, %v3608_v63 }
  0x82   :  { %3346 = vmatmul.mubr.msk.bf16.gmra.mxu0 %vm934_vm0, %v3609_v0  ;;  %3474 = vmatmul.mubr.msk.bf16.gmra.mxu1 %vm934_vm0, %v3610_v1 }
  0x83   :  { %3349 = vmatprep.mubr.msk.bf16.mxu0 %vm934_vm0, %v3611_v2  ;;  %3477 = vmatprep.mubr.msk.bf16.mxu1 %vm934_vm0, %v3612_v3 }
  0x8a   :  { %3350 = vmatmul.mubr.msk.bf16.gmra.mxu0 %vm934_vm0, %v3613_v4  ;;  %3478 = vmatmul.mubr.msk.bf16.gmra.mxu1 %vm934_vm0, %v3614_v5 }
  0x8b   :  { %3353 = vmatprep.mubr.msk.bf16.mxu0 %vm934_vm0, %v3615_v6  ;;  %3481 = vmatprep.mubr.msk.bf16.mxu1 %vm934_vm0, %v3616_v7 }
  0x92   :  { %3354 = vmatmul.mubr.msk.bf16.gmra.mxu0 %vm934_vm0, %v3617_v8  ;;  %3482 = vmatmul.mubr.msk.bf16.gmra.mxu1 %vm934_vm0, %v3618_v9 }
  0x93   :  { %3357 = vmatprep.mubr.msk.bf16.mxu0 %vm934_vm0, %v3619_v10  ;;  %3485 = vmatprep.mubr.msk.bf16.mxu1 %vm934_vm0, %v3620_v11 }
  0x9a   :  { %3358 = vmatmul.mubr.msk.bf16.gmra.mxu0 %vm934_vm0, %v3621_v12  ;;  %3486 = vmatmul.mubr.msk.bf16.gmra.mxu1 %vm934_vm0, %v3622_v13 }
  0x9b   :  { %3361 = vmatprep.mubr.msk.bf16.mxu0 %vm934_vm0, %v3623_v14  ;;  %3489 = vmatprep.mubr.msk.bf16.mxu1 %vm934_vm0, %v3624_v15 }
  0xa2   :  { %3362 = vmatmul.mubr.msk.bf16.gmra.mxu0 %vm934_vm0, %v3625_v16  ;;  %3490 = vmatmul.mubr.msk.bf16.gmra.mxu1 %vm934_vm0, %v3626_v17  ;;  %v3653_v17 = vld [vmem:[%s5239_s0 + $0x1a8] sm:$0xff]  }
  0xa3   :  { %3365 = vmatprep.mubr.msk.bf16.mxu0 %vm934_vm0, %v3627_v18  ;;  %3493 = vmatprep.mubr.msk.bf16.mxu1 %vm934_vm0, %v3628_v19  ;;  %v3654_v18 = vld [vmem:[%s5239_s0 + $0x3a8] sm:$0xff]  }
  0xaa   :  { %3366 = vmatmul.mubr.msk.bf16.gmra.mxu0 %vm934_vm0, %v3629_v20  ;;  %3494 = vmatmul.mubr.msk.bf16.gmra.mxu1 %vm934_vm0, %v3630_v21 }
  0xab   :  { %3369 = vmatprep.mubr.msk.bf16.mxu0 %vm934_vm0, %v3631_v22  ;;  %3497 = vmatprep.mubr.msk.bf16.mxu1 %vm934_vm0, %v3632_v23  ;;  %v3655_v23 = vld [vmem:[%s5239_s0 + $0x1b0] sm:$0xff]  }
  0xb2   :  { %3370 = vmatmul.mubr.msk.bf16.gmra.mxu0 %vm934_vm0, %v3633_v24  ;;  %3498 = vmatmul.mubr.msk.bf16.gmra.mxu1 %vm934_vm0, %v3634_v25  ;;  %v3656_v24 = vld [vmem:[%s5239_s0 + $0x3b0] sm:$0xff]  }
  0xb3   :  { %3373 = vmatprep.mubr.msk.bf16.mxu0 %vm934_vm0, %v3635_v26  ;;  %3501 = vmatprep.mubr.msk.bf16.mxu1 %vm934_vm0, %v3636_v27 }
  0xba   :  { %3374 = vmatmul.mubr.msk.bf16.gmra.mxu0 %vm934_vm0, %v3637_v28  ;;  %3502 = vmatmul.mubr.msk.bf16.gmra.mxu1 %vm934_vm0, %v3638_v29 }
  0xbb   :  { %3377 = vmatprep.mubr.msk.bf16.mxu0 %vm934_vm0, %v3639_v30  ;;  %3505 = vmatprep.mubr.msk.bf16.mxu1 %vm934_vm0, %v3640_v31 }
  0xc2   :  { %3378 = vmatmul.mubr.msk.bf16.gmra.mxu0 %vm934_vm0, %v3641_v32  ;;  %3506 = vmatmul.mubr.msk.bf16.gmra.mxu1 %vm934_vm0, %v3642_v33 }
  0xc3   :  { %3381 = vmatprep.mubr.msk.bf16.mxu0 %vm934_vm0, %v3643_v34  ;;  %3509 = vmatprep.mubr.msk.bf16.mxu1 %vm934_vm0, %v3644_v35 }
  0xca   :  { %v3287_v41 = vpop.f32.mrf.mxu0  ;;  %3382 = vmatmul.mubr.msk.bf16.gmra.mxu0 %vm934_vm0, %v3645_v36  ;;  %v3415_v42 = vpop.f32.mrf.mxu1  ;;  %3510 = vmatmul.mubr.msk.bf16.gmra.mxu1 %vm934_vm0, %v3646_v37 }
  0xcb   :  { %v1362_v43 = vadd.f32 %v3287_v41, %v4110_v40  ;;  %v1874_v44 = vadd.f32 %v3415_v42, %v4110_v40  ;;  %3385 = vmatprep.mubr.msk.bf16.mxu0 %vm934_vm0, %v3647_v38  ;;  %3513 = vmatprep.mubr.msk.bf16.mxu1 %vm934_vm0, %v3648_v39 }
  0xcc   :  { %v1353_v45 = vpop.f32.mrf.mxu0  ;;  %v1865_v46 = vpop.f32.mrf.mxu1 }
  0xcd   :  { %v2378_v47 = vmax.f32 %v1362_v43, 0.0  ;;  %v2506_v48 = vmax.f32 %v1874_v44, 0.0  ;;  %v1354_v49 = vadd.f32 %v4110_v40, %v1353_v45  ;;  %v1866_v50 = vadd.f32 %v4110_v40, %v1865_v46  ;;  %v3657_v46 = vld [vmem:[%s5239_s0 + $0x1b8] sm:$0xff]  }
  0xce   :  { %v3288_v51 = vpop.f32.mrf.mxu0  ;;  %v3416_v52 = vpop.f32.mrf.mxu1 }
  0xcf   :  { %2634 = vst [vmem:[%s5241_s3 + $0x10] sm:$0xff] %v2378_v47  ;;  %2762 = vst [vmem:[%s5241_s3 + $0x410] sm:$0xff] %v2506_v48  ;;  %v2376_v55 = vmax.f32 %v1354_v49, 0.0  ;;  %v2504_v56 = vmax.f32 %v1866_v50, 0.0  ;;  %v1365_v57 = vadd.f32 %v3288_v51, %v4110_v40  ;;  %v1877_v58 = vadd.f32 %v3416_v52, %v4110_v40  ;;  %v3658_v47 = vld [vmem:[%s5239_s0 + $0x3b8] sm:$0xff]   ;;  %v3659_v52 = vld [vmem:[%s5239_s0 + $0x1c0] sm:$0xff]  }
  0xd0   :  { %v1356_v61 = vpop.f32.mrf.mxu0  ;;  %v1868_v62 = vpop.f32.mrf.mxu1 }
  0xd1   :  { %2632 = vst [vmem:[%s5241_s3] sm:$0xff] %v2376_v55  ;;  %2760 = vst [vmem:[%s5241_s3 + $0x400] sm:$0xff] %v2504_v56  ;;  %v2379_v63 = vmax.f32 %v1365_v57, 0.0  ;;  %v2507_v0 = vmax.f32 %v1877_v58, 0.0  ;;  %v1357_v1 = vadd.f32 %v4110_v40, %v1356_v61  ;;  %v1869_v2 = vadd.f32 %v4110_v40, %v1868_v62 }
  0xd2   :  { %v3291_v3 = vpop.f32.mrf.mxu0  ;;  %3386 = vmatmul.mubr.msk.bf16.gmra.mxu0 %vm934_vm0, %v3649_v53  ;;  %v3419_v4 = vpop.f32.mrf.mxu1  ;;  %3514 = vmatmul.mubr.msk.bf16.gmra.mxu1 %vm934_vm0, %v3650_v54  ;;  %v3660_v53 = vld [vmem:[%s5239_s0 + $0x3c0] sm:$0xff]  }
  0xd3   :  { %2635 = vst [vmem:[%s5241_s3 + $0x18] sm:$0xff] %v2379_v63  ;;  %2763 = vst [vmem:[%s5241_s3 + $0x418] sm:$0xff] %v2507_v0  ;;  %v2377_v5 = vmax.f32 %v1357_v1, 0.0  ;;  %v2505_v6 = vmax.f32 %v1869_v2, 0.0  ;;  %v1378_v7 = vadd.f32 %v3291_v3, %v4110_v40  ;;  %v1890_v8 = vadd.f32 %v3419_v4, %v4110_v40  ;;  %3389 = vmatprep.mubr.msk.bf16.mxu0 %vm934_vm0, %v3651_v59 }
  0xd4   :  { %3517 = vmatprep.mubr.msk.bf16.mxu1 %vm934_vm0, %v3652_v60  ;;  %v1369_v9 = vpop.f32.mrf.mxu0  ;;  %v1881_v10 = vpop.f32.mrf.mxu1 }
  0xd5   :  { %2633 = vst [vmem:[%s5241_s3 + $0x8] sm:$0xff] %v2377_v5  ;;  %2761 = vst [vmem:[%s5241_s3 + $0x408] sm:$0xff] %v2505_v6  ;;  %v2382_v11 = vmax.f32 %v1378_v7, 0.0  ;;  %v2510_v12 = vmax.f32 %v1890_v8, 0.0  ;;  %v1370_v13 = vadd.f32 %v4110_v40, %v1369_v9  ;;  %v1882_v14 = vadd.f32 %v4110_v40, %v1881_v10  ;;  %v3661_v10 = vld [vmem:[%s5239_s0 + $0x1c8] sm:$0xff]  }
  0xd6   :  { %v3292_v15 = vpop.f32.mrf.mxu0  ;;  %v3420_v16 = vpop.f32.mrf.mxu1 }
  0xd7   :  { %2638 = vst [vmem:[%s5241_s3 + $0x30] sm:$0xff] %v2382_v11  ;;  %2766 = vst [vmem:[%s5241_s3 + $0x430] sm:$0xff] %v2510_v12  ;;  %v2380_v19 = vmax.f32 %v1370_v13, 0.0  ;;  %v2508_v20 = vmax.f32 %v1882_v14, 0.0  ;;  %v1381_v21 = vadd.f32 %v3292_v15, %v4110_v40  ;;  %v1893_v22 = vadd.f32 %v3420_v16, %v4110_v40  ;;  %v3662_v11 = vld [vmem:[%s5239_s0 + $0x3c8] sm:$0xff]   ;;  %v3663_v16 = vld [vmem:[%s5239_s0 + $0x1d0] sm:$0xff]  }
  0xd8   :  { %v1372_v25 = vpop.f32.mrf.mxu0  ;;  %v1884_v26 = vpop.f32.mrf.mxu1 }
  0xd9   :  { %2636 = vst [vmem:[%s5241_s3 + $0x20] sm:$0xff] %v2380_v19  ;;  %2764 = vst [vmem:[%s5241_s3 + $0x420] sm:$0xff] %v2508_v20  ;;  %v2383_v27 = vmax.f32 %v1381_v21, 0.0  ;;  %v2511_v28 = vmax.f32 %v1893_v22, 0.0  ;;  %v1373_v29 = vadd.f32 %v4110_v40, %v1372_v25  ;;  %v1885_v30 = vadd.f32 %v4110_v40, %v1884_v26 }
  0xda   :  { %v3295_v31 = vpop.f32.mrf.mxu0  ;;  %3390 = vmatmul.mubr.msk.bf16.gmra.mxu0 %vm934_vm0, %v3653_v17  ;;  %v3423_v32 = vpop.f32.mrf.mxu1  ;;  %3518 = vmatmul.mubr.msk.bf16.gmra.mxu1 %vm934_vm0, %v3654_v18  ;;  %v3664_v17 = vld [vmem:[%s5239_s0 + $0x3d0] sm:$0xff]  }
  0xdb   :  { %2639 = vst [vmem:[%s5241_s3 + $0x38] sm:$0xff] %v2383_v27  ;;  %2767 = vst [vmem:[%s5241_s3 + $0x438] sm:$0xff] %v2511_v28  ;;  %v2381_v33 = vmax.f32 %v1373_v29, 0.0  ;;  %v2509_v34 = vmax.f32 %v1885_v30, 0.0  ;;  %v1394_v35 = vadd.f32 %v3295_v31, %v4110_v40  ;;  %v1906_v36 = vadd.f32 %v3423_v32, %v4110_v40  ;;  %3393 = vmatprep.mubr.msk.bf16.mxu0 %vm934_vm0, %v3655_v23 }
  0xdc   :  { %3521 = vmatprep.mubr.msk.bf16.mxu1 %vm934_vm0, %v3656_v24  ;;  %v1385_v37 = vpop.f32.mrf.mxu0  ;;  %v1897_v38 = vpop.f32.mrf.mxu1 }
  0xdd   :  { %2637 = vst [vmem:[%s5241_s3 + $0x28] sm:$0xff] %v2381_v33  ;;  %2765 = vst [vmem:[%s5241_s3 + $0x428] sm:$0xff] %v2509_v34  ;;  %v2386_v39 = vmax.f32 %v1394_v35, 0.0  ;;  %v2514_v41 = vmax.f32 %v1906_v36, 0.0  ;;  %v1386_v42 = vadd.f32 %v4110_v40, %v1385_v37  ;;  %v1898_v43 = vadd.f32 %v4110_v40, %v1897_v38  ;;  %v3665_v38 = vld [vmem:[%s5239_s0 + $0x1d8] sm:$0xff]  }
  0xde   :  { %v3296_v44 = vpop.f32.mrf.mxu0  ;;  %v3424_v45 = vpop.f32.mrf.mxu1 }
  0xdf   :  { %2642 = vst [vmem:[%s5241_s3 + $0x50] sm:$0xff] %v2386_v39  ;;  %2770 = vst [vmem:[%s5241_s3 + $0x450] sm:$0xff] %v2514_v41  ;;  %v2384_v48 = vmax.f32 %v1386_v42, 0.0  ;;  %v2512_v49 = vmax.f32 %v1898_v43, 0.0  ;;  %v1397_v50 = vadd.f32 %v3296_v44, %v4110_v40  ;;  %v1909_v51 = vadd.f32 %v3424_v45, %v4110_v40  ;;  %v3666_v39 = vld [vmem:[%s5239_s0 + $0x3d8] sm:$0xff]   ;;  %v3667_v45 = vld [vmem:[%s5239_s0 + $0x1e0] sm:$0xff]  }
  0xe0   :  { %v1388_v54 = vpop.f32.mrf.mxu0  ;;  %v1900_v55 = vpop.f32.mrf.mxu1 }
  0xe1   :  { %2640 = vst [vmem:[%s5241_s3 + $0x40] sm:$0xff] %v2384_v48  ;;  %2768 = vst [vmem:[%s5241_s3 + $0x440] sm:$0xff] %v2512_v49  ;;  %v2387_v56 = vmax.f32 %v1397_v50, 0.0  ;;  %v2515_v57 = vmax.f32 %v1909_v51, 0.0  ;;  %v1389_v58 = vadd.f32 %v4110_v40, %v1388_v54  ;;  %v1901_v59 = vadd.f32 %v4110_v40, %v1900_v55 }
  0xe2   :  { %v3299_v60 = vpop.f32.mrf.mxu0  ;;  %3394 = vmatmul.mubr.msk.bf16.gmra.mxu0 %vm934_vm0, %v3657_v46  ;;  %v3427_v61 = vpop.f32.mrf.mxu1  ;;  %3522 = vmatmul.mubr.msk.bf16.gmra.mxu1 %vm934_vm0, %v3658_v47  ;;  %v3668_v46 = vld [vmem:[%s5239_s0 + $0x3e0] sm:$0xff]  }
  0xe3   :  { %2643 = vst [vmem:[%s5241_s3 + $0x58] sm:$0xff] %v2387_v56  ;;  %2771 = vst [vmem:[%s5241_s3 + $0x458] sm:$0xff] %v2515_v57  ;;  %v2385_v62 = vmax.f32 %v1389_v58, 0.0  ;;  %v2513_v63 = vmax.f32 %v1901_v59, 0.0  ;;  %v1410_v0 = vadd.f32 %v3299_v60, %v4110_v40  ;;  %v1922_v1 = vadd.f32 %v3427_v61, %v4110_v40  ;;  %3397 = vmatprep.mubr.msk.bf16.mxu0 %vm934_vm0, %v3659_v52 }
  0xe4   :  { %3525 = vmatprep.mubr.msk.bf16.mxu1 %vm934_vm0, %v3660_v53  ;;  %v1401_v2 = vpop.f32.mrf.mxu0  ;;  %v1913_v3 = vpop.f32.mrf.mxu1 }
  0xe5   :  { %2641 = vst [vmem:[%s5241_s3 + $0x48] sm:$0xff] %v2385_v62  ;;  %2769 = vst [vmem:[%s5241_s3 + $0x448] sm:$0xff] %v2513_v63  ;;  %v2390_v4 = vmax.f32 %v1410_v0, 0.0  ;;  %v2518_v5 = vmax.f32 %v1922_v1, 0.0  ;;  %v1402_v6 = vadd.f32 %v4110_v40, %v1401_v2  ;;  %v1914_v7 = vadd.f32 %v4110_v40, %v1913_v3  ;;  %v3669_v3 = vld [vmem:[%s5239_s0 + $0x1e8] sm:$0xff]  }
  0xe6   :  { %v3300_v8 = vpop.f32.mrf.mxu0  ;;  %v3428_v9 = vpop.f32.mrf.mxu1 }
  0xe7   :  { %2646 = vst [vmem:[%s5241_s3 + $0x70] sm:$0xff] %v2390_v4  ;;  %2774 = vst [vmem:[%s5241_s3 + $0x470] sm:$0xff] %v2518_v5  ;;  %v2388_v12 = vmax.f32 %v1402_v6, 0.0  ;;  %v2516_v13 = vmax.f32 %v1914_v7, 0.0  ;;  %v1413_v14 = vadd.f32 %v3300_v8, %v4110_v40  ;;  %v1925_v15 = vadd.f32 %v3428_v9, %v4110_v40  ;;  %v3670_v4 = vld [vmem:[%s5239_s0 + $0x3e8] sm:$0xff]   ;;  %v3671_v9 = vld [vmem:[%s5239_s0 + $0x1f0] sm:$0xff]  }
  0xe8   :  { %v1404_v18 = vpop.f32.mrf.mxu0  ;;  %v1916_v19 = vpop.f32.mrf.mxu1 }
  0xe9   :  { %2644 = vst [vmem:[%s5241_s3 + $0x60] sm:$0xff] %v2388_v12  ;;  %2772 = vst [vmem:[%s5241_s3 + $0x460] sm:$0xff] %v2516_v13  ;;  %v2391_v20 = vmax.f32 %v1413_v14, 0.0  ;;  %v2519_v21 = vmax.f32 %v1925_v15, 0.0  ;;  %v1405_v22 = vadd.f32 %v4110_v40, %v1404_v18  ;;  %v1917_v23 = vadd.f32 %v4110_v40, %v1916_v19 }
  0xea   :  { %v3303_v24 = vpop.f32.mrf.mxu0  ;;  %3398 = vmatmul.mubr.msk.bf16.gmra.mxu0 %vm934_vm0, %v3661_v10  ;;  %v3431_v25 = vpop.f32.mrf.mxu1  ;;  %3526 = vmatmul.mubr.msk.bf16.gmra.mxu1 %vm934_vm0, %v3662_v11  ;;  %v3672_v10 = vld [vmem:[%s5239_s0 + $0x3f0] sm:$0xff]  }
  0xeb   :  { %2647 = vst [vmem:[%s5241_s3 + $0x78] sm:$0xff] %v2391_v20  ;;  %2775 = vst [vmem:[%s5241_s3 + $0x478] sm:$0xff] %v2519_v21  ;;  %v2389_v26 = vmax.f32 %v1405_v22, 0.0  ;;  %v2517_v27 = vmax.f32 %v1917_v23, 0.0  ;;  %v1426_v28 = vadd.f32 %v3303_v24, %v4110_v40  ;;  %v1938_v29 = vadd.f32 %v3431_v25, %v4110_v40  ;;  %3401 = vmatprep.mubr.msk.bf16.mxu0 %vm934_vm0, %v3663_v16 }
  0xec   :  { %3529 = vmatprep.mubr.msk.bf16.mxu1 %vm934_vm0, %v3664_v17  ;;  %v1417_v30 = vpop.f32.mrf.mxu0  ;;  %v1929_v31 = vpop.f32.mrf.mxu1 }
  0xed   :  { %2645 = vst [vmem:[%s5241_s3 + $0x68] sm:$0xff] %v2389_v26  ;;  %2773 = vst [vmem:[%s5241_s3 + $0x468] sm:$0xff] %v2517_v27  ;;  %v2394_v32 = vmax.f32 %v1426_v28, 0.0  ;;  %v2522_v33 = vmax.f32 %v1938_v29, 0.0  ;;  %v1418_v34 = vadd.f32 %v4110_v40, %v1417_v30  ;;  %v1930_v35 = vadd.f32 %v4110_v40, %v1929_v31  ;;  %v3673_v31 = vld [vmem:[%s5239_s0 + $0x1f8] sm:$0xff]  }
  0xee   :  { %v3304_v36 = vpop.f32.mrf.mxu0  ;;  %v3432_v37 = vpop.f32.mrf.mxu1 }
  0xef   :  { %2650 = vst [vmem:[%s5241_s3 + $0x90] sm:$0xff] %v2394_v32  ;;  %2778 = vst [vmem:[%s5241_s3 + $0x490] sm:$0xff] %v2522_v33  ;;  %v2392_v41 = vmax.f32 %v1418_v34, 0.0  ;;  %v2520_v42 = vmax.f32 %v1930_v35, 0.0  ;;  %v1429_v43 = vadd.f32 %v3304_v36, %v4110_v40  ;;  %v1941_v44 = vadd.f32 %v3432_v37, %v4110_v40  ;;  %v3674_v32 = vld [vmem:[%s5239_s0 + $0x3f8] sm:$0xff]  }
  0xf0   :  { %v1420_v47 = vpop.f32.mrf.mxu0  ;;  %v1932_v48 = vpop.f32.mrf.mxu1 }
  0xf1   :  { %2648 = vst [vmem:[%s5241_s3 + $0x80] sm:$0xff] %v2392_v41  ;;  %2776 = vst [vmem:[%s5241_s3 + $0x480] sm:$0xff] %v2520_v42  ;;  %v2395_v49 = vmax.f32 %v1429_v43, 0.0  ;;  %v2523_v50 = vmax.f32 %v1941_v44, 0.0  ;;  %v1421_v51 = vadd.f32 %v4110_v40, %v1420_v47  ;;  %v1933_v52 = vadd.f32 %v4110_v40, %v1932_v48 }
  0xf2   :  { %v3307_v53 = vpop.f32.mrf.mxu0  ;;  %3402 = vmatmul.mubr.msk.bf16.gmra.mxu0 %vm934_vm0, %v3665_v38  ;;  %v3435_v54 = vpop.f32.mrf.mxu1  ;;  %3530 = vmatmul.mubr.msk.bf16.gmra.mxu1 %vm934_vm0, %v3666_v39 }
  0xf3   :  { %2651 = vst [vmem:[%s5241_s3 + $0x98] sm:$0xff] %v2395_v49  ;;  %2779 = vst [vmem:[%s5241_s3 + $0x498] sm:$0xff] %v2523_v50  ;;  %v2393_v55 = vmax.f32 %v1421_v51, 0.0  ;;  %v2521_v56 = vmax.f32 %v1933_v52, 0.0  ;;  %v1442_v57 = vadd.f32 %v3307_v53, %v4110_v40  ;;  %v1954_v58 = vadd.f32 %v3435_v54, %v4110_v40  ;;  %3405 = vmatprep.mubr.msk.bf16.mxu0 %vm934_vm0, %v3667_v45 }
  0xf4   :  { %3533 = vmatprep.mubr.msk.bf16.mxu1 %vm934_vm0, %v3668_v46  ;;  %v1433_v59 = vpop.f32.mrf.mxu0  ;;  %v1945_v60 = vpop.f32.mrf.mxu1 }
  0xf5   :  { %2649 = vst [vmem:[%s5241_s3 + $0x88] sm:$0xff] %v2393_v55  ;;  %2777 = vst [vmem:[%s5241_s3 + $0x488] sm:$0xff] %v2521_v56  ;;  %v2398_v61 = vmax.f32 %v1442_v57, 0.0  ;;  %v2526_v62 = vmax.f32 %v1954_v58, 0.0  ;;  %v1434_v63 = vadd.f32 %v4110_v40, %v1433_v59  ;;  %v1946_v0 = vadd.f32 %v4110_v40, %v1945_v60 }
  0xf6   :  { %v3308_v1 = vpop.f32.mrf.mxu0  ;;  %v3436_v2 = vpop.f32.mrf.mxu1 }
  0xf7   :  { %2654 = vst [vmem:[%s5241_s3 + $0xb0] sm:$0xff] %v2398_v61  ;;  %2782 = vst [vmem:[%s5241_s3 + $0x4b0] sm:$0xff] %v2526_v62  ;;  %v2396_v5 = vmax.f32 %v1434_v63, 0.0  ;;  %v2524_v6 = vmax.f32 %v1946_v0, 0.0  ;;  %v1445_v7 = vadd.f32 %v3308_v1, %v4110_v40  ;;  %v1957_v8 = vadd.f32 %v3436_v2, %v4110_v40 }
  0xf8   :  { %v1436_v11 = vpop.f32.mrf.mxu0  ;;  %v1948_v12 = vpop.f32.mrf.mxu1 }
  0xf9   :  { %2652 = vst [vmem:[%s5241_s3 + $0xa0] sm:$0xff] %v2396_v5  ;;  %2780 = vst [vmem:[%s5241_s3 + $0x4a0] sm:$0xff] %v2524_v6  ;;  %v2399_v13 = vmax.f32 %v1445_v7, 0.0  ;;  %v2527_v14 = vmax.f32 %v1957_v8, 0.0  ;;  %v1437_v15 = vadd.f32 %v4110_v40, %v1436_v11  ;;  %v1949_v16 = vadd.f32 %v4110_v40, %v1948_v12 }
  0xfa   :  { %v3311_v17 = vpop.f32.mrf.mxu0  ;;  %3406 = vmatmul.mubr.msk.bf16.gmra.mxu0 %vm934_vm0, %v3669_v3  ;;  %v3439_v18 = vpop.f32.mrf.mxu1  ;;  %3534 = vmatmul.mubr.msk.bf16.gmra.mxu1 %vm934_vm0, %v3670_v4 }
  0xfb   :  { %2655 = vst [vmem:[%s5241_s3 + $0xb8] sm:$0xff] %v2399_v13  ;;  %2783 = vst [vmem:[%s5241_s3 + $0x4b8] sm:$0xff] %v2527_v14  ;;  %v2397_v19 = vmax.f32 %v1437_v15, 0.0  ;;  %v2525_v20 = vmax.f32 %v1949_v16, 0.0  ;;  %v1458_v21 = vadd.f32 %v3311_v17, %v4110_v40  ;;  %v1970_v22 = vadd.f32 %v3439_v18, %v4110_v40  ;;  %3409 = vmatprep.mubr.msk.bf16.mxu0 %vm934_vm0, %v3671_v9 }
  0xfc   :  { %3537 = vmatprep.mubr.msk.bf16.mxu1 %vm934_vm0, %v3672_v10  ;;  %v1449_v23 = vpop.f32.mrf.mxu0  ;;  %v1961_v24 = vpop.f32.mrf.mxu1 }
  0xfd   :  { %2653 = vst [vmem:[%s5241_s3 + $0xa8] sm:$0xff] %v2397_v19  ;;  %2781 = vst [vmem:[%s5241_s3 + $0x4a8] sm:$0xff] %v2525_v20  ;;  %v2402_v25 = vmax.f32 %v1458_v21, 0.0  ;;  %v2530_v26 = vmax.f32 %v1970_v22, 0.0  ;;  %v1450_v27 = vadd.f32 %v4110_v40, %v1449_v23  ;;  %v1962_v28 = vadd.f32 %v4110_v40, %v1961_v24 }
  0xfe   :  { %v3312_v29 = vpop.f32.mrf.mxu0  ;;  %v3440_v30 = vpop.f32.mrf.mxu1 }
  0xff   :  { %2658 = vst [vmem:[%s5241_s3 + $0xd0] sm:$0xff] %v2402_v25  ;;  %2786 = vst [vmem:[%s5241_s3 + $0x4d0] sm:$0xff] %v2530_v26  ;;  %v2400_v33 = vmax.f32 %v1450_v27, 0.0  ;;  %v2528_v34 = vmax.f32 %v1962_v28, 0.0  ;;  %v1461_v35 = vadd.f32 %v3312_v29, %v4110_v40  ;;  %v1973_v36 = vadd.f32 %v3440_v30, %v4110_v40 }
 0x100   :  { %v1452_v37 = vpop.f32.mrf.mxu0  ;;  %v1964_v38 = vpop.f32.mrf.mxu1 }
 0x101   :  { %2656 = vst [vmem:[%s5241_s3 + $0xc0] sm:$0xff] %v2400_v33  ;;  %2784 = vst [vmem:[%s5241_s3 + $0x4c0] sm:$0xff] %v2528_v34  ;;  %v2403_v39 = vmax.f32 %v1461_v35, 0.0  ;;  %v2531_v41 = vmax.f32 %v1973_v36, 0.0  ;;  %v1453_v42 = vadd.f32 %v4110_v40, %v1452_v37  ;;  %v1965_v43 = vadd.f32 %v4110_v40, %v1964_v38 }
 0x102   :  { %v3315_v44 = vpop.f32.mrf.mxu0  ;;  %3410 = vmatmul.mubr.msk.bf16.gmra.mxu0 %vm934_vm0, %v3673_v31  ;;  %v3443_v45 = vpop.f32.mrf.mxu1  ;;  %3538 = vmatmul.mubr.msk.bf16.gmra.mxu1 %vm934_vm0, %v3674_v32 }
 0x103   :  { %2659 = vst [vmem:[%s5241_s3 + $0xd8] sm:$0xff] %v2403_v39  ;;  %2787 = vst [vmem:[%s5241_s3 + $0x4d8] sm:$0xff] %v2531_v41  ;;  %v2401_v46 = vmax.f32 %v1453_v42, 0.0  ;;  %v2529_v47 = vmax.f32 %v1965_v43, 0.0  ;;  %v1474_v48 = vadd.f32 %v3315_v44, %v4110_v40  ;;  %v1986_v49 = vadd.f32 %v3443_v45, %v4110_v40 }
 0x104   :  { %v1465_v50 = vpop.f32.mrf.mxu0  ;;  %v1977_v51 = vpop.f32.mrf.mxu1 }
 0x105   :  { %2657 = vst [vmem:[%s5241_s3 + $0xc8] sm:$0xff] %v2401_v46  ;;  %2785 = vst [vmem:[%s5241_s3 + $0x4c8] sm:$0xff] %v2529_v47  ;;  %v2406_v52 = vmax.f32 %v1474_v48, 0.0  ;;  %v2534_v53 = vmax.f32 %v1986_v49, 0.0  ;;  %v1466_v54 = vadd.f32 %v4110_v40, %v1465_v50  ;;  %v1978_v55 = vadd.f32 %v4110_v40, %v1977_v51 }
 0x106   :  { %v3316_v56 = vpop.f32.mrf.mxu0  ;;  %v3444_v57 = vpop.f32.mrf.mxu1 }
 0x107   :  { %2662 = vst [vmem:[%s5241_s3 + $0xf0] sm:$0xff] %v2406_v52  ;;  %2790 = vst [vmem:[%s5241_s3 + $0x4f0] sm:$0xff] %v2534_v53  ;;  %v2404_v58 = vmax.f32 %v1466_v54, 0.0  ;;  %v2532_v59 = vmax.f32 %v1978_v55, 0.0  ;;  %v1477_v60 = vadd.f32 %v3316_v56, %v4110_v40  ;;  %v1989_v61 = vadd.f32 %v3444_v57, %v4110_v40 }
 0x108   :  { %v1468_v62 = vpop.f32.mrf.mxu0  ;;  %v1980_v63 = vpop.f32.mrf.mxu1 }
 0x109   :  { %2660 = vst [vmem:[%s5241_s3 + $0xe0] sm:$0xff] %v2404_v58  ;;  %2788 = vst [vmem:[%s5241_s3 + $0x4e0] sm:$0xff] %v2532_v59  ;;  %v2407_v0 = vmax.f32 %v1477_v60, 0.0  ;;  %v2535_v1 = vmax.f32 %v1989_v61, 0.0  ;;  %v1469_v2 = vadd.f32 %v4110_v40, %v1468_v62  ;;  %v1981_v3 = vadd.f32 %v4110_v40, %v1980_v63 }
 0x10a   :  { %v3319_v4 = vpop.f32.mrf.mxu0  ;;  %v3447_v5 = vpop.f32.mrf.mxu1 }
 0x10b   :  { %2663 = vst [vmem:[%s5241_s3 + $0xf8] sm:$0xff] %v2407_v0  ;;  %2791 = vst [vmem:[%s5241_s3 + $0x4f8] sm:$0xff] %v2535_v1  ;;  %v2405_v6 = vmax.f32 %v1469_v2, 0.0  ;;  %v2533_v7 = vmax.f32 %v1981_v3, 0.0  ;;  %v1490_v8 = vadd.f32 %v3319_v4, %v4110_v40  ;;  %v2002_v9 = vadd.f32 %v3447_v5, %v4110_v40 }
 0x10c   :  { %v1481_v10 = vpop.f32.mrf.mxu0  ;;  %v1993_v11 = vpop.f32.mrf.mxu1 }
 0x10d   :  { %2661 = vst [vmem:[%s5241_s3 + $0xe8] sm:$0xff] %v2405_v6  ;;  %2789 = vst [vmem:[%s5241_s3 + $0x4e8] sm:$0xff] %v2533_v7  ;;  %v2410_v12 = vmax.f32 %v1490_v8, 0.0  ;;  %v2538_v13 = vmax.f32 %v2002_v9, 0.0  ;;  %v1482_v14 = vadd.f32 %v4110_v40, %v1481_v10  ;;  %v1994_v15 = vadd.f32 %v4110_v40, %v1993_v11 }
 0x10e   :  { %v3320_v16 = vpop.f32.mrf.mxu0  ;;  %v3448_v17 = vpop.f32.mrf.mxu1 }
 0x10f   :  { %2666 = vst [vmem:[%s5241_s3 + $0x110] sm:$0xff] %v2410_v12  ;;  %2794 = vst [vmem:[%s5241_s3 + $0x510] sm:$0xff] %v2538_v13  ;;  %v2408_v18 = vmax.f32 %v1482_v14, 0.0  ;;  %v2536_v19 = vmax.f32 %v1994_v15, 0.0  ;;  %v1493_v20 = vadd.f32 %v3320_v16, %v4110_v40  ;;  %v2005_v21 = vadd.f32 %v3448_v17, %v4110_v40 }
 0x110   :  { %v1484_v22 = vpop.f32.mrf.mxu0  ;;  %v1996_v23 = vpop.f32.mrf.mxu1 }
 0x111   :  { %2664 = vst [vmem:[%s5241_s3 + $0x100] sm:$0xff] %v2408_v18  ;;  %2792 = vst [vmem:[%s5241_s3 + $0x500] sm:$0xff] %v2536_v19  ;;  %v2411_v24 = vmax.f32 %v1493_v20, 0.0  ;;  %v2539_v25 = vmax.f32 %v2005_v21, 0.0  ;;  %v1485_v26 = vadd.f32 %v4110_v40, %v1484_v22  ;;  %v1997_v27 = vadd.f32 %v4110_v40, %v1996_v23 }
 0x112   :  { %v3323_v28 = vpop.f32.mrf.mxu0  ;;  %v3451_v29 = vpop.f32.mrf.mxu1 }
 0x113   :  { %2667 = vst [vmem:[%s5241_s3 + $0x118] sm:$0xff] %v2411_v24  ;;  %2795 = vst [vmem:[%s5241_s3 + $0x518] sm:$0xff] %v2539_v25  ;;  %v2409_v30 = vmax.f32 %v1485_v26, 0.0  ;;  %v2537_v31 = vmax.f32 %v1997_v27, 0.0  ;;  %v1506_v32 = vadd.f32 %v3323_v28, %v4110_v40  ;;  %v2018_v33 = vadd.f32 %v3451_v29, %v4110_v40 }
 0x114   :  { %v1497_v34 = vpop.f32.mrf.mxu0  ;;  %v2009_v35 = vpop.f32.mrf.mxu1 }
 0x115   :  { %2665 = vst [vmem:[%s5241_s3 + $0x108] sm:$0xff] %v2409_v30  ;;  %2793 = vst [vmem:[%s5241_s3 + $0x508] sm:$0xff] %v2537_v31  ;;  %v2414_v36 = vmax.f32 %v1506_v32, 0.0  ;;  %v2542_v37 = vmax.f32 %v2018_v33, 0.0  ;;  %v1498_v38 = vadd.f32 %v4110_v40, %v1497_v34  ;;  %v2010_v39 = vadd.f32 %v4110_v40, %v2009_v35 }
 0x116   :  { %v3324_v41 = vpop.f32.mrf.mxu0  ;;  %v3452_v42 = vpop.f32.mrf.mxu1 }
 0x117   :  { %2670 = vst [vmem:[%s5241_s3 + $0x130] sm:$0xff] %v2414_v36  ;;  %2798 = vst [vmem:[%s5241_s3 + $0x530] sm:$0xff] %v2542_v37  ;;  %v2412_v43 = vmax.f32 %v1498_v38, 0.0  ;;  %v2540_v44 = vmax.f32 %v2010_v39, 0.0  ;;  %v1509_v45 = vadd.f32 %v3324_v41, %v4110_v40  ;;  %v2021_v46 = vadd.f32 %v3452_v42, %v4110_v40 }
 0x118   :  { %v1500_v47 = vpop.f32.mrf.mxu0  ;;  %v2012_v48 = vpop.f32.mrf.mxu1 }
 0x119   :  { %2668 = vst [vmem:[%s5241_s3 + $0x120] sm:$0xff] %v2412_v43  ;;  %2796 = vst [vmem:[%s5241_s3 + $0x520] sm:$0xff] %v2540_v44  ;;  %v2415_v49 = vmax.f32 %v1509_v45, 0.0  ;;  %v2543_v50 = vmax.f32 %v2021_v46, 0.0  ;;  %v1501_v51 = vadd.f32 %v4110_v40, %v1500_v47  ;;  %v2013_v52 = vadd.f32 %v4110_v40, %v2012_v48 }
 0x11a   :  { %v3327_v53 = vpop.f32.mrf.mxu0  ;;  %v3455_v54 = vpop.f32.mrf.mxu1 }
 0x11b   :  { %2671 = vst [vmem:[%s5241_s3 + $0x138] sm:$0xff] %v2415_v49  ;;  %2799 = vst [vmem:[%s5241_s3 + $0x538] sm:$0xff] %v2543_v50  ;;  %v2413_v55 = vmax.f32 %v1501_v51, 0.0  ;;  %v2541_v56 = vmax.f32 %v2013_v52, 0.0  ;;  %v1522_v57 = vadd.f32 %v3327_v53, %v4110_v40  ;;  %v2034_v58 = vadd.f32 %v3455_v54, %v4110_v40 }
 0x11c   :  { %v1513_v59 = vpop.f32.mrf.mxu0  ;;  %v2025_v60 = vpop.f32.mrf.mxu1 }
 0x11d   :  { %2669 = vst [vmem:[%s5241_s3 + $0x128] sm:$0xff] %v2413_v55  ;;  %2797 = vst [vmem:[%s5241_s3 + $0x528] sm:$0xff] %v2541_v56  ;;  %v2418_v61 = vmax.f32 %v1522_v57, 0.0  ;;  %v2546_v62 = vmax.f32 %v2034_v58, 0.0  ;;  %v1514_v63 = vadd.f32 %v4110_v40, %v1513_v59  ;;  %v2026_v0 = vadd.f32 %v4110_v40, %v2025_v60 }
 0x11e   :  { %v3328_v1 = vpop.f32.mrf.mxu0  ;;  %v3456_v2 = vpop.f32.mrf.mxu1 }
 0x11f   :  { %2674 = vst [vmem:[%s5241_s3 + $0x150] sm:$0xff] %v2418_v61  ;;  %2802 = vst [vmem:[%s5241_s3 + $0x550] sm:$0xff] %v2546_v62  ;;  %v2416_v3 = vmax.f32 %v1514_v63, 0.0  ;;  %v2544_v4 = vmax.f32 %v2026_v0, 0.0  ;;  %v1525_v5 = vadd.f32 %v3328_v1, %v4110_v40  ;;  %v2037_v6 = vadd.f32 %v3456_v2, %v4110_v40 }
 0x120   :  { %v1516_v7 = vpop.f32.mrf.mxu0  ;;  %v2028_v8 = vpop.f32.mrf.mxu1 }
 0x121   :  { %2672 = vst [vmem:[%s5241_s3 + $0x140] sm:$0xff] %v2416_v3  ;;  %2800 = vst [vmem:[%s5241_s3 + $0x540] sm:$0xff] %v2544_v4  ;;  %v2419_v9 = vmax.f32 %v1525_v5, 0.0  ;;  %v2547_v10 = vmax.f32 %v2037_v6, 0.0  ;;  %v1517_v11 = vadd.f32 %v4110_v40, %v1516_v7  ;;  %v2029_v12 = vadd.f32 %v4110_v40, %v2028_v8 }
 0x122   :  { %v3331_v13 = vpop.f32.mrf.mxu0  ;;  %v3459_v14 = vpop.f32.mrf.mxu1 }
 0x123   :  { %2675 = vst [vmem:[%s5241_s3 + $0x158] sm:$0xff] %v2419_v9  ;;  %2803 = vst [vmem:[%s5241_s3 + $0x558] sm:$0xff] %v2547_v10  ;;  %v2417_v15 = vmax.f32 %v1517_v11, 0.0  ;;  %v2545_v16 = vmax.f32 %v2029_v12, 0.0  ;;  %v1538_v17 = vadd.f32 %v3331_v13, %v4110_v40  ;;  %v2050_v18 = vadd.f32 %v3459_v14, %v4110_v40 }
 0x124   :  { %v1529_v19 = vpop.f32.mrf.mxu0  ;;  %v2041_v20 = vpop.f32.mrf.mxu1 }
 0x125   :  { %2673 = vst [vmem:[%s5241_s3 + $0x148] sm:$0xff] %v2417_v15  ;;  %2801 = vst [vmem:[%s5241_s3 + $0x548] sm:$0xff] %v2545_v16  ;;  %v2422_v21 = vmax.f32 %v1538_v17, 0.0  ;;  %v2550_v22 = vmax.f32 %v2050_v18, 0.0  ;;  %v1530_v23 = vadd.f32 %v4110_v40, %v1529_v19  ;;  %v2042_v24 = vadd.f32 %v4110_v40, %v2041_v20 }
 0x126   :  { %v3332_v25 = vpop.f32.mrf.mxu0  ;;  %v3460_v26 = vpop.f32.mrf.mxu1 }
 0x127   :  { %2678 = vst [vmem:[%s5241_s3 + $0x170] sm:$0xff] %v2422_v21  ;;  %2806 = vst [vmem:[%s5241_s3 + $0x570] sm:$0xff] %v2550_v22  ;;  %v2420_v27 = vmax.f32 %v1530_v23, 0.0  ;;  %v2548_v28 = vmax.f32 %v2042_v24, 0.0  ;;  %v1541_v29 = vadd.f32 %v3332_v25, %v4110_v40  ;;  %v2053_v30 = vadd.f32 %v3460_v26, %v4110_v40 }
 0x128   :  { %v1532_v31 = vpop.f32.mrf.mxu0  ;;  %v2044_v32 = vpop.f32.mrf.mxu1 }
 0x129   :  { %2676 = vst [vmem:[%s5241_s3 + $0x160] sm:$0xff] %v2420_v27  ;;  %2804 = vst [vmem:[%s5241_s3 + $0x560] sm:$0xff] %v2548_v28  ;;  %v2423_v33 = vmax.f32 %v1541_v29, 0.0  ;;  %v2551_v34 = vmax.f32 %v2053_v30, 0.0  ;;  %v1533_v35 = vadd.f32 %v4110_v40, %v1532_v31  ;;  %v2045_v36 = vadd.f32 %v4110_v40, %v2044_v32  ;;  %v4673_v32 = vld [vmem:[%s5240_s2] ss:$0 sm:$0xff] }
 0x12a   :  { %v3335_v37 = vpop.f32.mrf.mxu0  ;;  %v3463_v38 = vpop.f32.mrf.mxu1 }
 0x12b   :  { %2679 = vst [vmem:[%s5241_s3 + $0x178] sm:$0xff] %v2423_v33  ;;  %2807 = vst [vmem:[%s5241_s3 + $0x578] sm:$0xff] %v2551_v34  ;;  %v2421_v39 = vmax.f32 %v1533_v35, 0.0  ;;  %v2549_v41 = vmax.f32 %v2045_v36, 0.0  ;;  %v1554_v42 = vadd.f32 %v3335_v37, %v4110_v40  ;;  %v2066_v43 = vadd.f32 %v3463_v38, %v4110_v40 }
 0x12c   :  { %v1545_v44 = vpop.f32.mrf.mxu0  ;;  %v2057_v45 = vpop.f32.mrf.mxu1 }
 0x12d   :  { %2677 = vst [vmem:[%s5241_s3 + $0x168] sm:$0xff] %v2421_v39  ;;  %2805 = vst [vmem:[%s5241_s3 + $0x568] sm:$0xff] %v2549_v41  ;;  %v2426_v46 = vmax.f32 %v1554_v42, 0.0  ;;  %v2554_v47 = vmax.f32 %v2066_v43, 0.0  ;;  %v1546_v48 = vadd.f32 %v4110_v40, %v1545_v44  ;;  %v2058_v49 = vadd.f32 %v4110_v40, %v2057_v45 }
 0x12e   :  { %v3336_v50 = vpop.f32.mrf.mxu0  ;;  %v3464_v51 = vpop.f32.mrf.mxu1 }
 0x12f   :  { %2682 = vst [vmem:[%s5241_s3 + $0x190] sm:$0xff] %v2426_v46  ;;  %2810 = vst [vmem:[%s5241_s3 + $0x590] sm:$0xff] %v2554_v47  ;;  %v2424_v52 = vmax.f32 %v1546_v48, 0.0  ;;  %v2552_v53 = vmax.f32 %v2058_v49, 0.0  ;;  %v1557_v54 = vadd.f32 %v3336_v50, %v4110_v40  ;;  %v2069_v55 = vadd.f32 %v3464_v51, %v4110_v40 }
 0x130   :  { %v1548_v56 = vpop.f32.mrf.mxu0  ;;  %v2060_v57 = vpop.f32.mrf.mxu1 }
 0x131   :  { %2680 = vst [vmem:[%s5241_s3 + $0x180] sm:$0xff] %v2424_v52  ;;  %2808 = vst [vmem:[%s5241_s3 + $0x580] sm:$0xff] %v2552_v53  ;;  %v2427_v58 = vmax.f32 %v1557_v54, 0.0  ;;  %v2555_v59 = vmax.f32 %v2069_v55, 0.0  ;;  %v1549_v60 = vadd.f32 %v4110_v40, %v1548_v56  ;;  %v2061_v61 = vadd.f32 %v4110_v40, %v2060_v57 }
 0x132   :  { %v3339_v62 = vpop.f32.mrf.mxu0  ;;  %v3467_v63 = vpop.f32.mrf.mxu1 }
 0x133   :  { %2683 = vst [vmem:[%s5241_s3 + $0x198] sm:$0xff] %v2427_v58  ;;  %2811 = vst [vmem:[%s5241_s3 + $0x598] sm:$0xff] %v2555_v59  ;;  %v2425_v0 = vmax.f32 %v1549_v60, 0.0  ;;  %v2553_v1 = vmax.f32 %v2061_v61, 0.0  ;;  %v1570_v2 = vadd.f32 %v3339_v62, %v4110_v40  ;;  %v2082_v3 = vadd.f32 %v3467_v63, %v4110_v40 }
 0x134   :  { %v1561_v4 = vpop.f32.mrf.mxu0  ;;  %v2073_v5 = vpop.f32.mrf.mxu1 }
 0x135   :  { %2681 = vst [vmem:[%s5241_s3 + $0x188] sm:$0xff] %v2425_v0  ;;  %2809 = vst [vmem:[%s5241_s3 + $0x588] sm:$0xff] %v2553_v1  ;;  %v2430_v6 = vmax.f32 %v1570_v2, 0.0  ;;  %v2558_v7 = vmax.f32 %v2082_v3, 0.0  ;;  %v1562_v8 = vadd.f32 %v4110_v40, %v1561_v4  ;;  %v2074_v9 = vadd.f32 %v4110_v40, %v2073_v5 }
 0x136   :  { %v3340_v10 = vpop.f32.mrf.mxu0  ;;  %v3468_v11 = vpop.f32.mrf.mxu1 }
 0x137   :  { %2686 = vst [vmem:[%s5241_s3 + $0x1b0] sm:$0xff] %v2430_v6  ;;  %2814 = vst [vmem:[%s5241_s3 + $0x5b0] sm:$0xff] %v2558_v7  ;;  %v2428_v12 = vmax.f32 %v1562_v8, 0.0  ;;  %v2556_v13 = vmax.f32 %v2074_v9, 0.0  ;;  %v1573_v14 = vadd.f32 %v3340_v10, %v4110_v40  ;;  %v2085_v15 = vadd.f32 %v3468_v11, %v4110_v40 }
 0x138   :  { %v1564_v16 = vpop.f32.mrf.mxu0  ;;  %v2076_v17 = vpop.f32.mrf.mxu1 }
 0x139   :  { %2684 = vst [vmem:[%s5241_s3 + $0x1a0] sm:$0xff] %v2428_v12  ;;  %2812 = vst [vmem:[%s5241_s3 + $0x5a0] sm:$0xff] %v2556_v13  ;;  %v2431_v18 = vmax.f32 %v1573_v14, 0.0  ;;  %v2559_v19 = vmax.f32 %v2085_v15, 0.0  ;;  %v1565_v20 = vadd.f32 %v4110_v40, %v1564_v16  ;;  %v2077_v21 = vadd.f32 %v4110_v40, %v2076_v17 }
 0x13a   :  { %v3343_v22 = vpop.f32.mrf.mxu0  ;;  %v3471_v23 = vpop.f32.mrf.mxu1 }
 0x13b   :  { %2687 = vst [vmem:[%s5241_s3 + $0x1b8] sm:$0xff] %v2431_v18  ;;  %2815 = vst [vmem:[%s5241_s3 + $0x5b8] sm:$0xff] %v2559_v19  ;;  %v2429_v24 = vmax.f32 %v1565_v20, 0.0  ;;  %v2557_v25 = vmax.f32 %v2077_v21, 0.0  ;;  %v1586_v26 = vadd.f32 %v3343_v22, %v4110_v40  ;;  %v2098_v27 = vadd.f32 %v3471_v23, %v4110_v40 }
 0x13c   :  { %v1577_v28 = vpop.f32.mrf.mxu0  ;;  %v2089_v29 = vpop.f32.mrf.mxu1 }
 0x13d   :  { %2685 = vst [vmem:[%s5241_s3 + $0x1a8] sm:$0xff] %v2429_v24  ;;  %2813 = vst [vmem:[%s5241_s3 + $0x5a8] sm:$0xff] %v2557_v25  ;;  %v2434_v30 = vmax.f32 %v1586_v26, 0.0  ;;  %v2562_v31 = vmax.f32 %v2098_v27, 0.0  ;;  %v1578_v33 = vadd.f32 %v4673_v32, %v1577_v28  ;;  %v2090_v40 = vadd.f32 %v4673_v32, %v2089_v29 }
 0x13e   :  { %v3344_v34 = vpop.f32.mrf.mxu0  ;;  %v3472_v35 = vpop.f32.mrf.mxu1 }
 0x13f   :  { %2690 = vst [vmem:[%s5241_s3 + $0x1d0] sm:$0xff] %v2434_v30  ;;  %2818 = vst [vmem:[%s5241_s3 + $0x5d0] sm:$0xff] %v2562_v31  ;;  %v2432_v36 = vmax.f32 %v1578_v33, 0.0  ;;  %v2560_v37 = vmax.f32 %v2090_v40, 0.0  ;;  %v1589_v38 = vadd.f32 %v4673_v32, %v3344_v34  ;;  %v2101_v39 = vadd.f32 %v4673_v32, %v3472_v35 }
 0x140   :  { %v1580_v41 = vpop.f32.mrf.mxu0  ;;  %v2092_v42 = vpop.f32.mrf.mxu1 }
 0x141   :  { %2688 = vst [vmem:[%s5241_s3 + $0x1c0] sm:$0xff] %v2432_v36  ;;  %2816 = vst [vmem:[%s5241_s3 + $0x5c0] sm:$0xff] %v2560_v37  ;;  %v2435_v43 = vmax.f32 %v1589_v38, 0.0  ;;  %v2563_v44 = vmax.f32 %v2101_v39, 0.0  ;;  %v1581_v45 = vadd.f32 %v4673_v32, %v1580_v41  ;;  %v2093_v46 = vadd.f32 %v4673_v32, %v2092_v42 }
 0x142   :  { %v3347_v47 = vpop.f32.mrf.mxu0  ;;  %v3475_v48 = vpop.f32.mrf.mxu1 }
 0x143   :  { %2691 = vst [vmem:[%s5241_s3 + $0x1d8] sm:$0xff] %v2435_v43  ;;  %2819 = vst [vmem:[%s5241_s3 + $0x5d8] sm:$0xff] %v2563_v44  ;;  %v2433_v49 = vmax.f32 %v1581_v45, 0.0  ;;  %v2561_v50 = vmax.f32 %v2093_v46, 0.0  ;;  %v1602_v51 = vadd.f32 %v4673_v32, %v3347_v47  ;;  %v2114_v52 = vadd.f32 %v4673_v32, %v3475_v48 }
 0x144   :  { %v1593_v53 = vpop.f32.mrf.mxu0  ;;  %v2105_v54 = vpop.f32.mrf.mxu1 }
 0x145   :  { %2689 = vst [vmem:[%s5241_s3 + $0x1c8] sm:$0xff] %v2433_v49  ;;  %2817 = vst [vmem:[%s5241_s3 + $0x5c8] sm:$0xff] %v2561_v50  ;;  %v2438_v55 = vmax.f32 %v1602_v51, 0.0  ;;  %v2566_v56 = vmax.f32 %v2114_v52, 0.0  ;;  %v1594_v57 = vadd.f32 %v4673_v32, %v1593_v53  ;;  %v2106_v58 = vadd.f32 %v4673_v32, %v2105_v54 }
 0x146   :  { %v3348_v59 = vpop.f32.mrf.mxu0  ;;  %v3476_v60 = vpop.f32.mrf.mxu1 }
 0x147   :  { %2694 = vst [vmem:[%s5241_s3 + $0x1f0] sm:$0xff] %v2438_v55  ;;  %2822 = vst [vmem:[%s5241_s3 + $0x5f0] sm:$0xff] %v2566_v56  ;;  %v2436_v61 = vmax.f32 %v1594_v57, 0.0  ;;  %v2564_v62 = vmax.f32 %v2106_v58, 0.0  ;;  %v1605_v63 = vadd.f32 %v4673_v32, %v3348_v59  ;;  %v2117_v0 = vadd.f32 %v4673_v32, %v3476_v60 }
 0x148   :  { %v1596_v1 = vpop.f32.mrf.mxu0  ;;  %v2108_v2 = vpop.f32.mrf.mxu1 }
 0x149   :  { %2692 = vst [vmem:[%s5241_s3 + $0x1e0] sm:$0xff] %v2436_v61  ;;  %2820 = vst [vmem:[%s5241_s3 + $0x5e0] sm:$0xff] %v2564_v62  ;;  %v2439_v3 = vmax.f32 %v1605_v63, 0.0  ;;  %v2567_v4 = vmax.f32 %v2117_v0, 0.0  ;;  %v1597_v5 = vadd.f32 %v4673_v32, %v1596_v1  ;;  %v2109_v6 = vadd.f32 %v4673_v32, %v2108_v2 }
 0x14a   :  { %v3351_v7 = vpop.f32.mrf.mxu0  ;;  %v3479_v8 = vpop.f32.mrf.mxu1 }
 0x14b   :  { %2695 = vst [vmem:[%s5241_s3 + $0x1f8] sm:$0xff] %v2439_v3  ;;  %2823 = vst [vmem:[%s5241_s3 + $0x5f8] sm:$0xff] %v2567_v4  ;;  %v2437_v9 = vmax.f32 %v1597_v5, 0.0  ;;  %v2565_v10 = vmax.f32 %v2109_v6, 0.0  ;;  %v1618_v11 = vadd.f32 %v4673_v32, %v3351_v7  ;;  %v2130_v12 = vadd.f32 %v4673_v32, %v3479_v8 }
 0x14c   :  { %v1609_v13 = vpop.f32.mrf.mxu0  ;;  %v2121_v14 = vpop.f32.mrf.mxu1 }
 0x14d   :  { %2693 = vst [vmem:[%s5241_s3 + $0x1e8] sm:$0xff] %v2437_v9  ;;  %2821 = vst [vmem:[%s5241_s3 + $0x5e8] sm:$0xff] %v2565_v10  ;;  %v2442_v15 = vmax.f32 %v1618_v11, 0.0  ;;  %v2570_v16 = vmax.f32 %v2130_v12, 0.0  ;;  %v1610_v17 = vadd.f32 %v4673_v32, %v1609_v13  ;;  %v2122_v18 = vadd.f32 %v4673_v32, %v2121_v14 }
 0x14e   :  { %v3352_v19 = vpop.f32.mrf.mxu0  ;;  %v3480_v20 = vpop.f32.mrf.mxu1 }
 0x14f   :  { %2698 = vst [vmem:[%s5241_s3 + $0x210] sm:$0xff] %v2442_v15  ;;  %2826 = vst [vmem:[%s5241_s3 + $0x610] sm:$0xff] %v2570_v16  ;;  %v2440_v21 = vmax.f32 %v1610_v17, 0.0  ;;  %v2568_v22 = vmax.f32 %v2122_v18, 0.0  ;;  %v1621_v23 = vadd.f32 %v4673_v32, %v3352_v19  ;;  %v2133_v24 = vadd.f32 %v4673_v32, %v3480_v20 }
 0x150   :  { %v1612_v25 = vpop.f32.mrf.mxu0  ;;  %v2124_v26 = vpop.f32.mrf.mxu1 }
 0x151   :  { %2696 = vst [vmem:[%s5241_s3 + $0x200] sm:$0xff] %v2440_v21  ;;  %2824 = vst [vmem:[%s5241_s3 + $0x600] sm:$0xff] %v2568_v22  ;;  %v2443_v27 = vmax.f32 %v1621_v23, 0.0  ;;  %v2571_v28 = vmax.f32 %v2133_v24, 0.0  ;;  %v1613_v29 = vadd.f32 %v4673_v32, %v1612_v25  ;;  %v2125_v30 = vadd.f32 %v4673_v32, %v2124_v26 }
 0x152   :  { %v3355_v31 = vpop.f32.mrf.mxu0  ;;  %v3483_v33 = vpop.f32.mrf.mxu1 }
 0x153   :  { %2699 = vst [vmem:[%s5241_s3 + $0x218] sm:$0xff] %v2443_v27  ;;  %2827 = vst [vmem:[%s5241_s3 + $0x618] sm:$0xff] %v2571_v28  ;;  %v2441_v40 = vmax.f32 %v1613_v29, 0.0  ;;  %v2569_v34 = vmax.f32 %v2125_v30, 0.0  ;;  %v1634_v35 = vadd.f32 %v4673_v32, %v3355_v31  ;;  %v2146_v36 = vadd.f32 %v4673_v32, %v3483_v33 }
 0x154   :  { %v1625_v37 = vpop.f32.mrf.mxu0  ;;  %v2137_v38 = vpop.f32.mrf.mxu1 }
 0x155   :  { %2697 = vst [vmem:[%s5241_s3 + $0x208] sm:$0xff] %v2441_v40  ;;  %2825 = vst [vmem:[%s5241_s3 + $0x608] sm:$0xff] %v2569_v34  ;;  %v2446_v39 = vmax.f32 %v1634_v35, 0.0  ;;  %v2574_v41 = vmax.f32 %v2146_v36, 0.0  ;;  %v1626_v42 = vadd.f32 %v4673_v32, %v1625_v37  ;;  %v2138_v43 = vadd.f32 %v4673_v32, %v2137_v38 }
 0x156   :  { %v3356_v44 = vpop.f32.mrf.mxu0  ;;  %v3484_v45 = vpop.f32.mrf.mxu1 }
 0x157   :  { %2702 = vst [vmem:[%s5241_s3 + $0x230] sm:$0xff] %v2446_v39  ;;  %2830 = vst [vmem:[%s5241_s3 + $0x630] sm:$0xff] %v2574_v41  ;;  %v2444_v46 = vmax.f32 %v1626_v42, 0.0  ;;  %v2572_v47 = vmax.f32 %v2138_v43, 0.0  ;;  %v1637_v48 = vadd.f32 %v4673_v32, %v3356_v44  ;;  %v2149_v49 = vadd.f32 %v4673_v32, %v3484_v45 }
 0x158   :  { %v1628_v50 = vpop.f32.mrf.mxu0  ;;  %v2140_v51 = vpop.f32.mrf.mxu1 }
 0x159   :  { %2700 = vst [vmem:[%s5241_s3 + $0x220] sm:$0xff] %v2444_v46  ;;  %2828 = vst [vmem:[%s5241_s3 + $0x620] sm:$0xff] %v2572_v47  ;;  %v2447_v52 = vmax.f32 %v1637_v48, 0.0  ;;  %v2575_v53 = vmax.f32 %v2149_v49, 0.0  ;;  %v1629_v54 = vadd.f32 %v4673_v32, %v1628_v50  ;;  %v2141_v55 = vadd.f32 %v4673_v32, %v2140_v51 }
 0x15a   :  { %v3359_v56 = vpop.f32.mrf.mxu0  ;;  %v3487_v57 = vpop.f32.mrf.mxu1 }
 0x15b   :  { %2703 = vst [vmem:[%s5241_s3 + $0x238] sm:$0xff] %v2447_v52  ;;  %2831 = vst [vmem:[%s5241_s3 + $0x638] sm:$0xff] %v2575_v53  ;;  %v2445_v58 = vmax.f32 %v1629_v54, 0.0  ;;  %v2573_v59 = vmax.f32 %v2141_v55, 0.0  ;;  %v1650_v60 = vadd.f32 %v4673_v32, %v3359_v56  ;;  %v2162_v61 = vadd.f32 %v4673_v32, %v3487_v57 }
 0x15c   :  { %v1641_v62 = vpop.f32.mrf.mxu0  ;;  %v2153_v63 = vpop.f32.mrf.mxu1 }
 0x15d   :  { %2701 = vst [vmem:[%s5241_s3 + $0x228] sm:$0xff] %v2445_v58  ;;  %2829 = vst [vmem:[%s5241_s3 + $0x628] sm:$0xff] %v2573_v59  ;;  %v2450_v0 = vmax.f32 %v1650_v60, 0.0  ;;  %v2578_v1 = vmax.f32 %v2162_v61, 0.0  ;;  %v1642_v2 = vadd.f32 %v4673_v32, %v1641_v62  ;;  %v2154_v3 = vadd.f32 %v4673_v32, %v2153_v63 }
 0x15e   :  { %v3360_v4 = vpop.f32.mrf.mxu0  ;;  %v3488_v5 = vpop.f32.mrf.mxu1 }
 0x15f   :  { %2706 = vst [vmem:[%s5241_s3 + $0x250] sm:$0xff] %v2450_v0  ;;  %2834 = vst [vmem:[%s5241_s3 + $0x650] sm:$0xff] %v2578_v1  ;;  %v2448_v6 = vmax.f32 %v1642_v2, 0.0  ;;  %v2576_v7 = vmax.f32 %v2154_v3, 0.0  ;;  %v1653_v8 = vadd.f32 %v4673_v32, %v3360_v4  ;;  %v2165_v9 = vadd.f32 %v4673_v32, %v3488_v5 }
 0x160   :  { %v1644_v10 = vpop.f32.mrf.mxu0  ;;  %v2156_v11 = vpop.f32.mrf.mxu1 }
 0x161   :  { %2704 = vst [vmem:[%s5241_s3 + $0x240] sm:$0xff] %v2448_v6  ;;  %2832 = vst [vmem:[%s5241_s3 + $0x640] sm:$0xff] %v2576_v7  ;;  %v2451_v12 = vmax.f32 %v1653_v8, 0.0  ;;  %v2579_v13 = vmax.f32 %v2165_v9, 0.0  ;;  %v1645_v14 = vadd.f32 %v4673_v32, %v1644_v10  ;;  %v2157_v15 = vadd.f32 %v4673_v32, %v2156_v11 }
 0x162   :  { %v3363_v16 = vpop.f32.mrf.mxu0  ;;  %v3491_v17 = vpop.f32.mrf.mxu1 }
 0x163   :  { %2707 = vst [vmem:[%s5241_s3 + $0x258] sm:$0xff] %v2451_v12  ;;  %2835 = vst [vmem:[%s5241_s3 + $0x658] sm:$0xff] %v2579_v13  ;;  %v2449_v18 = vmax.f32 %v1645_v14, 0.0  ;;  %v2577_v19 = vmax.f32 %v2157_v15, 0.0  ;;  %v1666_v20 = vadd.f32 %v4673_v32, %v3363_v16  ;;  %v2178_v21 = vadd.f32 %v4673_v32, %v3491_v17 }
 0x164   :  { %v1657_v22 = vpop.f32.mrf.mxu0  ;;  %v2169_v23 = vpop.f32.mrf.mxu1 }
 0x165   :  { %2705 = vst [vmem:[%s5241_s3 + $0x248] sm:$0xff] %v2449_v18  ;;  %2833 = vst [vmem:[%s5241_s3 + $0x648] sm:$0xff] %v2577_v19  ;;  %v2454_v24 = vmax.f32 %v1666_v20, 0.0  ;;  %v2582_v25 = vmax.f32 %v2178_v21, 0.0  ;;  %v1658_v26 = vadd.f32 %v4673_v32, %v1657_v22  ;;  %v2170_v27 = vadd.f32 %v4673_v32, %v2169_v23 }
 0x166   :  { %v3364_v28 = vpop.f32.mrf.mxu0  ;;  %v3492_v29 = vpop.f32.mrf.mxu1 }
 0x167   :  { %2710 = vst [vmem:[%s5241_s3 + $0x270] sm:$0xff] %v2454_v24  ;;  %2838 = vst [vmem:[%s5241_s3 + $0x670] sm:$0xff] %v2582_v25  ;;  %v2452_v30 = vmax.f32 %v1658_v26, 0.0  ;;  %v2580_v31 = vmax.f32 %v2170_v27, 0.0  ;;  %v1669_v33 = vadd.f32 %v4673_v32, %v3364_v28  ;;  %v2181_v40 = vadd.f32 %v4673_v32, %v3492_v29 }
 0x168   :  { %v1660_v34 = vpop.f32.mrf.mxu0  ;;  %v2172_v35 = vpop.f32.mrf.mxu1 }
 0x169   :  { %2708 = vst [vmem:[%s5241_s3 + $0x260] sm:$0xff] %v2452_v30  ;;  %2836 = vst [vmem:[%s5241_s3 + $0x660] sm:$0xff] %v2580_v31  ;;  %v2455_v36 = vmax.f32 %v1669_v33, 0.0  ;;  %v2583_v37 = vmax.f32 %v2181_v40, 0.0  ;;  %v1661_v38 = vadd.f32 %v4673_v32, %v1660_v34  ;;  %v2173_v39 = vadd.f32 %v4673_v32, %v2172_v35 }
 0x16a   :  { %v3367_v41 = vpop.f32.mrf.mxu0  ;;  %v3495_v42 = vpop.f32.mrf.mxu1 }
 0x16b   :  { %2711 = vst [vmem:[%s5241_s3 + $0x278] sm:$0xff] %v2455_v36  ;;  %2839 = vst [vmem:[%s5241_s3 + $0x678] sm:$0xff] %v2583_v37  ;;  %v2453_v43 = vmax.f32 %v1661_v38, 0.0  ;;  %v2581_v44 = vmax.f32 %v2173_v39, 0.0  ;;  %v1682_v45 = vadd.f32 %v4673_v32, %v3367_v41  ;;  %v2194_v46 = vadd.f32 %v4673_v32, %v3495_v42 }
 0x16c   :  { %v1673_v47 = vpop.f32.mrf.mxu0  ;;  %v2185_v48 = vpop.f32.mrf.mxu1 }
 0x16d   :  { %2709 = vst [vmem:[%s5241_s3 + $0x268] sm:$0xff] %v2453_v43  ;;  %2837 = vst [vmem:[%s5241_s3 + $0x668] sm:$0xff] %v2581_v44  ;;  %v2458_v49 = vmax.f32 %v1682_v45, 0.0  ;;  %v2586_v50 = vmax.f32 %v2194_v46, 0.0  ;;  %v1674_v51 = vadd.f32 %v4673_v32, %v1673_v47  ;;  %v2186_v52 = vadd.f32 %v4673_v32, %v2185_v48 }
 0x16e   :  { %v3368_v53 = vpop.f32.mrf.mxu0  ;;  %v3496_v54 = vpop.f32.mrf.mxu1 }
 0x16f   :  { %2714 = vst [vmem:[%s5241_s3 + $0x290] sm:$0xff] %v2458_v49  ;;  %2842 = vst [vmem:[%s5241_s3 + $0x690] sm:$0xff] %v2586_v50  ;;  %v2456_v55 = vmax.f32 %v1674_v51, 0.0  ;;  %v2584_v56 = vmax.f32 %v2186_v52, 0.0  ;;  %v1685_v57 = vadd.f32 %v4673_v32, %v3368_v53  ;;  %v2197_v58 = vadd.f32 %v4673_v32, %v3496_v54 }
 0x170   :  { %v1676_v59 = vpop.f32.mrf.mxu0  ;;  %v2188_v60 = vpop.f32.mrf.mxu1 }
 0x171   :  { %2712 = vst [vmem:[%s5241_s3 + $0x280] sm:$0xff] %v2456_v55  ;;  %2840 = vst [vmem:[%s5241_s3 + $0x680] sm:$0xff] %v2584_v56  ;;  %v2459_v61 = vmax.f32 %v1685_v57, 0.0  ;;  %v2587_v62 = vmax.f32 %v2197_v58, 0.0  ;;  %v1677_v63 = vadd.f32 %v4673_v32, %v1676_v59  ;;  %v2189_v0 = vadd.f32 %v4673_v32, %v2188_v60 }
 0x172   :  { %v3371_v1 = vpop.f32.mrf.mxu0  ;;  %v3499_v2 = vpop.f32.mrf.mxu1 }
 0x173   :  { %2715 = vst [vmem:[%s5241_s3 + $0x298] sm:$0xff] %v2459_v61  ;;  %2843 = vst [vmem:[%s5241_s3 + $0x698] sm:$0xff] %v2587_v62  ;;  %v2457_v3 = vmax.f32 %v1677_v63, 0.0  ;;  %v2585_v4 = vmax.f32 %v2189_v0, 0.0  ;;  %v1698_v5 = vadd.f32 %v4673_v32, %v3371_v1  ;;  %v2210_v6 = vadd.f32 %v4673_v32, %v3499_v2 }
 0x174   :  { %v1689_v7 = vpop.f32.mrf.mxu0  ;;  %v2201_v8 = vpop.f32.mrf.mxu1 }
 0x175   :  { %2713 = vst [vmem:[%s5241_s3 + $0x288] sm:$0xff] %v2457_v3  ;;  %2841 = vst [vmem:[%s5241_s3 + $0x688] sm:$0xff] %v2585_v4  ;;  %v2462_v9 = vmax.f32 %v1698_v5, 0.0  ;;  %v2590_v10 = vmax.f32 %v2210_v6, 0.0  ;;  %v1690_v11 = vadd.f32 %v4673_v32, %v1689_v7  ;;  %v2202_v12 = vadd.f32 %v4673_v32, %v2201_v8 }
 0x176   :  { %v3372_v13 = vpop.f32.mrf.mxu0  ;;  %v3500_v14 = vpop.f32.mrf.mxu1 }
 0x177   :  { %2718 = vst [vmem:[%s5241_s3 + $0x2b0] sm:$0xff] %v2462_v9  ;;  %2846 = vst [vmem:[%s5241_s3 + $0x6b0] sm:$0xff] %v2590_v10  ;;  %v2460_v15 = vmax.f32 %v1690_v11, 0.0  ;;  %v2588_v16 = vmax.f32 %v2202_v12, 0.0  ;;  %v1701_v17 = vadd.f32 %v4673_v32, %v3372_v13  ;;  %v2213_v18 = vadd.f32 %v4673_v32, %v3500_v14 }
 0x178   :  { %v1692_v19 = vpop.f32.mrf.mxu0  ;;  %v2204_v20 = vpop.f32.mrf.mxu1 }
 0x179   :  { %2716 = vst [vmem:[%s5241_s3 + $0x2a0] sm:$0xff] %v2460_v15  ;;  %2844 = vst [vmem:[%s5241_s3 + $0x6a0] sm:$0xff] %v2588_v16  ;;  %v2463_v21 = vmax.f32 %v1701_v17, 0.0  ;;  %v2591_v22 = vmax.f32 %v2213_v18, 0.0  ;;  %v1693_v23 = vadd.f32 %v4673_v32, %v1692_v19  ;;  %v2205_v24 = vadd.f32 %v4673_v32, %v2204_v20 }
 0x17a   :  { %v3375_v25 = vpop.f32.mrf.mxu0  ;;  %v3503_v26 = vpop.f32.mrf.mxu1 }
 0x17b   :  { %2719 = vst [vmem:[%s5241_s3 + $0x2b8] sm:$0xff] %v2463_v21  ;;  %2847 = vst [vmem:[%s5241_s3 + $0x6b8] sm:$0xff] %v2591_v22  ;;  %v2461_v27 = vmax.f32 %v1693_v23, 0.0  ;;  %v2589_v28 = vmax.f32 %v2205_v24, 0.0  ;;  %v1714_v29 = vadd.f32 %v4673_v32, %v3375_v25  ;;  %v2226_v30 = vadd.f32 %v4673_v32, %v3503_v26 }
 0x17c   :  { %v1705_v31 = vpop.f32.mrf.mxu0  ;;  %v2217_v33 = vpop.f32.mrf.mxu1 }
 0x17d   :  { %2717 = vst [vmem:[%s5241_s3 + $0x2a8] sm:$0xff] %v2461_v27  ;;  %2845 = vst [vmem:[%s5241_s3 + $0x6a8] sm:$0xff] %v2589_v28  ;;  %v2466_v40 = vmax.f32 %v1714_v29, 0.0  ;;  %v2594_v34 = vmax.f32 %v2226_v30, 0.0  ;;  %v1706_v35 = vadd.f32 %v4673_v32, %v1705_v31  ;;  %v2218_v36 = vadd.f32 %v4673_v32, %v2217_v33 }
 0x17e   :  { %v3376_v37 = vpop.f32.mrf.mxu0  ;;  %v3504_v38 = vpop.f32.mrf.mxu1 }
 0x17f   :  { %2722 = vst [vmem:[%s5241_s3 + $0x2d0] sm:$0xff] %v2466_v40  ;;  %2850 = vst [vmem:[%s5241_s3 + $0x6d0] sm:$0xff] %v2594_v34  ;;  %v2464_v39 = vmax.f32 %v1706_v35, 0.0  ;;  %v2592_v41 = vmax.f32 %v2218_v36, 0.0  ;;  %v1717_v42 = vadd.f32 %v4673_v32, %v3376_v37  ;;  %v2229_v43 = vadd.f32 %v4673_v32, %v3504_v38 }
 0x180   :  { %v1708_v44 = vpop.f32.mrf.mxu0  ;;  %v2220_v45 = vpop.f32.mrf.mxu1 }
 0x181   :  { %2720 = vst [vmem:[%s5241_s3 + $0x2c0] sm:$0xff] %v2464_v39  ;;  %2848 = vst [vmem:[%s5241_s3 + $0x6c0] sm:$0xff] %v2592_v41  ;;  %v2467_v46 = vmax.f32 %v1717_v42, 0.0  ;;  %v2595_v47 = vmax.f32 %v2229_v43, 0.0  ;;  %v1709_v48 = vadd.f32 %v4673_v32, %v1708_v44  ;;  %v2221_v49 = vadd.f32 %v4673_v32, %v2220_v45 }
 0x182   :  { %v3379_v50 = vpop.f32.mrf.mxu0  ;;  %v3507_v51 = vpop.f32.mrf.mxu1 }
 0x183   :  { %2723 = vst [vmem:[%s5241_s3 + $0x2d8] sm:$0xff] %v2467_v46  ;;  %2851 = vst [vmem:[%s5241_s3 + $0x6d8] sm:$0xff] %v2595_v47  ;;  %v2465_v52 = vmax.f32 %v1709_v48, 0.0  ;;  %v2593_v53 = vmax.f32 %v2221_v49, 0.0  ;;  %v1730_v54 = vadd.f32 %v4673_v32, %v3379_v50  ;;  %v2242_v55 = vadd.f32 %v4673_v32, %v3507_v51 }
 0x184   :  { %v1721_v56 = vpop.f32.mrf.mxu0  ;;  %v2233_v57 = vpop.f32.mrf.mxu1 }
 0x185   :  { %2721 = vst [vmem:[%s5241_s3 + $0x2c8] sm:$0xff] %v2465_v52  ;;  %2849 = vst [vmem:[%s5241_s3 + $0x6c8] sm:$0xff] %v2593_v53  ;;  %v2470_v58 = vmax.f32 %v1730_v54, 0.0  ;;  %v2598_v59 = vmax.f32 %v2242_v55, 0.0  ;;  %v1722_v60 = vadd.f32 %v4673_v32, %v1721_v56  ;;  %v2234_v61 = vadd.f32 %v4673_v32, %v2233_v57 }
 0x186   :  { %v3380_v62 = vpop.f32.mrf.mxu0  ;;  %v3508_v63 = vpop.f32.mrf.mxu1 }
 0x187   :  { %2726 = vst [vmem:[%s5241_s3 + $0x2f0] sm:$0xff] %v2470_v58  ;;  %2854 = vst [vmem:[%s5241_s3 + $0x6f0] sm:$0xff] %v2598_v59  ;;  %v2468_v0 = vmax.f32 %v1722_v60, 0.0  ;;  %v2596_v1 = vmax.f32 %v2234_v61, 0.0  ;;  %v1733_v2 = vadd.f32 %v4673_v32, %v3380_v62  ;;  %v2245_v3 = vadd.f32 %v4673_v32, %v3508_v63 }
 0x188   :  { %v1724_v4 = vpop.f32.mrf.mxu0  ;;  %v2236_v5 = vpop.f32.mrf.mxu1 }
 0x189   :  { %2724 = vst [vmem:[%s5241_s3 + $0x2e0] sm:$0xff] %v2468_v0  ;;  %2852 = vst [vmem:[%s5241_s3 + $0x6e0] sm:$0xff] %v2596_v1  ;;  %v2471_v6 = vmax.f32 %v1733_v2, 0.0  ;;  %v2599_v7 = vmax.f32 %v2245_v3, 0.0  ;;  %v1725_v8 = vadd.f32 %v4673_v32, %v1724_v4  ;;  %v2237_v9 = vadd.f32 %v4673_v32, %v2236_v5 }
 0x18a   :  { %v3383_v10 = vpop.f32.mrf.mxu0  ;;  %v3511_v11 = vpop.f32.mrf.mxu1 }
 0x18b   :  { %2727 = vst [vmem:[%s5241_s3 + $0x2f8] sm:$0xff] %v2471_v6  ;;  %2855 = vst [vmem:[%s5241_s3 + $0x6f8] sm:$0xff] %v2599_v7  ;;  %v2469_v12 = vmax.f32 %v1725_v8, 0.0  ;;  %v2597_v13 = vmax.f32 %v2237_v9, 0.0  ;;  %v1746_v14 = vadd.f32 %v4673_v32, %v3383_v10  ;;  %v2258_v15 = vadd.f32 %v4673_v32, %v3511_v11 }
 0x18c   :  { %v1737_v16 = vpop.f32.mrf.mxu0  ;;  %v2249_v17 = vpop.f32.mrf.mxu1 }
 0x18d   :  { %2725 = vst [vmem:[%s5241_s3 + $0x2e8] sm:$0xff] %v2469_v12  ;;  %2853 = vst [vmem:[%s5241_s3 + $0x6e8] sm:$0xff] %v2597_v13  ;;  %v2474_v18 = vmax.f32 %v1746_v14, 0.0  ;;  %v2602_v19 = vmax.f32 %v2258_v15, 0.0  ;;  %v1738_v20 = vadd.f32 %v4673_v32, %v1737_v16  ;;  %v2250_v21 = vadd.f32 %v4673_v32, %v2249_v17 }
 0x18e   :  { %v3384_v22 = vpop.f32.mrf.mxu0  ;;  %v3512_v23 = vpop.f32.mrf.mxu1 }
 0x18f   :  { %2730 = vst [vmem:[%s5241_s3 + $0x310] sm:$0xff] %v2474_v18  ;;  %2858 = vst [vmem:[%s5241_s3 + $0x710] sm:$0xff] %v2602_v19  ;;  %v2472_v24 = vmax.f32 %v1738_v20, 0.0  ;;  %v2600_v25 = vmax.f32 %v2250_v21, 0.0  ;;  %v1749_v26 = vadd.f32 %v4673_v32, %v3384_v22  ;;  %v2261_v27 = vadd.f32 %v4673_v32, %v3512_v23 }
 0x190   :  { %v1740_v28 = vpop.f32.mrf.mxu0  ;;  %v2252_v29 = vpop.f32.mrf.mxu1 }
 0x191   :  { %2728 = vst [vmem:[%s5241_s3 + $0x300] sm:$0xff] %v2472_v24  ;;  %2856 = vst [vmem:[%s5241_s3 + $0x700] sm:$0xff] %v2600_v25  ;;  %v2475_v30 = vmax.f32 %v1749_v26, 0.0  ;;  %v2603_v31 = vmax.f32 %v2261_v27, 0.0  ;;  %v1741_v33 = vadd.f32 %v4673_v32, %v1740_v28  ;;  %v2253_v40 = vadd.f32 %v4673_v32, %v2252_v29 }
 0x192   :  { %v3387_v34 = vpop.f32.mrf.mxu0  ;;  %v3515_v35 = vpop.f32.mrf.mxu1 }
 0x193   :  { %2731 = vst [vmem:[%s5241_s3 + $0x318] sm:$0xff] %v2475_v30  ;;  %2859 = vst [vmem:[%s5241_s3 + $0x718] sm:$0xff] %v2603_v31  ;;  %v2473_v36 = vmax.f32 %v1741_v33, 0.0  ;;  %v2601_v37 = vmax.f32 %v2253_v40, 0.0  ;;  %v1762_v38 = vadd.f32 %v4673_v32, %v3387_v34  ;;  %v2274_v39 = vadd.f32 %v4673_v32, %v3515_v35 }
 0x194   :  { %v1753_v41 = vpop.f32.mrf.mxu0  ;;  %v2265_v42 = vpop.f32.mrf.mxu1 }
 0x195   :  { %2729 = vst [vmem:[%s5241_s3 + $0x308] sm:$0xff] %v2473_v36  ;;  %2857 = vst [vmem:[%s5241_s3 + $0x708] sm:$0xff] %v2601_v37  ;;  %v2478_v43 = vmax.f32 %v1762_v38, 0.0  ;;  %v2606_v44 = vmax.f32 %v2274_v39, 0.0  ;;  %v1754_v45 = vadd.f32 %v4673_v32, %v1753_v41  ;;  %v2266_v46 = vadd.f32 %v4673_v32, %v2265_v42 }
 0x196   :  { %v3388_v47 = vpop.f32.mrf.mxu0  ;;  %v3516_v48 = vpop.f32.mrf.mxu1 }
 0x197   :  { %2734 = vst [vmem:[%s5241_s3 + $0x330] sm:$0xff] %v2478_v43  ;;  %2862 = vst [vmem:[%s5241_s3 + $0x730] sm:$0xff] %v2606_v44  ;;  %v2476_v49 = vmax.f32 %v1754_v45, 0.0  ;;  %v2604_v50 = vmax.f32 %v2266_v46, 0.0  ;;  %v1765_v51 = vadd.f32 %v4673_v32, %v3388_v47  ;;  %v2277_v52 = vadd.f32 %v4673_v32, %v3516_v48 }
 0x198   :  { %v1756_v53 = vpop.f32.mrf.mxu0  ;;  %v2268_v54 = vpop.f32.mrf.mxu1 }
 0x199   :  { %2732 = vst [vmem:[%s5241_s3 + $0x320] sm:$0xff] %v2476_v49  ;;  %2860 = vst [vmem:[%s5241_s3 + $0x720] sm:$0xff] %v2604_v50  ;;  %v2479_v55 = vmax.f32 %v1765_v51, 0.0  ;;  %v2607_v56 = vmax.f32 %v2277_v52, 0.0  ;;  %v1757_v57 = vadd.f32 %v4673_v32, %v1756_v53  ;;  %v2269_v58 = vadd.f32 %v4673_v32, %v2268_v54 }
 0x19a   :  { %v3391_v59 = vpop.f32.mrf.mxu0  ;;  %v3519_v60 = vpop.f32.mrf.mxu1 }
 0x19b   :  { %2735 = vst [vmem:[%s5241_s3 + $0x338] sm:$0xff] %v2479_v55  ;;  %2863 = vst [vmem:[%s5241_s3 + $0x738] sm:$0xff] %v2607_v56  ;;  %v2477_v61 = vmax.f32 %v1757_v57, 0.0  ;;  %v2605_v62 = vmax.f32 %v2269_v58, 0.0  ;;  %v1778_v63 = vadd.f32 %v4673_v32, %v3391_v59  ;;  %v2290_v0 = vadd.f32 %v4673_v32, %v3519_v60 }
 0x19c   :  { %v1769_v1 = vpop.f32.mrf.mxu0  ;;  %v2281_v2 = vpop.f32.mrf.mxu1 }
 0x19d   :  { %2733 = vst [vmem:[%s5241_s3 + $0x328] sm:$0xff] %v2477_v61  ;;  %2861 = vst [vmem:[%s5241_s3 + $0x728] sm:$0xff] %v2605_v62  ;;  %v2482_v3 = vmax.f32 %v1778_v63, 0.0  ;;  %v2610_v4 = vmax.f32 %v2290_v0, 0.0  ;;  %v1770_v5 = vadd.f32 %v4673_v32, %v1769_v1  ;;  %v2282_v6 = vadd.f32 %v4673_v32, %v2281_v2 }
 0x19e   :  { %v3392_v7 = vpop.f32.mrf.mxu0  ;;  %v3520_v8 = vpop.f32.mrf.mxu1 }
 0x19f   :  { %2738 = vst [vmem:[%s5241_s3 + $0x350] sm:$0xff] %v2482_v3  ;;  %2866 = vst [vmem:[%s5241_s3 + $0x750] sm:$0xff] %v2610_v4  ;;  %v2480_v9 = vmax.f32 %v1770_v5, 0.0  ;;  %v2608_v10 = vmax.f32 %v2282_v6, 0.0  ;;  %v1781_v11 = vadd.f32 %v4673_v32, %v3392_v7  ;;  %v2293_v12 = vadd.f32 %v4673_v32, %v3520_v8 }
 0x1a0   :  { %v1772_v13 = vpop.f32.mrf.mxu0  ;;  %v2284_v14 = vpop.f32.mrf.mxu1 }
 0x1a1   :  { %2736 = vst [vmem:[%s5241_s3 + $0x340] sm:$0xff] %v2480_v9  ;;  %2864 = vst [vmem:[%s5241_s3 + $0x740] sm:$0xff] %v2608_v10  ;;  %v2483_v15 = vmax.f32 %v1781_v11, 0.0  ;;  %v2611_v16 = vmax.f32 %v2293_v12, 0.0  ;;  %v1773_v17 = vadd.f32 %v4673_v32, %v1772_v13  ;;  %v2285_v18 = vadd.f32 %v4673_v32, %v2284_v14 }
 0x1a2   :  { %v3395_v19 = vpop.f32.mrf.mxu0  ;;  %v3523_v20 = vpop.f32.mrf.mxu1 }
 0x1a3   :  { %2739 = vst [vmem:[%s5241_s3 + $0x358] sm:$0xff] %v2483_v15  ;;  %2867 = vst [vmem:[%s5241_s3 + $0x758] sm:$0xff] %v2611_v16  ;;  %v2481_v21 = vmax.f32 %v1773_v17, 0.0  ;;  %v2609_v22 = vmax.f32 %v2285_v18, 0.0  ;;  %v1794_v23 = vadd.f32 %v4673_v32, %v3395_v19  ;;  %v2306_v24 = vadd.f32 %v4673_v32, %v3523_v20 }
 0x1a4   :  { %v1785_v25 = vpop.f32.mrf.mxu0  ;;  %v2297_v26 = vpop.f32.mrf.mxu1 }
 0x1a5   :  { %2737 = vst [vmem:[%s5241_s3 + $0x348] sm:$0xff] %v2481_v21  ;;  %2865 = vst [vmem:[%s5241_s3 + $0x748] sm:$0xff] %v2609_v22  ;;  %v2486_v27 = vmax.f32 %v1794_v23, 0.0  ;;  %v2614_v28 = vmax.f32 %v2306_v24, 0.0  ;;  %v1786_v29 = vadd.f32 %v4673_v32, %v1785_v25  ;;  %v2298_v30 = vadd.f32 %v4673_v32, %v2297_v26 }
 0x1a6   :  { %v3396_v31 = vpop.f32.mrf.mxu0  ;;  %v3524_v33 = vpop.f32.mrf.mxu1 }
 0x1a7   :  { %2742 = vst [vmem:[%s5241_s3 + $0x370] sm:$0xff] %v2486_v27  ;;  %2870 = vst [vmem:[%s5241_s3 + $0x770] sm:$0xff] %v2614_v28  ;;  %v2484_v40 = vmax.f32 %v1786_v29, 0.0  ;;  %v2612_v34 = vmax.f32 %v2298_v30, 0.0  ;;  %v1797_v35 = vadd.f32 %v4673_v32, %v3396_v31  ;;  %v2309_v36 = vadd.f32 %v4673_v32, %v3524_v33 }
 0x1a8   :  { %v1788_v37 = vpop.f32.mrf.mxu0  ;;  %v2300_v38 = vpop.f32.mrf.mxu1 }
 0x1a9   :  { %2740 = vst [vmem:[%s5241_s3 + $0x360] sm:$0xff] %v2484_v40  ;;  %2868 = vst [vmem:[%s5241_s3 + $0x760] sm:$0xff] %v2612_v34  ;;  %v2487_v39 = vmax.f32 %v1797_v35, 0.0  ;;  %v2615_v41 = vmax.f32 %v2309_v36, 0.0  ;;  %v1789_v42 = vadd.f32 %v4673_v32, %v1788_v37  ;;  %v2301_v43 = vadd.f32 %v4673_v32, %v2300_v38  ;;  %v3676_v38 = vld [vmem:[%s5240_s2] ss:$0 sm:$0xff] }
 0x1aa   :  { %v3399_v44 = vpop.f32.mrf.mxu0  ;;  %v3527_v45 = vpop.f32.mrf.mxu1 }
 0x1ab   :  { %2743 = vst [vmem:[%s5241_s3 + $0x378] sm:$0xff] %v2487_v39  ;;  %2871 = vst [vmem:[%s5241_s3 + $0x778] sm:$0xff] %v2615_v41  ;;  %v2485_v46 = vmax.f32 %v1789_v42, 0.0  ;;  %v2613_v47 = vmax.f32 %v2301_v43, 0.0  ;;  %v1810_v48 = vadd.f32 %v4673_v32, %v3399_v44  ;;  %v2322_v49 = vadd.f32 %v4673_v32, %v3527_v45 }
 0x1ac   :  { %v1801_v50 = vpop.f32.mrf.mxu0  ;;  %v2313_v51 = vpop.f32.mrf.mxu1 }
 0x1ad   :  { %2741 = vst [vmem:[%s5241_s3 + $0x368] sm:$0xff] %v2485_v46  ;;  %2869 = vst [vmem:[%s5241_s3 + $0x768] sm:$0xff] %v2613_v47  ;;  %v2490_v52 = vmax.f32 %v1810_v48, 0.0  ;;  %v2618_v53 = vmax.f32 %v2322_v49, 0.0  ;;  %v1802_v54 = vadd.f32 %v4673_v32, %v1801_v50  ;;  %v2314_v55 = vadd.f32 %v4673_v32, %v2313_v51 }
 0x1ae   :  { %v3400_v56 = vpop.f32.mrf.mxu0  ;;  %v3528_v57 = vpop.f32.mrf.mxu1 }
 0x1af   :  { %2746 = vst [vmem:[%s5241_s3 + $0x390] sm:$0xff] %v2490_v52  ;;  %2874 = vst [vmem:[%s5241_s3 + $0x790] sm:$0xff] %v2618_v53  ;;  %v2488_v58 = vmax.f32 %v1802_v54, 0.0  ;;  %v2616_v59 = vmax.f32 %v2314_v55, 0.0  ;;  %v1813_v60 = vadd.f32 %v4673_v32, %v3400_v56  ;;  %v2325_v61 = vadd.f32 %v4673_v32, %v3528_v57 }
 0x1b0   :  { %v1804_v62 = vpop.f32.mrf.mxu0  ;;  %v2316_v63 = vpop.f32.mrf.mxu1 }
 0x1b1   :  { %2744 = vst [vmem:[%s5241_s3 + $0x380] sm:$0xff] %v2488_v58  ;;  %2872 = vst [vmem:[%s5241_s3 + $0x780] sm:$0xff] %v2616_v59  ;;  %v2491_v0 = vmax.f32 %v1813_v60, 0.0  ;;  %v2619_v1 = vmax.f32 %v2325_v61, 0.0  ;;  %v1805_v2 = vadd.f32 %v4673_v32, %v1804_v62  ;;  %v2317_v3 = vadd.f32 %v4673_v32, %v2316_v63 }
 0x1b2   :  { %v3403_v4 = vpop.f32.mrf.mxu0  ;;  %v3531_v5 = vpop.f32.mrf.mxu1 }
 0x1b3   :  { %2747 = vst [vmem:[%s5241_s3 + $0x398] sm:$0xff] %v2491_v0  ;;  %2875 = vst [vmem:[%s5241_s3 + $0x798] sm:$0xff] %v2619_v1  ;;  %v2489_v6 = vmax.f32 %v1805_v2, 0.0  ;;  %v2617_v7 = vmax.f32 %v2317_v3, 0.0  ;;  %v1826_v8 = vadd.f32 %v4673_v32, %v3403_v4  ;;  %v2338_v9 = vadd.f32 %v4673_v32, %v3531_v5 }
 0x1b4   :  { %v1817_v10 = vpop.f32.mrf.mxu0  ;;  %v2329_v11 = vpop.f32.mrf.mxu1 }
 0x1b5   :  { %2745 = vst [vmem:[%s5241_s3 + $0x388] sm:$0xff] %v2489_v6  ;;  %2873 = vst [vmem:[%s5241_s3 + $0x788] sm:$0xff] %v2617_v7  ;;  %v2494_v12 = vmax.f32 %v1826_v8, 0.0  ;;  %v2622_v13 = vmax.f32 %v2338_v9, 0.0  ;;  %v1818_v14 = vadd.f32 %v4673_v32, %v1817_v10  ;;  %v2330_v15 = vadd.f32 %v4673_v32, %v2329_v11 }
 0x1b6   :  { %v3404_v16 = vpop.f32.mrf.mxu0  ;;  %v3532_v17 = vpop.f32.mrf.mxu1 }
 0x1b7   :  { %2750 = vst [vmem:[%s5241_s3 + $0x3b0] sm:$0xff] %v2494_v12  ;;  %2878 = vst [vmem:[%s5241_s3 + $0x7b0] sm:$0xff] %v2622_v13  ;;  %v2492_v18 = vmax.f32 %v1818_v14, 0.0  ;;  %v2620_v19 = vmax.f32 %v2330_v15, 0.0  ;;  %v1829_v20 = vadd.f32 %v4673_v32, %v3404_v16  ;;  %v2341_v21 = vadd.f32 %v4673_v32, %v3532_v17 }
 0x1b8   :  { %v1820_v22 = vpop.f32.mrf.mxu0  ;;  %v2332_v23 = vpop.f32.mrf.mxu1 }
 0x1b9   :  { %2748 = vst [vmem:[%s5241_s3 + $0x3a0] sm:$0xff] %v2492_v18  ;;  %2876 = vst [vmem:[%s5241_s3 + $0x7a0] sm:$0xff] %v2620_v19  ;;  %v2495_v24 = vmax.f32 %v1829_v20, 0.0  ;;  %v2623_v25 = vmax.f32 %v2341_v21, 0.0  ;;  %v1821_v26 = vadd.f32 %v4673_v32, %v1820_v22  ;;  %v2333_v27 = vadd.f32 %v4673_v32, %v2332_v23 }
 0x1ba   :  { %v3407_v28 = vpop.f32.mrf.mxu0  ;;  %v3535_v29 = vpop.f32.mrf.mxu1 }
 0x1bb   :  { %2751 = vst [vmem:[%s5241_s3 + $0x3b8] sm:$0xff] %v2495_v24  ;;  %2879 = vst [vmem:[%s5241_s3 + $0x7b8] sm:$0xff] %v2623_v25  ;;  %v2493_v30 = vmax.f32 %v1821_v26, 0.0  ;;  %v2621_v31 = vmax.f32 %v2333_v27, 0.0  ;;  %v1842_v33 = vadd.f32 %v4673_v32, %v3407_v28  ;;  %v2354_v40 = vadd.f32 %v4673_v32, %v3535_v29 }
 0x1bc   :  { %v1833_v34 = vpop.f32.mrf.mxu0  ;;  %v2345_v35 = vpop.f32.mrf.mxu1 }
 0x1bd   :  { %2749 = vst [vmem:[%s5241_s3 + $0x3a8] sm:$0xff] %v2493_v30  ;;  %2877 = vst [vmem:[%s5241_s3 + $0x7a8] sm:$0xff] %v2621_v31  ;;  %v2498_v36 = vmax.f32 %v1842_v33, 0.0  ;;  %v2626_v37 = vmax.f32 %v2354_v40, 0.0  ;;  %v1834_v39 = vadd.f32 %v3676_v38, %v1833_v34  ;;  %v2346_v41 = vadd.f32 %v3676_v38, %v2345_v35 }
 0x1be   :  { %v3408_v42 = vpop.f32.mrf.mxu0  ;;  %v3536_v32 = vpop.f32.mrf.mxu1 }
 0x1bf   :  { %2754 = vst [vmem:[%s5241_s3 + $0x3d0] sm:$0xff] %v2498_v36  ;;  %2882 = vst [vmem:[%s5241_s3 + $0x7d0] sm:$0xff] %v2626_v37  ;;  %v2496_v43 = vmax.f32 %v1834_v39, 0.0  ;;  %v2624_v44 = vmax.f32 %v2346_v41, 0.0  ;;  %v1845_v45 = vadd.f32 %v3676_v38, %v3408_v42  ;;  %v2357_v46 = vadd.f32 %v3676_v38, %v3536_v32 }
 0x1c0   :  { %v1836_v47 = vpop.f32.mrf.mxu0  ;;  %v2348_v48 = vpop.f32.mrf.mxu1 }
 0x1c1   :  { %2752 = vst [vmem:[%s5241_s3 + $0x3c0] sm:$0xff] %v2496_v43  ;;  %2880 = vst [vmem:[%s5241_s3 + $0x7c0] sm:$0xff] %v2624_v44  ;;  %v2499_v49 = vmax.f32 %v1845_v45, 0.0  ;;  %v2627_v50 = vmax.f32 %v2357_v46, 0.0  ;;  %v1837_v51 = vadd.f32 %v3676_v38, %v1836_v47  ;;  %v2349_v52 = vadd.f32 %v3676_v38, %v2348_v48 }
 0x1c2   :  { %v3411_v53 = vpop.f32.mrf.mxu0  ;;  %v3539_v54 = vpop.f32.mrf.mxu1 }
 0x1c3   :  { %2755 = vst [vmem:[%s5241_s3 + $0x3d8] sm:$0xff] %v2499_v49  ;;  %2883 = vst [vmem:[%s5241_s3 + $0x7d8] sm:$0xff] %v2627_v50  ;;  %v2497_v55 = vmax.f32 %v1837_v51, 0.0  ;;  %v2625_v56 = vmax.f32 %v2349_v52, 0.0  ;;  %v1858_v57 = vadd.f32 %v3676_v38, %v3411_v53  ;;  %v2370_v58 = vadd.f32 %v3676_v38, %v3539_v54 }
 0x1c4   :  { %v1849_v59 = vpop.f32.mrf.mxu0  ;;  %v2361_v60 = vpop.f32.mrf.mxu1 }
 0x1c5   :  { %2753 = vst [vmem:[%s5241_s3 + $0x3c8] sm:$0xff] %v2497_v55  ;;  %2881 = vst [vmem:[%s5241_s3 + $0x7c8] sm:$0xff] %v2625_v56  ;;  %v2502_v61 = vmax.f32 %v1858_v57, 0.0  ;;  %v2630_v62 = vmax.f32 %v2370_v58, 0.0  ;;  %v1850_v63 = vadd.f32 %v3676_v38, %v1849_v59  ;;  %v2362_v0 = vadd.f32 %v3676_v38, %v2361_v60 }
 0x1c6   :  { %v3412_v1 = vpop.f32.mrf.mxu0  ;;  %v3540_v2 = vpop.f32.mrf.mxu1 }
 0x1c7   :  { %2758 = vst [vmem:[%s5241_s3 + $0x3f0] sm:$0xff] %v2502_v61  ;;  %2886 = vst [vmem:[%s5241_s3 + $0x7f0] sm:$0xff] %v2630_v62  ;;  %v2500_v3 = vmax.f32 %v1850_v63, 0.0  ;;  %v2628_v4 = vmax.f32 %v2362_v0, 0.0  ;;  %v1861_v5 = vadd.f32 %v3676_v38, %v3412_v1  ;;  %v2373_v6 = vadd.f32 %v3676_v38, %v3540_v2 }
 0x1c8   :  { %v1852_v7 = vpop.f32.mrf.mxu0  ;;  %v2364_v8 = vpop.f32.mrf.mxu1 }
 0x1c9   :  { %2756 = vst [vmem:[%s5241_s3 + $0x3e0] sm:$0xff] %v2500_v3  ;;  %2884 = vst [vmem:[%s5241_s3 + $0x7e0] sm:$0xff] %v2628_v4  ;;  %v2503_v9 = vmax.f32 %v1861_v5, 0.0  ;;  %v2631_v10 = vmax.f32 %v2373_v6, 0.0  ;;  %v1853_v11 = vadd.f32 %v3676_v38, %v1852_v7  ;;  %v2365_v12 = vadd.f32 %v3676_v38, %v2364_v8 }
 0x1cb   :  { %2759 = vst [vmem:[%s5241_s3 + $0x3f8] sm:$0xff] %v2503_v9  ;;  %2887 = vst [vmem:[%s5241_s3 + $0x7f8] sm:$0xff] %v2631_v10  ;;  %v2501_v13 = vmax.f32 %v1853_v11, 0.0  ;;  %v2629_v14 = vmax.f32 %v2365_v12, 0.0 }
 0x1cd   :  { %2757 = vst [vmem:[%s5241_s3 + $0x3e8] sm:$0xff] %v2501_v13  ;;  %2885 = vst [vmem:[%s5241_s3 + $0x7e8] sm:$0xff] %v2629_v14 }

// kernel: cnn_forward.7
= control target key start
LH: loop header
LB: loop body
LE: loop exit
PB: predicated region body
PF: predicated region fallthrough
CT: control target
= control target key end

     0   :  { %v2009_v0 = vmov 0   ;;  %vm774_vm0 = vcmask 261120   ;;  %s2820_s1 = inlined_call_operand.vmem [shape: bf16[288,128], index: 1, kind: input, shape index: {}]   ;;  %s2821_s0 = inlined_call_operand.vmem [shape: bf16[512,288], index: 0, kind: input, shape index: {}]   ;;  %s2822_s2 = inlined_call_operand.vmem [shape: f32[1,128], index: 2, kind: input, shape index: {}]   ;;  %s2823_s3 = inlined_call_operand.vmem [shape: f32[512,128], index: 3, kind: output, shape index: {}]  }
   0x1   :  { %871 = vmatprep.subr.bf16.mxu0 %v2009_v0  ;;  %1830 = vmatprep.subr.bf16.mxu1 %v2009_v0  ;;  %v1863_v1 = vld [vmem:[%s2820_s1 + $0x38] sm:$0xff]   ;;  %v1864_v2 = vld [vmem:[%s2820_s1 + $0x30] sm:$0xff]   ;;  %v1865_v3 = vld [vmem:[%s2820_s1 + $0x28] sm:$0xff]  }
   0x2   :  { %872 = vmatpush1.bf16.msra.mxu0 %v1863_v1  ;;  %1846 = vmatpush1.bf16.msra.mxu1 %v1863_v1  ;;  %v1866_v4 = vld [vmem:[%s2820_s1 + $0x20] sm:$0xff]   ;;  %v1867_v5 = vld [vmem:[%s2820_s1 + $0x18] sm:$0xff]   ;;  %v1868_v7 = vld [vmem:[%s2820_s1 + $0x10] sm:$0xff]  }
   0x3   :  { %873 = vmatprep.subr.bf16.mxu0 %v2009_v0  ;;  %1831 = vmatprep.subr.bf16.mxu1 %v2009_v0  ;;  %v1881_v6 = vld [vmem:[%s2821_s0 + $0x4] ss:$12 sps:$4 sm:$0xff]   ;;  %v1869_v9 = vld [vmem:[%s2820_s1 + $0x8] sm:$0xff]   ;;  %v1871_v11 = vld [vmem:[%s2820_s1 + $0x78] sm:$0xff]  }
   0x4   :  { %v1884_v8 = vld [vmem:[%s2821_s0 + $0x244] ss:$12 sps:$4 sm:$0xff]   ;;  %903 = vmatprep.mubr.bf16.mxu0 %v1881_v6  ;;  %v1873_v13 = vld [vmem:[%s2820_s1 + $0x68] sm:$0xff]   ;;  %v1875_v15 = vld [vmem:[%s2820_s1 + $0x58] sm:$0xff]  }
   0x5   :  { %1095 = vmatprep.mubr.bf16.mxu1 %v1884_v8  ;;  %v1870_v10 = vld [vmem:[%s2820_s1] sm:$0xff]   ;;  %v1872_v12 = vld [vmem:[%s2820_s1 + $0x70] sm:$0xff]   ;;  %v1877_v17 = vld [vmem:[%s2820_s1 + $0x48] sm:$0xff]  }
   0x6   :  { %874 = vmatpush1.bf16.msra.mxu0 %v1864_v2  ;;  %1847 = vmatpush1.bf16.msra.mxu1 %v1864_v2  ;;  %v1874_v14 = vld [vmem:[%s2820_s1 + $0x60] sm:$0xff]   ;;  %v1876_v16 = vld [vmem:[%s2820_s1 + $0x50] sm:$0xff]   ;;  %v1885_v19 = vld [vmem:[%s2820_s1 + $0x88] sm:$0xff]  }
   0x7   :  { %875 = vmatprep.subr.bf16.mxu0 %v2009_v0  ;;  %1832 = vmatprep.subr.bf16.mxu1 %v2009_v0  ;;  %v1878_v18 = vld [vmem:[%s2820_s1 + $0x40] sm:$0xff]   ;;  %v1886_v22 = vld [vmem:[%s2821_s0 + $0x1c] ss:$12 sps:$4 sm:$0xff]   ;;  %v1898_v31 = vld [vmem:[%s2821_s0 + $0x4c] ss:$12 sps:$4 sm:$0xff]  }
   0x8   :  { %v1879_v20 = vld [vmem:[%s2821_s0] ss:$12 sps:$4 sm:$0xff]   ;;  %v1888_v23 = vld [vmem:[%s2821_s0 + $0x25c] ss:$12 sps:$4 sm:$0xff]   ;;  %v1890_v25 = vld [vmem:[%s2821_s0 + $0x18] ss:$12 sps:$4 sm:$0xff]  }
   0x9   :  { %v1882_v21 = vld [vmem:[%s2821_s0 + $0x240] ss:$12 sps:$4 sm:$0xff]   ;;  %v1891_v26 = vld [vmem:[%s2821_s0 + $0x258] ss:$12 sps:$4 sm:$0xff]   ;;  %v1896_v29 = vld [vmem:[%s2821_s0 + $0x30] ss:$12 sps:$4 sm:$0xff]  }
   0xa   :  { %876 = vmatpush1.bf16.msra.mxu0 %v1865_v3  ;;  %1848 = vmatpush1.bf16.msra.mxu1 %v1865_v3  ;;  %v1910_v24 = vld [vmem:[%s2820_s1 + $0x80] sm:$0xff]   ;;  %v1897_v30 = vld [vmem:[%s2821_s0 + $0x270] ss:$12 sps:$4 sm:$0xff]   ;;  %v1900_v32 = vld [vmem:[%s2821_s0 + $0x28c] ss:$12 sps:$4 sm:$0xff]  }
   0xb   :  { %877 = vmatprep.subr.bf16.mxu0 %v2009_v0  ;;  %1833 = vmatprep.subr.bf16.mxu1 %v2009_v0  ;;  %v1892_v27 = vld [vmem:[%s2821_s0 + $0x34] ss:$12 sps:$4 sm:$0xff]   ;;  %v1904_v35 = vld [vmem:[%s2821_s0 + $0x64] ss:$12 sps:$4 sm:$0xff]   ;;  %v1911_v39 = vld [vmem:[%s2821_s0 + $0x7c] ss:$12 sps:$4 sm:$0xff]  }
   0xc   :  { %v1894_v28 = vld [vmem:[%s2821_s0 + $0x274] ss:$12 sps:$4 sm:$0xff]   ;;  %v1906_v36 = vld [vmem:[%s2821_s0 + $0x2a4] ss:$12 sps:$4 sm:$0xff]   ;;  %v1913_v40 = vld [vmem:[%s2821_s0 + $0x2bc] ss:$12 sps:$4 sm:$0xff]  }
   0xd   :  { %v1902_v33 = vld [vmem:[%s2821_s0 + $0x48] ss:$12 sps:$4 sm:$0xff]   ;;  %v1908_v37 = vld [vmem:[%s2821_s0 + $0x60] ss:$12 sps:$4 sm:$0xff]   ;;  %v1915_v41 = vld [vmem:[%s2821_s0 + $0x78] ss:$12 sps:$4 sm:$0xff]  }
   0xe   :  { %878 = vmatpush1.bf16.msra.mxu0 %v1866_v4  ;;  %1849 = vmatpush1.bf16.msra.mxu1 %v1866_v4  ;;  %v1903_v34 = vld [vmem:[%s2821_s0 + $0x288] ss:$12 sps:$4 sm:$0xff]   ;;  %v1909_v38 = vld [vmem:[%s2821_s0 + $0x2a0] ss:$12 sps:$4 sm:$0xff]   ;;  %v1916_v42 = vld [vmem:[%s2821_s0 + $0x2b8] ss:$12 sps:$4 sm:$0xff]  }
   0xf   :  { %879 = vmatprep.subr.bf16.mxu0 %v2009_v0  ;;  %1834 = vmatprep.subr.bf16.mxu1 %v2009_v0  ;;  %v1917_v43 = vld [vmem:[%s2821_s0 + $0x94] ss:$12 sps:$4 sm:$0xff]   ;;  %v1921_v45 = vld [vmem:[%s2821_s0 + $0x90] ss:$12 sps:$4 sm:$0xff]   ;;  %v1923_v47 = vld [vmem:[%s2821_s0 + $0xac] ss:$12 sps:$4 sm:$0xff]  }
  0x10   :  { %v1919_v44 = vld [vmem:[%s2821_s0 + $0x2d4] ss:$12 sps:$4 sm:$0xff]   ;;  %v1922_v46 = vld [vmem:[%s2821_s0 + $0x2d0] ss:$12 sps:$4 sm:$0xff]   ;;  %v1925_v48 = vld [vmem:[%s2821_s0 + $0x2ec] ss:$12 sps:$4 sm:$0xff]  }
  0x11   :  { %v1927_v49 = vld [vmem:[%s2821_s0 + $0xa8] ss:$12 sps:$4 sm:$0xff]   ;;  %v1929_v51 = vld [vmem:[%s2821_s0 + $0xc4] ss:$12 sps:$4 sm:$0xff]   ;;  %v1932_v53 = vld [vmem:[%s2821_s0 + $0xc0] ss:$12 sps:$4 sm:$0xff]  }
  0x12   :  { %880 = vmatpush1.bf16.msra.mxu0 %v1867_v5  ;;  %1850 = vmatpush1.bf16.msra.mxu1 %v1867_v5  ;;  %v1928_v50 = vld [vmem:[%s2821_s0 + $0x2e8] ss:$12 sps:$4 sm:$0xff]   ;;  %v1933_v54 = vld [vmem:[%s2821_s0 + $0x20] ss:$12 sps:$4 sm:$0xff]   ;;  %v1936_v56 = vld [vmem:[%s2821_s0 + $0x38] ss:$12 sps:$4 sm:$0xff]  }
  0x13   :  { %881 = vmatprep.subr.bf16.mxu0 %v2009_v0  ;;  %1835 = vmatprep.subr.bf16.mxu1 %v2009_v0  ;;  %v1931_v52 = vld [vmem:[%s2821_s0 + $0x8] ss:$12 sps:$4 sm:$0xff]   ;;  %v1937_v57 = vld [vmem:[%s2821_s0 + $0xd8] ss:$12 sps:$4 sm:$0xff]   ;;  %v1938_v58 = vld [vmem:[%s2821_s0 + $0x50] ss:$12 sps:$4 sm:$0xff]  }
  0x14   :  { %v1934_v55 = vld [vmem:[%s2821_s0 + $0xdc] ss:$12 sps:$4 sm:$0xff]   ;;  %v1939_v59 = vld [vmem:[%s2821_s0 + $0xf4] ss:$12 sps:$4 sm:$0xff]   ;;  %v1944_v63 = vld [vmem:[%s2821_s0 + $0x10c] ss:$12 sps:$4 sm:$0xff]  }
  0x15   :  { %v1941_v60 = vld [vmem:[%s2821_s0 + $0x68] ss:$12 sps:$4 sm:$0xff]   ;;  %v1942_v61 = vld [vmem:[%s2821_s0 + $0xf0] ss:$12 sps:$4 sm:$0xff]   ;;  %v1943_v62 = vld [vmem:[%s2821_s0 + $0x80] ss:$12 sps:$4 sm:$0xff]  }
  0x16   :  { %882 = vmatpush1.bf16.msra.mxu0 %v1868_v7  ;;  %1851 = vmatpush1.bf16.msra.mxu1 %v1868_v7  ;;  %v1947_v1 = vld [vmem:[%s2821_s0 + $0x108] ss:$12 sps:$4 sm:$0xff]   ;;  %v1948_v2 = vld [vmem:[%s2821_s0 + $0xb0] ss:$12 sps:$4 sm:$0xff]   ;;  %v1952_v5 = vld [vmem:[%s2821_s0 + $0x120] ss:$12 sps:$4 sm:$0xff]  }
  0x17   :  { %883 = vmatprep.subr.bf16.mxu0 %v2009_v0  ;;  %1836 = vmatprep.subr.bf16.mxu1 %v2009_v0  ;;  %v1949_v3 = vld [vmem:[%s2821_s0 + $0x124] ss:$12 sps:$4 sm:$0xff]   ;;  %v1951_v4 = vld [vmem:[%s2821_s0 + $0xc8] ss:$12 sps:$4 sm:$0xff]   ;;  %v1953_v6 = vld [vmem:[%s2821_s0 + $0xe0] ss:$12 sps:$4 sm:$0xff]  }
  0x18   :  { %v1954_v7 = vld [vmem:[%s2821_s0 + $0x13c] ss:$12 sps:$4 sm:$0xff]   ;;  %v1956_v8 = vld [vmem:[%s2821_s0 + $0xf8] ss:$12 sps:$4 sm:$0xff]  }
  0x1a   :  { %884 = vmatpush1.bf16.msra.mxu0 %v1869_v9  ;;  %1852 = vmatpush1.bf16.msra.mxu1 %v1869_v9  ;;  %v1957_v9 = vld [vmem:[%s2821_s0 + $0x138] ss:$12 sps:$4 sm:$0xff]  }
  0x1b   :  { %885 = vmatprep.subr.bf16.mxu0 %v2009_v0  ;;  %1837 = vmatprep.subr.bf16.mxu1 %v2009_v0 }
  0x1e   :  { %886 = vmatpush1.bf16.msra.mxu0 %v1870_v10  ;;  %1853 = vmatpush1.bf16.msra.mxu1 %v1870_v10  ;;  %v1958_v10 = vld [vmem:[%s2821_s0 + $0x110] ss:$12 sps:$4 sm:$0xff]  }
  0x1f   :  { %887 = vmatprep.subr.bf16.mxu0 %v2009_v0  ;;  %1838 = vmatprep.subr.bf16.mxu1 %v2009_v0 }
  0x22   :  { %888 = vmatpush2.bf16.msra.mxu0 %v1871_v11  ;;  %1854 = vmatpush2.bf16.msra.mxu1 %v1871_v11  ;;  %v1959_v11 = vld [vmem:[%s2821_s0 + $0x154] ss:$12 sps:$4 sm:$0xff]  }
  0x23   :  { %889 = vmatprep.subr.bf16.mxu0 %v2009_v0  ;;  %1839 = vmatprep.subr.bf16.mxu1 %v2009_v0 }
  0x26   :  { %890 = vmatpush2.bf16.msra.mxu0 %v1872_v12  ;;  %1855 = vmatpush2.bf16.msra.mxu1 %v1872_v12  ;;  %v1961_v12 = vld [vmem:[%s2821_s0 + $0x128] ss:$12 sps:$4 sm:$0xff]  }
  0x27   :  { %891 = vmatprep.subr.bf16.mxu0 %v2009_v0  ;;  %1840 = vmatprep.subr.bf16.mxu1 %v2009_v0 }
  0x2a   :  { %892 = vmatpush2.bf16.msra.mxu0 %v1873_v13  ;;  %1856 = vmatpush2.bf16.msra.mxu1 %v1873_v13  ;;  %v1962_v13 = vld [vmem:[%s2821_s0 + $0x150] ss:$12 sps:$4 sm:$0xff]  }
  0x2b   :  { %893 = vmatprep.subr.bf16.mxu0 %v2009_v0  ;;  %1841 = vmatprep.subr.bf16.mxu1 %v2009_v0 }
  0x2e   :  { %894 = vmatpush2.bf16.msra.mxu0 %v1874_v14  ;;  %1857 = vmatpush2.bf16.msra.mxu1 %v1874_v14  ;;  %v1963_v14 = vld [vmem:[%s2821_s0 + $0x140] ss:$12 sps:$4 sm:$0xff]  }
  0x2f   :  { %895 = vmatprep.subr.bf16.mxu0 %v2009_v0  ;;  %1842 = vmatprep.subr.bf16.mxu1 %v2009_v0 }
  0x32   :  { %896 = vmatpush2.bf16.msra.mxu0 %v1875_v15  ;;  %1858 = vmatpush2.bf16.msra.mxu1 %v1875_v15  ;;  %v1964_v15 = vld [vmem:[%s2821_s0 + $0x16c] ss:$12 sps:$4 sm:$0xff]  }
  0x33   :  { %897 = vmatprep.subr.bf16.mxu0 %v2009_v0  ;;  %1843 = vmatprep.subr.bf16.mxu1 %v2009_v0 }
  0x36   :  { %898 = vmatpush2.bf16.msra.mxu0 %v1876_v16  ;;  %1859 = vmatpush2.bf16.msra.mxu1 %v1876_v16  ;;  %v1966_v16 = vld [vmem:[%s2821_s0 + $0x158] ss:$12 sps:$4 sm:$0xff]  }
  0x37   :  { %899 = vmatprep.subr.bf16.mxu0 %v2009_v0  ;;  %1844 = vmatprep.subr.bf16.mxu1 %v2009_v0 }
  0x3a   :  { %900 = vmatpush2.bf16.msra.mxu0 %v1877_v17  ;;  %1860 = vmatpush2.bf16.msra.mxu1 %v1877_v17  ;;  %v1967_v17 = vld [vmem:[%s2821_s0 + $0x168] ss:$12 sps:$4 sm:$0xff]  }
  0x3b   :  { %901 = vmatprep.subr.bf16.mxu0 %v2009_v0  ;;  %1845 = vmatprep.subr.bf16.mxu1 %v2009_v0  ;;  %v1946_v0 = vld [vmem:[%s2821_s0 + $0x98] ss:$12 sps:$4 sm:$0xff]  }
  0x3e   :  { %902 = vmatpush2.bf16.msra.mxu0 %v1878_v18  ;;  %1861 = vmatpush2.bf16.msra.mxu1 %v1878_v18  ;;  %v1968_v18 = vld [vmem:[%s2821_s0 + $0x170] ss:$12 sps:$4 sm:$0xff]  }
  0x3f   :  { %1762 = vmatprep.subr.bf16.mxu1 %v1885_v19 }
  0x41   :  { %904 = vmatmul.mubr.bf16.vlgmr.msra.gmra.mxu0 %v1879_v20  ;;  %1096 = vmatmul.mubr.bf16.vlgmr.msra.gmra.mxu1 %v1882_v21  ;;  %v1971_v20 = vld [vmem:[%s2821_s0 + $0x188] ss:$12 sps:$4 sm:$0xff]   ;;  %v1972_v21 = vld [vmem:[%s2821_s0 + $0x180] ss:$12 sps:$4 sm:$0xff]  }
  0x42   :  { %1763 = vmatpush3.bf16.msra.mxu1 %v1885_v19  ;;  %911 = vmatprep.mubr.bf16.mxu0 %v1886_v22  ;;  %v1969_v19 = vld [vmem:[%s2821_s0 + $0x184] ss:$12 sps:$4 sm:$0xff]   ;;  %v1973_v22 = vld [vmem:[%s2821_s0 + $0x1a0] ss:$12 sps:$4 sm:$0xff]  }
  0x43   :  { %1103 = vmatprep.mubr.bf16.mxu1 %v1888_v23  ;;  %1764 = vmatprep.subr.bf16.mxu1 %v1910_v24  ;;  %v1974_v23 = vld [vmem:[%s2821_s0 + $0x19c] ss:$12 sps:$4 sm:$0xff]  }
  0x46   :  { %1765 = vmatpush3.bf16.msra.mxu1 %v1910_v24  ;;  %v1976_v24 = vld [vmem:[%s2821_s0 + $0x1b8] ss:$12 sps:$4 sm:$0xff]  }
  0x49   :  { %912 = vmatmul.mubr.bf16.gmra.mxu0 %v1890_v25  ;;  %1104 = vmatmul.mubr.bf16.gmra.mxu1 %v1891_v26  ;;  %v1977_v25 = vld [vmem:[%s2821_s0 + $0x198] ss:$12 sps:$4 sm:$0xff]   ;;  %v1978_v26 = vld [vmem:[%s2821_s0 + $0x1d0] ss:$12 sps:$4 sm:$0xff]  }
  0x4a   :  { %919 = vmatprep.mubr.bf16.mxu0 %v1892_v27  ;;  %1111 = vmatprep.mubr.bf16.mxu1 %v1894_v28  ;;  %v1979_v27 = vld [vmem:[%s2821_s0 + $0x1b4] ss:$12 sps:$4 sm:$0xff]  }
  0x4b   :  { %v1981_v28 = vld [vmem:[%s2821_s0 + $0x1e8] ss:$12 sps:$4 sm:$0xff]  }
  0x51   :  { %920 = vmatmul.mubr.bf16.gmra.mxu0 %v1896_v29  ;;  %1112 = vmatmul.mubr.bf16.gmra.mxu1 %v1897_v30  ;;  %v1982_v29 = vld [vmem:[%s2821_s0 + $0x1b0] ss:$12 sps:$4 sm:$0xff]   ;;  %v1983_v30 = vld [vmem:[%s2821_s0 + $0x200] ss:$12 sps:$4 sm:$0xff]  }
  0x52   :  { %927 = vmatprep.mubr.bf16.mxu0 %v1898_v31  ;;  %1119 = vmatprep.mubr.bf16.mxu1 %v1900_v32  ;;  %v1984_v31 = vld [vmem:[%s2821_s0 + $0x1cc] ss:$12 sps:$4 sm:$0xff]  }
  0x53   :  { %v1986_v32 = vld [vmem:[%s2821_s0 + $0x218] ss:$12 sps:$4 sm:$0xff]  }
  0x59   :  { %928 = vmatmul.mubr.bf16.gmra.mxu0 %v1902_v33  ;;  %1120 = vmatmul.mubr.bf16.gmra.mxu1 %v1903_v34  ;;  %v1987_v33 = vld [vmem:[%s2821_s0 + $0x1c8] ss:$12 sps:$4 sm:$0xff]   ;;  %v1988_v34 = vld [vmem:[%s2821_s0 + $0x230] ss:$12 sps:$4 sm:$0xff]  }
  0x5a   :  { %935 = vmatprep.mubr.bf16.mxu0 %v1904_v35  ;;  %1127 = vmatprep.mubr.bf16.mxu1 %v1906_v36  ;;  %v1989_v35 = vld [vmem:[%s2821_s0 + $0x1e4] ss:$12 sps:$4 sm:$0xff]   ;;  %v1991_v36 = vld [vmem:[%s2821_s0 + $0x248] ss:$12 sps:$4 sm:$0xff]  }
  0x61   :  { %936 = vmatmul.mubr.bf16.gmra.mxu0 %v1908_v37  ;;  %1128 = vmatmul.mubr.bf16.gmra.mxu1 %v1909_v38  ;;  %v1992_v37 = vld [vmem:[%s2821_s0 + $0x1e0] ss:$12 sps:$4 sm:$0xff]  }
  0x62   :  { %943 = vmatprep.mubr.bf16.mxu0 %v1911_v39  ;;  %1135 = vmatprep.mubr.bf16.mxu1 %v1913_v40  ;;  %v1993_v38 = vld [vmem:[%s2821_s0 + $0x260] ss:$12 sps:$4 sm:$0xff]   ;;  %v1994_v39 = vld [vmem:[%s2821_s0 + $0x1fc] ss:$12 sps:$4 sm:$0xff]   ;;  %v1996_v40 = vld [vmem:[%s2821_s0 + $0x278] ss:$12 sps:$4 sm:$0xff]  }
  0x69   :  { %944 = vmatmul.mubr.bf16.gmra.mxu0 %v1915_v41  ;;  %1136 = vmatmul.mubr.bf16.gmra.mxu1 %v1916_v42  ;;  %v1997_v41 = vld [vmem:[%s2821_s0 + $0x1f8] ss:$12 sps:$4 sm:$0xff]   ;;  %v1998_v42 = vld [vmem:[%s2821_s0 + $0x290] ss:$12 sps:$4 sm:$0xff]  }
  0x6a   :  { %951 = vmatprep.mubr.bf16.mxu0 %v1917_v43  ;;  %1143 = vmatprep.mubr.bf16.mxu1 %v1919_v44  ;;  %v1999_v43 = vld [vmem:[%s2821_s0 + $0x214] ss:$12 sps:$4 sm:$0xff]  }
  0x6b   :  { %v2001_v44 = vld [vmem:[%s2821_s0 + $0x2a8] ss:$12 sps:$4 sm:$0xff]  }
  0x71   :  { %952 = vmatmul.mubr.bf16.gmra.mxu0 %v1921_v45  ;;  %1144 = vmatmul.mubr.bf16.gmra.mxu1 %v1922_v46  ;;  %v2002_v45 = vld [vmem:[%s2821_s0 + $0x210] ss:$12 sps:$4 sm:$0xff]   ;;  %v2003_v46 = vld [vmem:[%s2821_s0 + $0x2c0] ss:$12 sps:$4 sm:$0xff]  }
  0x72   :  { %959 = vmatprep.mubr.bf16.mxu0 %v1923_v47  ;;  %1151 = vmatprep.mubr.bf16.mxu1 %v1925_v48  ;;  %v2004_v47 = vld [vmem:[%s2821_s0 + $0x22c] ss:$12 sps:$4 sm:$0xff]  }
  0x73   :  { %v2006_v48 = vld [vmem:[%s2821_s0 + $0x2d8] ss:$12 sps:$4 sm:$0xff]  }
  0x79   :  { %960 = vmatmul.mubr.bf16.gmra.mxu0 %v1927_v49  ;;  %1152 = vmatmul.mubr.bf16.gmra.mxu1 %v1928_v50  ;;  %v2007_v49 = vld [vmem:[%s2821_s0 + $0x228] ss:$12 sps:$4 sm:$0xff]   ;;  %v2008_v50 = vld [vmem:[%s2821_s0 + $0x2f0] ss:$12 sps:$4 sm:$0xff]  }
  0x7a   :  { %967 = vmatprep.mubr.bf16.mxu0 %v1929_v51  ;;  %1766 = vmatprep.mubr.msk.bf16.mxu1 %vm774_vm0, %v1931_v52 }
  0x81   :  { %968 = vmatmul.mubr.bf16.gmra.mxu0 %v1932_v53  ;;  %1767 = vmatmul.mubr.msk.bf16.vlgmr.msra.gmra.mxu1 %vm774_vm0, %v1933_v54 }
  0x82   :  { %975 = vmatprep.mubr.bf16.mxu0 %v1934_v55  ;;  %1770 = vmatprep.mubr.msk.bf16.mxu1 %vm774_vm0, %v1936_v56 }
  0x89   :  { %976 = vmatmul.mubr.bf16.gmra.mxu0 %v1937_v57  ;;  %1771 = vmatmul.mubr.msk.bf16.gmra.mxu1 %vm774_vm0, %v1938_v58 }
  0x8a   :  { %983 = vmatprep.mubr.bf16.mxu0 %v1939_v59  ;;  %1774 = vmatprep.mubr.msk.bf16.mxu1 %vm774_vm0, %v1941_v60 }
  0x91   :  { %984 = vmatmul.mubr.bf16.gmra.mxu0 %v1942_v61  ;;  %1775 = vmatmul.mubr.msk.bf16.gmra.mxu1 %vm774_vm0, %v1943_v62 }
  0x92   :  { %991 = vmatprep.mubr.bf16.mxu0 %v1944_v63  ;;  %1778 = vmatprep.mubr.msk.bf16.mxu1 %vm774_vm0, %v1946_v0 }
  0x99   :  { %992 = vmatmul.mubr.bf16.gmra.mxu0 %v1947_v1  ;;  %1779 = vmatmul.mubr.msk.bf16.gmra.mxu1 %vm774_vm0, %v1948_v2 }
  0x9a   :  { %999 = vmatprep.mubr.bf16.mxu0 %v1949_v3  ;;  %1782 = vmatprep.mubr.msk.bf16.mxu1 %vm774_vm0, %v1951_v4 }
  0xa1   :  { %1000 = vmatmul.mubr.bf16.gmra.mxu0 %v1952_v5  ;;  %1783 = vmatmul.mubr.msk.bf16.gmra.mxu1 %vm774_vm0, %v1953_v6 }
  0xa2   :  { %1007 = vmatprep.mubr.bf16.mxu0 %v1954_v7  ;;  %1786 = vmatprep.mubr.msk.bf16.mxu1 %vm774_vm0, %v1956_v8 }
  0xa9   :  { %1008 = vmatmul.mubr.bf16.gmra.mxu0 %v1957_v9  ;;  %1787 = vmatmul.mubr.msk.bf16.gmra.mxu1 %vm774_vm0, %v1958_v10 }
  0xaa   :  { %1015 = vmatprep.mubr.bf16.mxu0 %v1959_v11  ;;  %1790 = vmatprep.mubr.msk.bf16.mxu1 %vm774_vm0, %v1961_v12 }
  0xb1   :  { %1016 = vmatmul.mubr.bf16.gmra.mxu0 %v1962_v13  ;;  %1791 = vmatmul.mubr.msk.bf16.gmra.mxu1 %vm774_vm0, %v1963_v14 }
  0xb2   :  { %1023 = vmatprep.mubr.bf16.mxu0 %v1964_v15  ;;  %1794 = vmatprep.mubr.msk.bf16.mxu1 %vm774_vm0, %v1966_v16 }
  0xb9   :  { %1024 = vmatmul.mubr.bf16.gmra.mxu0 %v1967_v17  ;;  %1795 = vmatmul.mubr.msk.bf16.gmra.mxu1 %vm774_vm0, %v1968_v18 }
  0xba   :  { %1031 = vmatprep.mubr.bf16.mxu0 %v1969_v19  ;;  %1798 = vmatprep.mubr.msk.bf16.mxu1 %vm774_vm0, %v1971_v20 }
  0xc1   :  { %1032 = vmatmul.mubr.bf16.gmra.mxu0 %v1972_v21  ;;  %1799 = vmatmul.mubr.msk.bf16.gmra.mxu1 %vm774_vm0, %v1973_v22 }
  0xc2   :  { %1039 = vmatprep.mubr.bf16.mxu0 %v1974_v23  ;;  %1802 = vmatprep.mubr.msk.bf16.mxu1 %vm774_vm0, %v1976_v24 }
  0xc9   :  { %1040 = vmatmul.mubr.bf16.gmra.mxu0 %v1977_v25  ;;  %1803 = vmatmul.mubr.msk.bf16.gmra.mxu1 %vm774_vm0, %v1978_v26 }
  0xca   :  { %1047 = vmatprep.mubr.bf16.mxu0 %v1979_v27  ;;  %1806 = vmatprep.mubr.msk.bf16.mxu1 %vm774_vm0, %v1981_v28 }
  0xd1   :  { %1048 = vmatmul.mubr.bf16.gmra.mxu0 %v1982_v29  ;;  %1807 = vmatmul.mubr.msk.bf16.gmra.mxu1 %vm774_vm0, %v1983_v30 }
  0xd2   :  { %1055 = vmatprep.mubr.bf16.mxu0 %v1984_v31  ;;  %1810 = vmatprep.mubr.msk.bf16.mxu1 %vm774_vm0, %v1986_v32 }
  0xd9   :  { %1056 = vmatmul.mubr.bf16.gmra.mxu0 %v1987_v33  ;;  %1811 = vmatmul.mubr.msk.bf16.gmra.mxu1 %vm774_vm0, %v1988_v34 }
  0xda   :  { %1063 = vmatprep.mubr.bf16.mxu0 %v1989_v35  ;;  %1814 = vmatprep.mubr.msk.bf16.mxu1 %vm774_vm0, %v1991_v36 }
  0xe1   :  { %1064 = vmatmul.mubr.bf16.gmra.mxu0 %v1992_v37  ;;  %1815 = vmatmul.mubr.msk.bf16.gmra.mxu1 %vm774_vm0, %v1993_v38 }
  0xe2   :  { %1071 = vmatprep.mubr.bf16.mxu0 %v1994_v39  ;;  %1818 = vmatprep.mubr.msk.bf16.mxu1 %vm774_vm0, %v1996_v40 }
  0xe9   :  { %1072 = vmatmul.mubr.bf16.gmra.mxu0 %v1997_v41  ;;  %1819 = vmatmul.mubr.msk.bf16.gmra.mxu1 %vm774_vm0, %v1998_v42 }
  0xea   :  { %1079 = vmatprep.mubr.bf16.mxu0 %v1999_v43  ;;  %1822 = vmatprep.mubr.msk.bf16.mxu1 %vm774_vm0, %v2001_v44 }
  0xf1   :  { %1080 = vmatmul.mubr.bf16.gmra.mxu0 %v2002_v45  ;;  %1823 = vmatmul.mubr.msk.bf16.gmra.mxu1 %vm774_vm0, %v2003_v46 }
  0xf2   :  { %1087 = vmatprep.mubr.bf16.mxu0 %v2004_v47  ;;  %1826 = vmatprep.mubr.msk.bf16.mxu1 %vm774_vm0, %v2006_v48 }
  0xf9   :  { %1088 = vmatmul.mubr.bf16.gmra.mxu0 %v2007_v49  ;;  %1827 = vmatmul.mubr.msk.bf16.gmra.mxu1 %vm774_vm0, %v2008_v50  ;;  %v2497_v49 = vld [vmem:[%s2822_s2] ss:$0 sm:$0xff] }
 0x101   :  { %v2436_v51 = vpop.f32.mrf.mxu0  ;;  %v2438_v52 = vpop.f32.mrf.mxu1 }
 0x103   :  { %v907_v53 = vpop.f32.mrf.mxu0  ;;  %v1099_v54 = vpop.f32.mrf.mxu1 }
 0x105   :  { %v2440_v55 = vpop.f32.mrf.mxu0  ;;  %v2442_v56 = vpop.f32.mrf.mxu1 }
 0x107   :  { %v910_v57 = vpop.f32.mrf.mxu0  ;;  %v1102_v58 = vpop.f32.mrf.mxu1 }
 0x109   :  { %v913_v59 = vpop.f32.mrf.mxu0  ;;  %v2444_v60 = vpop.f32.mrf.mxu1 }
 0x10a   :  { %v914_v54 = vadd.f32 %v2497_v49, %v913_v59 }
 0x10b   :  { %v915_v61 = vpop.f32.mrf.mxu0  ;;  %v1107_v62 = vpop.f32.mrf.mxu1 }
 0x10c   :  { %v906_v61 = vadd.f32 %v2497_v49, %v2436_v51 }
 0x10d   :  { %v916_v63 = vpop.f32.mrf.mxu0  ;;  %v2446_v0 = vpop.f32.mrf.mxu1 }
 0x10f   :  { %v918_v1 = vpop.f32.mrf.mxu0  ;;  %v1110_v2 = vpop.f32.mrf.mxu1 }
 0x111   :  { %v2448_v3 = vpop.f32.mrf.mxu0  ;;  %v2450_v4 = vpop.f32.mrf.mxu1 }
 0x113   :  { %v923_v5 = vpop.f32.mrf.mxu0  ;;  %v1115_v6 = vpop.f32.mrf.mxu1 }
 0x114   :  { %v917_v5 = vadd.f32 %v2497_v49, %v916_v63 }
 0x115   :  { %v2452_v7 = vpop.f32.mrf.mxu0  ;;  %v2454_v8 = vpop.f32.mrf.mxu1 }
 0x117   :  { %v926_v9 = vpop.f32.mrf.mxu0  ;;  %v1118_v10 = vpop.f32.mrf.mxu1 }
 0x119   :  { %v929_v11 = vpop.f32.mrf.mxu0  ;;  %v2456_v12 = vpop.f32.mrf.mxu1 }
 0x11b   :  { %v931_v13 = vpop.f32.mrf.mxu0  ;;  %v1123_v14 = vpop.f32.mrf.mxu1 }
 0x11c   :  { %v909_v14 = vadd.f32 %v2497_v49, %v2440_v55  ;;  %v922_v55 = vadd.f32 %v2497_v49, %v2448_v3 }
 0x11d   :  { %v2458_v15 = vpop.f32.mrf.mxu0  ;;  %v2460_v16 = vpop.f32.mrf.mxu1 }
 0x11f   :  { %v934_v17 = vpop.f32.mrf.mxu0  ;;  %v1126_v18 = vpop.f32.mrf.mxu1 }
 0x121   :  { %v2462_v19 = vpop.f32.mrf.mxu0  ;;  %v2464_v20 = vpop.f32.mrf.mxu1 }
 0x123   :  { %v939_v21 = vpop.f32.mrf.mxu0  ;;  %v1131_v22 = vpop.f32.mrf.mxu1 }
 0x124   :  { %v930_v21 = vadd.f32 %v2497_v49, %v929_v11 }
 0x125   :  { %v2466_v23 = vpop.f32.mrf.mxu0  ;;  %v2468_v24 = vpop.f32.mrf.mxu1 }
 0x127   :  { %v942_v25 = vpop.f32.mrf.mxu0  ;;  %v1134_v26 = vpop.f32.mrf.mxu1 }
 0x129   :  { %v2470_v27 = vpop.f32.mrf.mxu0  ;;  %v2472_v28 = vpop.f32.mrf.mxu1 }
 0x12b   :  { %v947_v29 = vpop.f32.mrf.mxu0  ;;  %v1139_v30 = vpop.f32.mrf.mxu1 }
 0x12d   :  { %v2474_v31 = vpop.f32.mrf.mxu0  ;;  %v2476_v32 = vpop.f32.mrf.mxu1 }
 0x12f   :  { %v950_v33 = vpop.f32.mrf.mxu0  ;;  %v1142_v34 = vpop.f32.mrf.mxu1 }
 0x130   :  { %v933_v34 = vadd.f32 %v2497_v49, %v2458_v15 }
 0x131   :  { %v2478_v35 = vpop.f32.mrf.mxu0  ;;  %v2480_v36 = vpop.f32.mrf.mxu1 }
 0x133   :  { %v955_v37 = vpop.f32.mrf.mxu0  ;;  %v1147_v38 = vpop.f32.mrf.mxu1 }
 0x135   :  { %v2482_v39 = vpop.f32.mrf.mxu0  ;;  %v2484_v40 = vpop.f32.mrf.mxu1 }
 0x137   :  { %v958_v41 = vpop.f32.mrf.mxu0  ;;  %v1150_v42 = vpop.f32.mrf.mxu1 }
 0x138   :  { %v925_v42 = vadd.f32 %v2497_v49, %v2452_v7 }
 0x139   :  { %v2486_v43 = vpop.f32.mrf.mxu0  ;;  %v2488_v44 = vpop.f32.mrf.mxu1 }
 0x13b   :  { %v963_v45 = vpop.f32.mrf.mxu0  ;;  %v1155_v46 = vpop.f32.mrf.mxu1 }
 0x13d   :  { %v2490_v47 = vpop.f32.mrf.mxu0  ;;  %v2492_v48 = vpop.f32.mrf.mxu1 }
 0x13f   :  { %v966_v50 = vpop.f32.mrf.mxu0  ;;  %v1158_v53 = vpop.f32.mrf.mxu1 }
 0x140   :  { %v946_v53 = vadd.f32 %v2497_v49, %v2470_v27 }
 0x141   :  { %v2500_v57 = vpop.f32.mrf.mxu0  ;;  %v1768_v58 = vpop.f32.mrf.mxu1 }
 0x142   :  { %v1203_v62 = vadd.f32 %v1768_v58, %v914_v54 }
 0x143   :  { %v971_v1 = vpop.f32.mrf.mxu0  ;;  %v1194_v2 = vpop.f32.mrf.mxu1 }
 0x144   :  { %v1451_v6 = vmax.f32 %v1203_v62, 0.0  ;;  %v1195_v9 = vadd.f32 %v1194_v2, %v906_v61  ;;  %v938_v62 = vadd.f32 %v2497_v49, %v2462_v19 }
 0x145   :  { %v2505_v10 = vpop.f32.mrf.mxu0  ;;  %v1769_v13 = vpop.f32.mrf.mxu1 }
 0x146   :  { %1515 = vst [vmem:[%s2823_s3 + $0x10] sm:$0xff] %v1451_v6  ;;  %v1449_v59 = vmax.f32 %v1195_v9, 0.0  ;;  %v1206_v17 = vadd.f32 %v1769_v13, %v917_v5  ;;  %v949_v6 = vadd.f32 %v2497_v49, %v2474_v31 }
 0x147   :  { %v974_v51 = vpop.f32.mrf.mxu0  ;;  %v1197_v18 = vpop.f32.mrf.mxu1 }
 0x148   :  { %1513 = vst [vmem:[%s2823_s3] sm:$0xff] %v1449_v59  ;;  %v1452_v63 = vmax.f32 %v1206_v17, 0.0  ;;  %v1198_v22 = vadd.f32 %v1197_v18, %v909_v14  ;;  %v941_v59 = vadd.f32 %v2497_v49, %v2466_v23  ;;  %v954_v23 = vadd.f32 %v2497_v49, %v2478_v35 }
 0x149   :  { %v2516_v25 = vpop.f32.mrf.mxu0  ;;  %v1772_v26 = vpop.f32.mrf.mxu1  ;;  %v957_v35 = vadd.f32 %v2497_v49, %v2482_v39  ;;  %v970_v39 = vadd.f32 %v2497_v49, %v2500_v57  ;;  %v973_v57 = vadd.f32 %v2497_v49, %v2505_v10 }
 0x14a   :  { %1516 = vst [vmem:[%s2823_s3 + $0x18] sm:$0xff] %v1452_v63  ;;  %v1450_v29 = vmax.f32 %v1198_v22, 0.0  ;;  %v1219_v30 = vadd.f32 %v1772_v26, %v930_v21  ;;  %v962_v21 = vadd.f32 %v2497_v49, %v2486_v43  ;;  %v965_v43 = vadd.f32 %v2497_v49, %v2490_v47 }
 0x14b   :  { %v979_v33 = vpop.f32.mrf.mxu0  ;;  %v1210_v11 = vpop.f32.mrf.mxu1  ;;  %v978_v47 = vadd.f32 %v2497_v49, %v2516_v25 }
 0x14c   :  { %1514 = vst [vmem:[%s2823_s3 + $0x8] sm:$0xff] %v1450_v29  ;;  %v1455_v37 = vmax.f32 %v1219_v30, 0.0  ;;  %v1211_v38 = vadd.f32 %v1210_v11, %v922_v55 }
 0x14d   :  { %v2528_v41 = vpop.f32.mrf.mxu0  ;;  %v1773_v3 = vpop.f32.mrf.mxu1 }
 0x14e   :  { %1519 = vst [vmem:[%s2823_s3 + $0x30] sm:$0xff] %v1455_v37  ;;  %v1453_v45 = vmax.f32 %v1211_v38, 0.0  ;;  %v1222_v46 = vadd.f32 %v1773_v3, %v933_v34  ;;  %v981_v25 = vadd.f32 %v2497_v49, %v2528_v41 }
 0x14f   :  { %v982_v50 = vpop.f32.mrf.mxu0  ;;  %v1213_v15 = vpop.f32.mrf.mxu1 }
 0x150   :  { %1517 = vst [vmem:[%s2823_s3 + $0x20] sm:$0xff] %v1453_v45  ;;  %v1456_v54 = vmax.f32 %v1222_v46, 0.0  ;;  %v1214_v58 = vadd.f32 %v1213_v15, %v925_v42 }
 0x151   :  { %v2540_v61 = vpop.f32.mrf.mxu0  ;;  %v1776_v7 = vpop.f32.mrf.mxu1 }
 0x152   :  { %1520 = vst [vmem:[%s2823_s3 + $0x38] sm:$0xff] %v1456_v54  ;;  %v1454_v1 = vmax.f32 %v1214_v58, 0.0  ;;  %v1235_v2 = vadd.f32 %v1776_v7, %v946_v53  ;;  %v986_v10 = vadd.f32 %v2497_v49, %v2540_v61 }
 0x153   :  { %v987_v5 = vpop.f32.mrf.mxu0  ;;  %v1226_v27 = vpop.f32.mrf.mxu1 }
 0x154   :  { %1518 = vst [vmem:[%s2823_s3 + $0x28] sm:$0xff] %v1454_v1  ;;  %v1459_v9 = vmax.f32 %v1235_v2, 0.0  ;;  %v1227_v13 = vadd.f32 %v1226_v27, %v938_v62 }
 0x155   :  { %v2552_v14 = vpop.f32.mrf.mxu0  ;;  %v1777_v19 = vpop.f32.mrf.mxu1 }
 0x156   :  { %1523 = vst [vmem:[%s2823_s3 + $0x50] sm:$0xff] %v1459_v9  ;;  %v1457_v17 = vmax.f32 %v1227_v13, 0.0  ;;  %v1238_v51 = vadd.f32 %v1777_v19, %v949_v6  ;;  %v989_v61 = vadd.f32 %v2497_v49, %v2552_v14 }
 0x157   :  { %v990_v18 = vpop.f32.mrf.mxu0  ;;  %v1229_v31 = vpop.f32.mrf.mxu1 }
 0x158   :  { %1521 = vst [vmem:[%s2823_s3 + $0x40] sm:$0xff] %v1457_v17  ;;  %v1460_v63 = vmax.f32 %v1238_v51, 0.0  ;;  %v1230_v22 = vadd.f32 %v1229_v31, %v941_v59 }
 0x159   :  { %v993_v26 = vpop.f32.mrf.mxu0  ;;  %v1780_v55 = vpop.f32.mrf.mxu1 }
 0x15a   :  { %1524 = vst [vmem:[%s2823_s3 + $0x58] sm:$0xff] %v1460_v63  ;;  %v1458_v29 = vmax.f32 %v1230_v22, 0.0  ;;  %v1251_v30 = vadd.f32 %v1780_v55, %v962_v21  ;;  %v994_v41 = vadd.f32 %v2497_v49, %v993_v26 }
 0x15b   :  { %v995_v33 = vpop.f32.mrf.mxu0  ;;  %v1242_v11 = vpop.f32.mrf.mxu1 }
 0x15c   :  { %1522 = vst [vmem:[%s2823_s3 + $0x48] sm:$0xff] %v1458_v29  ;;  %v1463_v34 = vmax.f32 %v1251_v30, 0.0  ;;  %v1243_v37 = vadd.f32 %v1242_v11, %v954_v23 }
 0x15d   :  { %v996_v38 = vpop.f32.mrf.mxu0  ;;  %v1781_v3 = vpop.f32.mrf.mxu1 }
 0x15e   :  { %1527 = vst [vmem:[%s2823_s3 + $0x70] sm:$0xff] %v1463_v34  ;;  %v1461_v42 = vmax.f32 %v1243_v37, 0.0  ;;  %v1254_v45 = vadd.f32 %v1781_v3, %v965_v43  ;;  %v997_v26 = vadd.f32 %v2497_v49, %v996_v38 }
 0x15f   :  { %v998_v46 = vpop.f32.mrf.mxu0  ;;  %v1245_v50 = vpop.f32.mrf.mxu1 }
 0x160   :  { %1525 = vst [vmem:[%s2823_s3 + $0x60] sm:$0xff] %v1461_v42  ;;  %v1464_v15 = vmax.f32 %v1254_v45, 0.0  ;;  %v1246_v53 = vadd.f32 %v1245_v50, %v957_v35 }
 0x161   :  { %v1001_v54 = vpop.f32.mrf.mxu0  ;;  %v1784_v58 = vpop.f32.mrf.mxu1 }
 0x162   :  { %1528 = vst [vmem:[%s2823_s3 + $0x78] sm:$0xff] %v1464_v15  ;;  %v1462_v7 = vmax.f32 %v1246_v53, 0.0  ;;  %v1267_v62 = vadd.f32 %v1784_v58, %v978_v47  ;;  %v1002_v14 = vadd.f32 %v2497_v49, %v1001_v54 }
 0x163   :  { %v1003_v1 = vpop.f32.mrf.mxu0  ;;  %v1258_v2 = vpop.f32.mrf.mxu1 }
 0x164   :  { %1526 = vst [vmem:[%s2823_s3 + $0x68] sm:$0xff] %v1462_v7  ;;  %v1467_v5 = vmax.f32 %v1267_v62, 0.0  ;;  %v1259_v27 = vadd.f32 %v1258_v2, %v970_v39 }
 0x165   :  { %v1004_v6 = vpop.f32.mrf.mxu0  ;;  %v1785_v9 = vpop.f32.mrf.mxu1 }
 0x166   :  { %1531 = vst [vmem:[%s2823_s3 + $0x90] sm:$0xff] %v1467_v5  ;;  %v1465_v13 = vmax.f32 %v1259_v27, 0.0  ;;  %v1270_v19 = vadd.f32 %v1785_v9, %v981_v25  ;;  %v1005_v54 = vadd.f32 %v2497_v49, %v1004_v6 }
 0x167   :  { %v1006_v59 = vpop.f32.mrf.mxu0  ;;  %v1261_v17 = vpop.f32.mrf.mxu1 }
 0x168   :  { %1529 = vst [vmem:[%s2823_s3 + $0x80] sm:$0xff] %v1465_v13  ;;  %v1468_v51 = vmax.f32 %v1270_v19, 0.0  ;;  %v1262_v18 = vadd.f32 %v1261_v17, %v973_v57 }
 0x169   :  { %v1009_v31 = vpop.f32.mrf.mxu0  ;;  %v1788_v21 = vpop.f32.mrf.mxu1 }
 0x16a   :  { %1532 = vst [vmem:[%s2823_s3 + $0x98] sm:$0xff] %v1468_v51  ;;  %v1466_v63 = vmax.f32 %v1262_v18, 0.0  ;;  %v1283_v22 = vadd.f32 %v1788_v21, %v994_v41  ;;  %v1010_v38 = vadd.f32 %v2497_v49, %v1009_v31 }
 0x16b   :  { %v1011_v55 = vpop.f32.mrf.mxu0  ;;  %v1274_v23 = vpop.f32.mrf.mxu1 }
 0x16c   :  { %1530 = vst [vmem:[%s2823_s3 + $0x88] sm:$0xff] %v1466_v63  ;;  %v1471_v29 = vmax.f32 %v1283_v22, 0.0  ;;  %v1275_v30 = vadd.f32 %v1274_v23, %v986_v10 }
 0x16d   :  { %v1012_v33 = vpop.f32.mrf.mxu0  ;;  %v1789_v11 = vpop.f32.mrf.mxu1 }
 0x16e   :  { %1535 = vst [vmem:[%s2823_s3 + $0xb0] sm:$0xff] %v1471_v29  ;;  %v1469_v43 = vmax.f32 %v1275_v30, 0.0  ;;  %v1286_v34 = vadd.f32 %v1789_v11, %v997_v26  ;;  %v1013_v58 = vadd.f32 %v2497_v49, %v1012_v33 }
 0x16f   :  { %v1014_v37 = vpop.f32.mrf.mxu0  ;;  %v1277_v3 = vpop.f32.mrf.mxu1 }
 0x170   :  { %1533 = vst [vmem:[%s2823_s3 + $0xa0] sm:$0xff] %v1469_v43  ;;  %v1472_v35 = vmax.f32 %v1286_v34, 0.0  ;;  %v1278_v42 = vadd.f32 %v1277_v3, %v989_v61 }
 0x171   :  { %v1017_v45 = vpop.f32.mrf.mxu0  ;;  %v1792_v46 = vpop.f32.mrf.mxu1 }
 0x172   :  { %1536 = vst [vmem:[%s2823_s3 + $0xb8] sm:$0xff] %v1472_v35  ;;  %v1470_v50 = vmax.f32 %v1278_v42, 0.0  ;;  %v1299_v47 = vadd.f32 %v1792_v46, %v1010_v38  ;;  %v1018_v59 = vadd.f32 %v2497_v49, %v1017_v45 }
 0x173   :  { %v1019_v15 = vpop.f32.mrf.mxu0  ;;  %v1290_v53 = vpop.f32.mrf.mxu1 }
 0x174   :  { %1534 = vst [vmem:[%s2823_s3 + $0xa8] sm:$0xff] %v1470_v50  ;;  %v1475_v39 = vmax.f32 %v1299_v47, 0.0  ;;  %v1291_v7 = vadd.f32 %v1290_v53, %v1002_v14 }
 0x175   :  { %v1020_v62 = vpop.f32.mrf.mxu0  ;;  %v1793_v1 = vpop.f32.mrf.mxu1 }
 0x176   :  { %1539 = vst [vmem:[%s2823_s3 + $0xd0] sm:$0xff] %v1475_v39  ;;  %v1473_v2 = vmax.f32 %v1291_v7, 0.0  ;;  %v1302_v25 = vadd.f32 %v1793_v1, %v1013_v58  ;;  %v1021_v63 = vadd.f32 %v2497_v49, %v1020_v62 }
 0x177   :  { %v1022_v5 = vpop.f32.mrf.mxu0  ;;  %v1293_v27 = vpop.f32.mrf.mxu1 }
 0x178   :  { %1537 = vst [vmem:[%s2823_s3 + $0xc0] sm:$0xff] %v1473_v2  ;;  %v1476_v9 = vmax.f32 %v1302_v25, 0.0  ;;  %v1294_v57 = vadd.f32 %v1293_v27, %v1005_v54 }
 0x179   :  { %v1025_v13 = vpop.f32.mrf.mxu0  ;;  %v1796_v19 = vpop.f32.mrf.mxu1 }
 0x17a   :  { %1540 = vst [vmem:[%s2823_s3 + $0xd8] sm:$0xff] %v1476_v9  ;;  %v1474_v6 = vmax.f32 %v1294_v57, 0.0  ;;  %v1026_v17 = vadd.f32 %v2497_v49, %v1025_v13 }
 0x17b   :  { %v1027_v41 = vpop.f32.mrf.mxu0  ;;  %v1306_v51 = vpop.f32.mrf.mxu1 }
 0x17c   :  { %1538 = vst [vmem:[%s2823_s3 + $0xc8] sm:$0xff] %v1474_v6  ;;  %v1315_v18 = vadd.f32 %v1796_v19, %v1026_v17  ;;  %v1307_v31 = vadd.f32 %v1306_v51, %v1018_v59 }
 0x17d   :  { %v1028_v21 = vpop.f32.mrf.mxu0  ;;  %v1797_v10 = vpop.f32.mrf.mxu1 }
 0x17e   :  { %v1479_v22 = vmax.f32 %v1315_v18, 0.0  ;;  %v1477_v55 = vmax.f32 %v1307_v31, 0.0  ;;  %v1029_v23 = vadd.f32 %v2497_v49, %v1028_v21 }
 0x17f   :  { %v1030_v26 = vpop.f32.mrf.mxu0  ;;  %v1309_v29 = vpop.f32.mrf.mxu1 }
 0x180   :  { %1543 = vst [vmem:[%s2823_s3 + $0xf0] sm:$0xff] %v1479_v22  ;;  %1541 = vst [vmem:[%s2823_s3 + $0xe0] sm:$0xff] %v1477_v55  ;;  %v1318_v30 = vadd.f32 %v1797_v10, %v1029_v23  ;;  %v1310_v33 = vadd.f32 %v1309_v29, %v1021_v63 }
 0x181   :  { %v1033_v11 = vpop.f32.mrf.mxu0  ;;  %v1800_v61 = vpop.f32.mrf.mxu1 }
 0x182   :  { %v1480_v43 = vmax.f32 %v1318_v30, 0.0  ;;  %v1478_v34 = vmax.f32 %v1310_v33, 0.0  ;;  %v1034_v37 = vadd.f32 %v2497_v49, %v1033_v11 }
 0x183   :  { %v1035_v3 = vpop.f32.mrf.mxu0  ;;  %v1322_v38 = vpop.f32.mrf.mxu1 }
 0x184   :  { %1544 = vst [vmem:[%s2823_s3 + $0xf8] sm:$0xff] %v1480_v43  ;;  %1542 = vst [vmem:[%s2823_s3 + $0xe8] sm:$0xff] %v1478_v34  ;;  %v1323_v35 = vadd.f32 %v1322_v38, %v1034_v37 }
 0x185   :  { %v1036_v42 = vpop.f32.mrf.mxu0  ;;  %v1801_v45 = vpop.f32.mrf.mxu1 }
 0x186   :  { %v1481_v46 = vmax.f32 %v1323_v35, 0.0  ;;  %v1037_v14 = vadd.f32 %v2497_v49, %v1036_v42 }
 0x187   :  { %v1038_v50 = vpop.f32.mrf.mxu0  ;;  %v1325_v47 = vpop.f32.mrf.mxu1 }
 0x188   :  { %1545 = vst [vmem:[%s2823_s3 + $0x100] sm:$0xff] %v1481_v46  ;;  %v1326_v15 = vadd.f32 %v1325_v47, %v1037_v14  ;;  %v1098_v47 = vadd.f32 %v2497_v49, %v2438_v52 }
 0x189   :  { %v1041_v53 = vpop.f32.mrf.mxu0  ;;  %v1804_v58 = vpop.f32.mrf.mxu1 }
 0x18a   :  { %v1482_v39 = vmax.f32 %v1326_v15, 0.0  ;;  %v1042_v7 = vadd.f32 %v2497_v49, %v1041_v53 }
 0x18b   :  { %v1043_v62 = vpop.f32.mrf.mxu0  ;;  %v1338_v1 = vpop.f32.mrf.mxu1 }
 0x18c   :  { %1546 = vst [vmem:[%s2823_s3 + $0x108] sm:$0xff] %v1482_v39  ;;  %v1331_v54 = vadd.f32 %v1800_v61, %v1042_v7  ;;  %v1109_v62 = vadd.f32 %v2497_v49, %v2446_v0 }
 0x18d   :  { %v1044_v2 = vpop.f32.mrf.mxu0  ;;  %v1805_v25 = vpop.f32.mrf.mxu1 }
 0x18e   :  { %v1483_v5 = vmax.f32 %v1331_v54, 0.0  ;;  %v1045_v27 = vadd.f32 %v2497_v49, %v1044_v2  ;;  %v1101_v2 = vadd.f32 %v2497_v49, %v2442_v56 }
 0x18f   :  { %v1046_v9 = vpop.f32.mrf.mxu0  ;;  %v1341_v57 = vpop.f32.mrf.mxu1 }
 0x190   :  { %1547 = vst [vmem:[%s2823_s3 + $0x110] sm:$0xff] %v1483_v5  ;;  %v1334_v13 = vadd.f32 %v1801_v45, %v1045_v27  ;;  %v1106_v45 = vadd.f32 %v2497_v49, %v2444_v60 }
 0x191   :  { %v1049_v19 = vpop.f32.mrf.mxu0  ;;  %v2671_v59 = vpop.f32.mrf.mxu1 }
 0x192   :  { %v1484_v6 = vmax.f32 %v1334_v13, 0.0  ;;  %v1050_v17 = vadd.f32 %v2497_v49, %v1049_v19  ;;  %v1122_v19 = vadd.f32 %v2497_v49, %v2456_v12 }
 0x193   :  { %v1051_v41 = vpop.f32.mrf.mxu0  ;;  %v1354_v51 = vpop.f32.mrf.mxu1 }
 0x194   :  { %1548 = vst [vmem:[%s2823_s3 + $0x118] sm:$0xff] %v1484_v6  ;;  %v1339_v18 = vadd.f32 %v1338_v1, %v1050_v17  ;;  %v1114_v41 = vadd.f32 %v2497_v49, %v2450_v4 }
 0x195   :  { %v1052_v31 = vpop.f32.mrf.mxu0  ;;  %v2677_v21 = vpop.f32.mrf.mxu1 }
 0x196   :  { %v1485_v10 = vmax.f32 %v1339_v18, 0.0  ;;  %v1053_v63 = vadd.f32 %v2497_v49, %v1052_v31 }
 0x197   :  { %v1054_v22 = vpop.f32.mrf.mxu0  ;;  %v1357_v55 = vpop.f32.mrf.mxu1 }
 0x198   :  { %1549 = vst [vmem:[%s2823_s3 + $0x120] sm:$0xff] %v1485_v10  ;;  %v1342_v23 = vadd.f32 %v1341_v57, %v1053_v63 }
 0x199   :  { %v1057_v26 = vpop.f32.mrf.mxu0  ;;  %v2683_v29 = vpop.f32.mrf.mxu1 }
 0x19a   :  { %v1486_v30 = vmax.f32 %v1342_v23, 0.0  ;;  %v1058_v33 = vadd.f32 %v2497_v49, %v1057_v26 }
 0x19b   :  { %v1059_v11 = vpop.f32.mrf.mxu0  ;;  %v2686_v61 = vpop.f32.mrf.mxu1 }
 0x19c   :  { %1550 = vst [vmem:[%s2823_s3 + $0x128] sm:$0xff] %v1486_v30  ;;  %v1347_v43 = vadd.f32 %v1804_v58, %v1058_v33  ;;  %v1117_v33 = vadd.f32 %v2497_v49, %v2454_v8 }
 0x19d   :  { %v1060_v34 = vpop.f32.mrf.mxu0  ;;  %v2691_v37 = vpop.f32.mrf.mxu1 }
 0x19e   :  { %v1487_v3 = vmax.f32 %v1347_v43, 0.0  ;;  %v1061_v38 = vadd.f32 %v2497_v49, %v1060_v34 }
 0x19f   :  { %v1062_v35 = vpop.f32.mrf.mxu0  ;;  %v2694_v42 = vpop.f32.mrf.mxu1 }
 0x1a0   :  { %1551 = vst [vmem:[%s2823_s3 + $0x130] sm:$0xff] %v1487_v3  ;;  %v1350_v46 = vadd.f32 %v1805_v25, %v1061_v38 }
 0x1a1   :  { %v1065_v14 = vpop.f32.mrf.mxu0  ;;  %v1816_v50 = vpop.f32.mrf.mxu1 }
 0x1a2   :  { %v1488_v15 = vmax.f32 %v1350_v46, 0.0  ;;  %v1066_v53 = vadd.f32 %v2497_v49, %v1065_v14  ;;  %v1395_v58 = vadd.f32 %v1816_v50, %v1106_v45  ;;  %v1130_v50 = vadd.f32 %v2497_v49, %v2464_v20 }
 0x1a3   :  { %v1067_v39 = vpop.f32.mrf.mxu0  ;;  %v1386_v7 = vpop.f32.mrf.mxu1 }
 0x1a4   :  { %1552 = vst [vmem:[%s2823_s3 + $0x138] sm:$0xff] %v1488_v15  ;;  %v1355_v60 = vadd.f32 %v1354_v51, %v1066_v53  ;;  %v1499_v1 = vmax.f32 %v1395_v58, 0.0  ;;  %v1387_v54 = vadd.f32 %v1386_v7, %v1098_v47 }
 0x1a5   :  { %v1068_v52 = vpop.f32.mrf.mxu0  ;;  %v1817_v25 = vpop.f32.mrf.mxu1 }
 0x1a6   :  { %v1489_v5 = vmax.f32 %v1355_v60, 0.0  ;;  %1563 = vst [vmem:[%s2823_s3 + $0x190] sm:$0xff] %v1499_v1  ;;  %v1497_v27 = vmax.f32 %v1387_v54, 0.0  ;;  %v1069_v0 = vadd.f32 %v2497_v49, %v1068_v52  ;;  %v1398_v9 = vadd.f32 %v1817_v25, %v1109_v62 }
 0x1a7   :  { %v1070_v57 = vpop.f32.mrf.mxu0  ;;  %v1389_v13 = vpop.f32.mrf.mxu1  ;;  %v1133_v54 = vadd.f32 %v2497_v49, %v2468_v24 }
 0x1a8   :  { %1553 = vst [vmem:[%s2823_s3 + $0x140] sm:$0xff] %v1489_v5  ;;  %1561 = vst [vmem:[%s2823_s3 + $0x180] sm:$0xff] %v1497_v27  ;;  %v1358_v56 = vadd.f32 %v1357_v55, %v1069_v0  ;;  %v1500_v6 = vmax.f32 %v1398_v9, 0.0  ;;  %v1390_v17 = vadd.f32 %v1389_v13, %v1101_v2  ;;  %v1125_v55 = vadd.f32 %v2497_v49, %v2460_v16 }
 0x1a9   :  { %v1073_v51 = vpop.f32.mrf.mxu0  ;;  %v1820_v18 = vpop.f32.mrf.mxu1 }
 0x1aa   :  { %v1490_v31 = vmax.f32 %v1358_v56, 0.0  ;;  %1564 = vst [vmem:[%s2823_s3 + $0x198] sm:$0xff] %v1500_v6  ;;  %v1498_v12 = vmax.f32 %v1390_v17, 0.0  ;;  %v1074_v10 = vadd.f32 %v2497_v49, %v1073_v51  ;;  %v1411_v63 = vadd.f32 %v1820_v18, %v1122_v19 }
 0x1ab   :  { %v1075_v22 = vpop.f32.mrf.mxu0  ;;  %v1402_v23 = vpop.f32.mrf.mxu1  ;;  %v1146_v19 = vadd.f32 %v2497_v49, %v2480_v36 }
 0x1ac   :  { %1554 = vst [vmem:[%s2823_s3 + $0x148] sm:$0xff] %v1490_v31  ;;  %1562 = vst [vmem:[%s2823_s3 + $0x188] sm:$0xff] %v1498_v12  ;;  %v1363_v4 = vadd.f32 %v2671_v59, %v1074_v10  ;;  %v1503_v26 = vmax.f32 %v1411_v63, 0.0  ;;  %v1403_v30 = vadd.f32 %v1402_v23, %v1114_v41  ;;  %v1138_v59 = vadd.f32 %v2497_v49, %v2472_v28 }
 0x1ad   :  { %v1076_v11 = vpop.f32.mrf.mxu0  ;;  %v1821_v43 = vpop.f32.mrf.mxu1  ;;  %v1149_v63 = vadd.f32 %v2497_v49, %v2484_v40 }
 0x1ae   :  { %v1491_v34 = vmax.f32 %v1363_v4, 0.0  ;;  %1567 = vst [vmem:[%s2823_s3 + $0x1b0] sm:$0xff] %v1503_v26  ;;  %v1501_v16 = vmax.f32 %v1403_v30, 0.0  ;;  %v1077_v3 = vadd.f32 %v2497_v49, %v1076_v11  ;;  %v1414_v38 = vadd.f32 %v1821_v43, %v1125_v55 }
 0x1af   :  { %v1078_v35 = vpop.f32.mrf.mxu0  ;;  %v1405_v45 = vpop.f32.mrf.mxu1 }
 0x1b0   :  { %1555 = vst [vmem:[%s2823_s3 + $0x150] sm:$0xff] %v1491_v34  ;;  %1565 = vst [vmem:[%s2823_s3 + $0x1a0] sm:$0xff] %v1501_v16  ;;  %v1366_v8 = vadd.f32 %v2677_v21, %v1077_v3  ;;  %v1504_v46 = vmax.f32 %v1414_v38, 0.0  ;;  %v1406_v14 = vadd.f32 %v1405_v45, %v1117_v33  ;;  %v1141_v21 = vadd.f32 %v2497_v49, %v2476_v32 }
 0x1b1   :  { %v1081_v47 = vpop.f32.mrf.mxu0  ;;  %v1824_v15 = vpop.f32.mrf.mxu1 }
 0x1b2   :  { %v1492_v53 = vmax.f32 %v1366_v8, 0.0  ;;  %1568 = vst [vmem:[%s2823_s3 + $0x1b8] sm:$0xff] %v1504_v46  ;;  %v1502_v28 = vmax.f32 %v1406_v14, 0.0  ;;  %v1082_v58 = vadd.f32 %v2497_v49, %v1081_v47  ;;  %v1427_v39 = vadd.f32 %v1824_v15, %v1138_v59 }
 0x1b3   :  { %v1083_v7 = vpop.f32.mrf.mxu0  ;;  %v1418_v62 = vpop.f32.mrf.mxu1 }
 0x1b4   :  { %1556 = vst [vmem:[%s2823_s3 + $0x158] sm:$0xff] %v1492_v53  ;;  %1566 = vst [vmem:[%s2823_s3 + $0x1a8] sm:$0xff] %v1502_v28  ;;  %v1371_v20 = vadd.f32 %v2686_v61, %v1082_v58  ;;  %v1507_v60 = vmax.f32 %v1427_v39, 0.0  ;;  %v1419_v1 = vadd.f32 %v1418_v62, %v1130_v50  ;;  %v1154_v61 = vadd.f32 %v2497_v49, %v2488_v44 }
 0x1b5   :  { %v1084_v2 = vpop.f32.mrf.mxu0  ;;  %v1825_v52 = vpop.f32.mrf.mxu1 }
 0x1b6   :  { %v1493_v25 = vmax.f32 %v1371_v20, 0.0  ;;  %1571 = vst [vmem:[%s2823_s3 + $0x1d0] sm:$0xff] %v1507_v60  ;;  %v1505_v32 = vmax.f32 %v1419_v1, 0.0  ;;  %v1085_v5 = vadd.f32 %v2497_v49, %v1084_v2  ;;  %v1430_v27 = vadd.f32 %v1825_v52, %v1141_v21 }
 0x1b7   :  { %v1086_v0 = vpop.f32.mrf.mxu0  ;;  %v1421_v9 = vpop.f32.mrf.mxu1 }
 0x1b8   :  { %1557 = vst [vmem:[%s2823_s3 + $0x160] sm:$0xff] %v1493_v25  ;;  %1569 = vst [vmem:[%s2823_s3 + $0x1c0] sm:$0xff] %v1505_v32  ;;  %v1374_v24 = vadd.f32 %v2694_v42, %v1085_v5  ;;  %v1508_v57 = vmax.f32 %v1430_v27, 0.0  ;;  %v1422_v13 = vadd.f32 %v1421_v9, %v1133_v54  ;;  %v1157_v42 = vadd.f32 %v2497_v49, %v2492_v48 }
 0x1b9   :  { %v1089_v56 = vpop.f32.mrf.mxu0  ;;  %v1828_v6 = vpop.f32.mrf.mxu1 }
 0x1ba   :  { %v1494_v17 = vmax.f32 %v1374_v24, 0.0  ;;  %1572 = vst [vmem:[%s2823_s3 + $0x1d8] sm:$0xff] %v1508_v57  ;;  %v1506_v44 = vmax.f32 %v1422_v13, 0.0  ;;  %v1090_v41 = vadd.f32 %v2497_v49, %v1089_v56  ;;  %v1443_v51 = vadd.f32 %v1828_v6, %v1154_v61 }
 0x1bb   :  { %v1091_v18 = vpop.f32.mrf.mxu0  ;;  %v1434_v31 = vpop.f32.mrf.mxu1 }
 0x1bc   :  { %1558 = vst [vmem:[%s2823_s3 + $0x168] sm:$0xff] %v1494_v17  ;;  %1570 = vst [vmem:[%s2823_s3 + $0x1c8] sm:$0xff] %v1506_v44  ;;  %v1379_v36 = vadd.f32 %v2683_v29, %v1090_v41  ;;  %v1511_v12 = vmax.f32 %v1443_v51, 0.0  ;;  %v1435_v10 = vadd.f32 %v1434_v31, %v1146_v19 }
 0x1bd   :  { %v1092_v22 = vpop.f32.mrf.mxu0  ;;  %v1829_v23 = vpop.f32.mrf.mxu1 }
 0x1be   :  { %v1495_v55 = vmax.f32 %v1379_v36, 0.0  ;;  %1575 = vst [vmem:[%s2823_s3 + $0x1f0] sm:$0xff] %v1511_v12  ;;  %v1509_v48 = vmax.f32 %v1435_v10, 0.0  ;;  %v1093_v4 = vadd.f32 %v2497_v49, %v1092_v22  ;;  %v1446_v26 = vadd.f32 %v1829_v23, %v1157_v42 }
 0x1bf   :  { %v1094_v30 = vpop.f32.mrf.mxu0  ;;  %v1437_v33 = vpop.f32.mrf.mxu1 }
 0x1c0   :  { %1559 = vst [vmem:[%s2823_s3 + $0x170] sm:$0xff] %v1495_v55  ;;  %1573 = vst [vmem:[%s2823_s3 + $0x1e0] sm:$0xff] %v1509_v48  ;;  %v1382_v40 = vadd.f32 %v2691_v37, %v1093_v4  ;;  %v1512_v29 = vmax.f32 %v1446_v26, 0.0  ;;  %v1438_v11 = vadd.f32 %v1437_v33, %v1149_v63 }
 0x1c2   :  { %v1496_v43 = vmax.f32 %v1382_v40, 0.0  ;;  %1576 = vst [vmem:[%s2823_s3 + $0x1f8] sm:$0xff] %v1512_v29  ;;  %v1510_v49 = vmax.f32 %v1438_v11, 0.0 }
 0x1c4   :  { %1560 = vst [vmem:[%s2823_s3 + $0x178] sm:$0xff] %v1496_v43  ;;  %1574 = vst [vmem:[%s2823_s3 + $0x1e8] sm:$0xff] %v1510_v49 }

// kernel: cnn_forward.8
= control target key start
LH: loop header
LB: loop body
LE: loop exit
PB: predicated region body
PF: predicated region fallthrough
CT: control target
= control target key end

     0   :  { %s471_s0 = inlined_call_operand.vmem [shape: f32[4,128,128], index: 0, kind: input, shape index: {}, may-alias: {0,1,2,3}]   ;;  %s472_s1 = inlined_call_operand.vmem [shape: f32[4,128,128], index: 1, kind: input, shape index: {}, may-alias: {0,1,2,3}]   ;;  %s473_s2 = inlined_call_operand.vmem [shape: f32[4,128,128], index: 2, kind: input, shape index: {}, may-alias: {0,1,2,3}]   ;;  %s474_s3 = inlined_call_operand.vmem [shape: f32[4,128,128], index: 3, kind: input, shape index: {}, may-alias: {0,1,2,3}]   ;;  %s475_s4 = inlined_call_operand.vmem [shape: f32[128,128], index: 4, kind: output, shape index: {}]  }
   0x1   :  { %v26_v0 = vld [vmem:[%s471_s0] sm:$0xff]  ;;  %v27_v5 = vld [vmem:[%s471_s0 + $0x8] sm:$0xff]  ;;  %v28_v11 = vld [vmem:[%s471_s0 + $0x10] sm:$0xff] }
   0x2   :  { %v158_v1 = vld [vmem:[%s472_s1 + $0x80] sm:$0xff]  ;;  %v159_v6 = vld [vmem:[%s472_s1 + $0x88] sm:$0xff]  ;;  %v160_v13 = vld [vmem:[%s472_s1 + $0x90] sm:$0xff] }
   0x3   :  { %v174_v2 = vld [vmem:[%s473_s2 + $0x100] sm:$0xff]  ;;  %v58_v3 = vmax.f32 %v26_v0, %v158_v1  ;;  %v59_v8 = vmax.f32 %v27_v5, %v159_v6  ;;  %v175_v9 = vld [vmem:[%s473_s2 + $0x108] sm:$0xff]  ;;  %v176_v14 = vld [vmem:[%s473_s2 + $0x110] sm:$0xff]  ;;  %v60_v17 = vmax.f32 %v28_v11, %v160_v13 }
   0x4   :  { %v190_v4 = vld [vmem:[%s474_s3 + $0x180] sm:$0xff]  ;;  %v191_v10 = vld [vmem:[%s474_s3 + $0x188] sm:$0xff]  ;;  %v192_v15 = vld [vmem:[%s474_s3 + $0x190] sm:$0xff] }
   0x5   :  { %v106_v7 = vmax.f32 %v174_v2, %v190_v4  ;;  %v107_v12 = vmax.f32 %v175_v9, %v191_v10  ;;  %v108_v18 = vmax.f32 %v176_v14, %v192_v15  ;;  %v29_v19 = vld [vmem:[%s471_s0 + $0x18] sm:$0xff]  ;;  %v30_v25 = vld [vmem:[%s471_s0 + $0x20] sm:$0xff]  ;;  %v31_v32 = vld [vmem:[%s471_s0 + $0x28] sm:$0xff] }
   0x6   :  { %v161_v20 = vld [vmem:[%s472_s1 + $0x98] sm:$0xff]  ;;  %v162_v26 = vld [vmem:[%s472_s1 + $0xa0] sm:$0xff]  ;;  %v163_v34 = vld [vmem:[%s472_s1 + $0xa8] sm:$0xff] }
   0x7   :  { %v122_v16 = vmax.f32 %v58_v3, %v106_v7  ;;  %v177_v21 = vld [vmem:[%s473_s2 + $0x118] sm:$0xff]  ;;  %v123_v22 = vmax.f32 %v59_v8, %v107_v12  ;;  %v61_v23 = vmax.f32 %v29_v19, %v161_v20  ;;  %v124_v27 = vmax.f32 %v60_v17, %v108_v18  ;;  %v178_v30 = vld [vmem:[%s473_s2 + $0x120] sm:$0xff]  ;;  %v179_v35 = vld [vmem:[%s473_s2 + $0x128] sm:$0xff] }
   0x8   :  { %v193_v24 = vld [vmem:[%s474_s3 + $0x198] sm:$0xff]  ;;  %v62_v29 = vmax.f32 %v30_v25, %v162_v26  ;;  %v194_v31 = vld [vmem:[%s474_s3 + $0x1a0] sm:$0xff]  ;;  %v195_v36 = vld [vmem:[%s474_s3 + $0x1a8] sm:$0xff]  ;;  %v63_v38 = vmax.f32 %v31_v32, %v163_v34 }
   0x9   :  { %138 = vst [vmem:[%s475_s4] sm:$0xff] %v122_v16  ;;  %v109_v28 = vmax.f32 %v177_v21, %v193_v24  ;;  %139 = vst [vmem:[%s475_s4 + $0x8] sm:$0xff] %v123_v22  ;;  %v110_v33 = vmax.f32 %v178_v30, %v194_v31  ;;  %v111_v39 = vmax.f32 %v179_v35, %v195_v36  ;;  %v32_v40 = vld [vmem:[%s471_s0 + $0x30] sm:$0xff]  ;;  %v33_v46 = vld [vmem:[%s471_s0 + $0x38] sm:$0xff] }
   0xa   :  { %140 = vst [vmem:[%s475_s4 + $0x10] sm:$0xff] %v124_v27  ;;  %v164_v41 = vld [vmem:[%s472_s1 + $0xb0] sm:$0xff]  ;;  %v165_v47 = vld [vmem:[%s472_s1 + $0xb8] sm:$0xff]  ;;  %v34_v53 = vld [vmem:[%s471_s0 + $0x40] sm:$0xff] }
   0xb   :  { %v125_v37 = vmax.f32 %v61_v23, %v109_v28  ;;  %v180_v42 = vld [vmem:[%s473_s2 + $0x130] sm:$0xff]  ;;  %v126_v43 = vmax.f32 %v62_v29, %v110_v33  ;;  %v64_v44 = vmax.f32 %v32_v40, %v164_v41  ;;  %v127_v48 = vmax.f32 %v63_v38, %v111_v39  ;;  %v181_v51 = vld [vmem:[%s473_s2 + $0x138] sm:$0xff]  ;;  %v166_v55 = vld [vmem:[%s472_s1 + $0xc0] sm:$0xff] }
   0xc   :  { %v196_v45 = vld [vmem:[%s474_s3 + $0x1b0] sm:$0xff]  ;;  %v65_v50 = vmax.f32 %v33_v46, %v165_v47  ;;  %v197_v52 = vld [vmem:[%s474_s3 + $0x1b8] sm:$0xff]  ;;  %v182_v56 = vld [vmem:[%s473_s2 + $0x140] sm:$0xff]  ;;  %v66_v59 = vmax.f32 %v34_v53, %v166_v55 }
   0xd   :  { %141 = vst [vmem:[%s475_s4 + $0x18] sm:$0xff] %v125_v37  ;;  %v112_v49 = vmax.f32 %v180_v42, %v196_v45  ;;  %142 = vst [vmem:[%s475_s4 + $0x20] sm:$0xff] %v126_v43  ;;  %v113_v54 = vmax.f32 %v181_v51, %v197_v52  ;;  %v198_v57 = vld [vmem:[%s474_s3 + $0x1c0] sm:$0xff]  ;;  %v35_v61 = vld [vmem:[%s471_s0 + $0x48] sm:$0xff] }
   0xe   :  { %143 = vst [vmem:[%s475_s4 + $0x28] sm:$0xff] %v127_v48  ;;  %v114_v60 = vmax.f32 %v182_v56, %v198_v57  ;;  %v167_v62 = vld [vmem:[%s472_s1 + $0xc8] sm:$0xff]  ;;  %v36_v3 = vld [vmem:[%s471_s0 + $0x50] sm:$0xff]  ;;  %v37_v10 = vld [vmem:[%s471_s0 + $0x58] sm:$0xff] }
   0xf   :  { %v128_v58 = vmax.f32 %v64_v44, %v112_v49  ;;  %v183_v63 = vld [vmem:[%s473_s2 + $0x148] sm:$0xff]  ;;  %v129_v0 = vmax.f32 %v65_v50, %v113_v54  ;;  %v67_v1 = vmax.f32 %v35_v61, %v167_v62  ;;  %v168_v4 = vld [vmem:[%s472_s1 + $0xd0] sm:$0xff]  ;;  %v169_v12 = vld [vmem:[%s472_s1 + $0xd8] sm:$0xff] }
  0x10   :  { %v199_v2 = vld [vmem:[%s474_s3 + $0x1c8] sm:$0xff]  ;;  %v130_v5 = vmax.f32 %v66_v59, %v114_v60  ;;  %v68_v7 = vmax.f32 %v36_v3, %v168_v4  ;;  %v184_v8 = vld [vmem:[%s473_s2 + $0x150] sm:$0xff]  ;;  %v185_v13 = vld [vmem:[%s473_s2 + $0x158] sm:$0xff]  ;;  %v69_v16 = vmax.f32 %v37_v10, %v169_v12 }
  0x11   :  { %144 = vst [vmem:[%s475_s4 + $0x30] sm:$0xff] %v128_v58  ;;  %v115_v6 = vmax.f32 %v183_v63, %v199_v2  ;;  %v200_v9 = vld [vmem:[%s474_s3 + $0x1d0] sm:$0xff]  ;;  %145 = vst [vmem:[%s475_s4 + $0x38] sm:$0xff] %v129_v0  ;;  %v201_v14 = vld [vmem:[%s474_s3 + $0x1d8] sm:$0xff] }
  0x12   :  { %v116_v11 = vmax.f32 %v184_v8, %v200_v9  ;;  %146 = vst [vmem:[%s475_s4 + $0x40] sm:$0xff] %v130_v5  ;;  %v117_v17 = vmax.f32 %v185_v13, %v201_v14  ;;  %v38_v18 = vld [vmem:[%s471_s0 + $0x60] sm:$0xff]  ;;  %v39_v24 = vld [vmem:[%s471_s0 + $0x68] sm:$0xff]  ;;  %v40_v31 = vld [vmem:[%s471_s0 + $0x70] sm:$0xff] }
  0x13   :  { %v131_v15 = vmax.f32 %v67_v1, %v115_v6  ;;  %v170_v19 = vld [vmem:[%s472_s1 + $0xe0] sm:$0xff]  ;;  %v171_v25 = vld [vmem:[%s472_s1 + $0xe8] sm:$0xff]  ;;  %v172_v33 = vld [vmem:[%s472_s1 + $0xf0] sm:$0xff] }
  0x14   :  { %v186_v20 = vld [vmem:[%s473_s2 + $0x160] sm:$0xff]  ;;  %v132_v21 = vmax.f32 %v68_v7, %v116_v11  ;;  %v70_v22 = vmax.f32 %v38_v18, %v170_v19  ;;  %v133_v26 = vmax.f32 %v69_v16, %v117_v17  ;;  %v71_v28 = vmax.f32 %v39_v24, %v171_v25  ;;  %v187_v29 = vld [vmem:[%s473_s2 + $0x168] sm:$0xff]  ;;  %v188_v34 = vld [vmem:[%s473_s2 + $0x170] sm:$0xff] }
  0x15   :  { %v202_v23 = vld [vmem:[%s474_s3 + $0x1e0] sm:$0xff]  ;;  %147 = vst [vmem:[%s475_s4 + $0x48] sm:$0xff] %v131_v15  ;;  %v203_v30 = vld [vmem:[%s474_s3 + $0x1e8] sm:$0xff]  ;;  %v204_v35 = vld [vmem:[%s474_s3 + $0x1f0] sm:$0xff]  ;;  %v72_v37 = vmax.f32 %v40_v31, %v172_v33 }
  0x16   :  { %v118_v27 = vmax.f32 %v186_v20, %v202_v23  ;;  %148 = vst [vmem:[%s475_s4 + $0x50] sm:$0xff] %v132_v21  ;;  %v119_v32 = vmax.f32 %v187_v29, %v203_v30  ;;  %149 = vst [vmem:[%s475_s4 + $0x58] sm:$0xff] %v133_v26  ;;  %v120_v38 = vmax.f32 %v188_v34, %v204_v35  ;;  %v41_v39 = vld [vmem:[%s471_s0 + $0x78] sm:$0xff] }
  0x17   :  { %v173_v40 = vld [vmem:[%s472_s1 + $0xf8] sm:$0xff] }
  0x18   :  { %v134_v36 = vmax.f32 %v70_v22, %v118_v27  ;;  %v189_v41 = vld [vmem:[%s473_s2 + $0x178] sm:$0xff]  ;;  %v135_v42 = vmax.f32 %v71_v28, %v119_v32  ;;  %v73_v43 = vmax.f32 %v41_v39, %v173_v40  ;;  %v136_v45 = vmax.f32 %v72_v37, %v120_v38 }
  0x19   :  { %v205_v44 = vld [vmem:[%s474_s3 + $0x1f8] sm:$0xff] }
  0x1a   :  { %150 = vst [vmem:[%s475_s4 + $0x60] sm:$0xff] %v134_v36  ;;  %v121_v46 = vmax.f32 %v189_v41, %v205_v44  ;;  %151 = vst [vmem:[%s475_s4 + $0x68] sm:$0xff] %v135_v42 }
  0x1b   :  { %152 = vst [vmem:[%s475_s4 + $0x70] sm:$0xff] %v136_v45 }
  0x1c   :  { %v137_v47 = vmax.f32 %v73_v43, %v121_v46 }
  0x1e   :  { %153 = vst [vmem:[%s475_s4 + $0x78] sm:$0xff] %v137_v47 }

// kernel: cnn_forward.9
= control target key start
LH: loop header
LB: loop body
LE: loop exit
PB: predicated region body
PF: predicated region fallthrough
CT: control target
= control target key end

     0   :  { %v553_v28 = vlaneseq  ;;  %v4022_v36 = vmov 1966171168   ;;  %s4915_s0 = inlined_call_operand.vmem [shape: bf16[2,4096], index: 0, kind: input, shape index: {}]   ;;  %s4916_s1 = inlined_call_operand.vmem [shape: bf16[4096,128], index: 1, kind: input, shape index: {}]   ;;  %s4917_s2 = inlined_call_operand.vmem [shape: f32[1,128], index: 2, kind: input, shape index: {}]   ;;  %s4918_s3 = inlined_call_operand.vmem [shape: bf16[128,128], index: 3, kind: input, shape index: {}]   ;;  %s4919_s4 = inlined_call_operand.vmem [shape: f32[1,128], index: 4, kind: input, shape index: {}]   ;;  %s4920_s5 = inlined_call_operand.hbm [shape: f32[2,128], index: 5, kind: output, shape index: {}]  }
   0x1   :  { %v3732_v0 = vld [vmem:[%s4916_s1 + $0x78] sm:$0xff]   ;;  %v3736_v4 = vld [vmem:[%s4916_s1 + $0x70] sm:$0xff]   ;;  %v3740_v8 = vld [vmem:[%s4916_s1 + $0x68] sm:$0xff]   ;;  %v551_v37 = vunpack.c.l.s4 %v4022_v36 }
   0x2   :  { %v3733_v1 = vld [vmem:[%s4916_s1 + $0xf8] sm:$0xff]   ;;  %3347 = vmatprep.subr.bf16.mxu0 %v3732_v0  ;;  %v3737_v5 = vld [vmem:[%s4916_s1 + $0xf0] sm:$0xff]   ;;  %v3741_v9 = vld [vmem:[%s4916_s1 + $0xe8] sm:$0xff]   ;;  %v554_v33 = vshrl.u32 %v553_v28, 7 }
   0x3   :  { %v3734_v2 = vld [vmem:[%s4916_s1 + $0x38] sm:$0xff]   ;;  %3369 = vmatprep.subr.bf16.mxu1 %v3733_v1  ;;  %v3738_v6 = vld [vmem:[%s4916_s1 + $0x30] sm:$0xff]   ;;  %v3742_v10 = vld [vmem:[%s4916_s1 + $0x28] sm:$0xff]   ;;  %v552_v40 = vunpack.c.0.s8 %v551_v37 }
   0x4   :  { %v3735_v3 = vld [vmem:[%s4916_s1 + $0xb8] sm:$0xff]   ;;  %3348 = vmatpush3.bf16.msra.mxu0 %v3734_v2  ;;  %v3739_v7 = vld [vmem:[%s4916_s1 + $0xb0] sm:$0xff]   ;;  %v3743_v11 = vld [vmem:[%s4916_s1 + $0xa8] sm:$0xff]  }
   0x5   :  { %3370 = vmatpush3.bf16.msra.mxu1 %v3735_v3  ;;  %3349 = vmatprep.subr.bf16.mxu0 %v3736_v4  ;;  %v3744_v12 = vld [vmem:[%s4916_s1 + $0x60] sm:$0xff]   ;;  %v3748_v16 = vld [vmem:[%s4916_s1 + $0x58] sm:$0xff]   ;;  %v3752_v20 = vld [vmem:[%s4916_s1 + $0x50] sm:$0xff]   ;;  %v4161_v41 = vsub.s32 %v552_v40, %v554_v33 }
   0x6   :  { %3371 = vmatprep.subr.bf16.mxu1 %v3737_v5  ;;  %v3745_v13 = vld [vmem:[%s4916_s1 + $0xe0] sm:$0xff]   ;;  %v3749_v17 = vld [vmem:[%s4916_s1 + $0xd8] sm:$0xff]   ;;  %v3753_v21 = vld [vmem:[%s4916_s1 + $0xd0] sm:$0xff]  }
   0x7   :  { %v3746_v14 = vld [vmem:[%s4916_s1 + $0x20] sm:$0xff]   ;;  %v3750_v18 = vld [vmem:[%s4916_s1 + $0x18] sm:$0xff]   ;;  %v3754_v22 = vld [vmem:[%s4916_s1 + $0x10] sm:$0xff]  }
   0x8   :  { %3350 = vmatpush3.bf16.msra.mxu0 %v3738_v6  ;;  %v3747_v15 = vld [vmem:[%s4916_s1 + $0xa0] sm:$0xff]   ;;  %v3751_v19 = vld [vmem:[%s4916_s1 + $0x98] sm:$0xff]   ;;  %v3755_v23 = vld [vmem:[%s4916_s1 + $0x90] sm:$0xff]  }
   0x9   :  { %3372 = vmatpush3.bf16.msra.mxu1 %v3739_v7  ;;  %3351 = vmatprep.subr.bf16.mxu0 %v3740_v8  ;;  %v3756_v24 = vld [vmem:[%s4916_s1 + $0x48] sm:$0xff]   ;;  %v3760_v29 = vld [vmem:[%s4916_s1 + $0x40] sm:$0xff]   ;;  %v3765_v35 = vld [vmem:[%s4916_s1 + $0x178] sm:$0xff]  }
   0xa   :  { %3373 = vmatprep.subr.bf16.mxu1 %v3741_v9  ;;  %v3757_v25 = vld [vmem:[%s4916_s1 + $0xc8] sm:$0xff]   ;;  %v3761_v30 = vld [vmem:[%s4916_s1 + $0xc0] sm:$0xff]   ;;  %v3766_v38 = vld [vmem:[%s4916_s1 + $0x1f8] sm:$0xff]  }
   0xb   :  { %v3758_v26 = vld [vmem:[%s4916_s1 + $0x8] sm:$0xff]   ;;  %v3762_v31 = vld [vmem:[%s4916_s1] sm:$0xff]   ;;  %v3767_v47 = vld [vmem:[%s4916_s1 + $0x138] sm:$0xff]  }
   0xc   :  { %3352 = vmatpush3.bf16.msra.mxu0 %v3742_v10  ;;  %v3759_v27 = vld [vmem:[%s4916_s1 + $0x88] sm:$0xff]   ;;  %v3763_v32 = vld [vmem:[%s4916_s1 + $0x80] sm:$0xff]   ;;  %v3768_v49 = vld [vmem:[%s4916_s1 + $0x1b8] sm:$0xff]  }
   0xd   :  { %3374 = vmatpush3.bf16.msra.mxu1 %v3743_v11  ;;  %3353 = vmatprep.subr.bf16.mxu0 %v3744_v12  ;;  %v22_v34 = vld [vmem:[%s4915_s0] sm:$0xff]  ;;  %v3769_v52 = vld [vmem:[%s4916_s1 + $0x170] sm:$0xff]   ;;  %v3773_v58 = vld [vmem:[%s4916_s1 + $0x168] sm:$0xff]  }
   0xe   :  { %3375 = vmatprep.subr.bf16.mxu1 %v3745_v13  ;;  %v549_v39 = vcombine.high %v22_v34, %v22_v34  ;;  %v556_v42 = vrot.slane %v22_v34, %v4161_v41  ;;  %v3770_v54 = vld [vmem:[%s4916_s1 + $0x1f0] sm:$0xff]   ;;  %v3774_v59 = vld [vmem:[%s4916_s1 + $0x1e8] sm:$0xff]   ;;  %v3777_v62 = vld [vmem:[%s4916_s1 + $0x160] sm:$0xff]  }
   0xf   :  { %v3771_v55 = vld [vmem:[%s4916_s1 + $0x130] sm:$0xff]   ;;  %v3775_v60 = vld [vmem:[%s4916_s1 + $0x128] sm:$0xff]   ;;  %v3778_v63 = vld [vmem:[%s4916_s1 + $0x1e0] sm:$0xff]  }
  0x10   :  { %3354 = vmatpush3.bf16.msra.mxu0 %v3746_v14  ;;  %v4165_v43 = vrot.slane %v549_v39, %v4161_v41  ;;  %v564_v44 = vcombine.high %v556_v42, %v556_v42  ;;  %v572_v45 = vrot.slane %v556_v42, %v4161_v41  ;;  %v3772_v57 = vld [vmem:[%s4916_s1 + $0x1b0] sm:$0xff]   ;;  %v3776_v61 = vld [vmem:[%s4916_s1 + $0x1a8] sm:$0xff]   ;;  %v3779_v0 = vld [vmem:[%s4916_s1 + $0x120] sm:$0xff]  }
  0x11   :  { %3376 = vmatpush3.bf16.msra.mxu1 %v3747_v15  ;;  %3355 = vmatprep.subr.bf16.mxu0 %v3748_v16  ;;  %v3780_v1 = vld [vmem:[%s4916_s1 + $0x1a0] sm:$0xff]   ;;  %v3781_v2 = vld [vmem:[%s4916_s1 + $0x158] sm:$0xff]   ;;  %v3785_v6 = vld [vmem:[%s4916_s1 + $0x150] sm:$0xff]  }
  0x12   :  { %3377 = vmatprep.subr.bf16.mxu1 %v3749_v17  ;;  %v565_v46 = vcombine.high %v4165_v43, %v4165_v43  ;;  %v586_v48 = vrot.slane %v564_v44, %v4161_v41  ;;  %v594_v51 = vcombine.high %v572_v45, %v572_v45  ;;  %v3782_v3 = vld [vmem:[%s4916_s1 + $0x1d8] sm:$0xff]   ;;  %v3786_v7 = vld [vmem:[%s4916_s1 + $0x1d0] sm:$0xff]   ;;  %v3789_v10 = vld [vmem:[%s4916_s1 + $0x148] sm:$0xff]  }
  0x13   :  { %v3783_v4 = vld [vmem:[%s4916_s1 + $0x118] sm:$0xff]   ;;  %v3787_v8 = vld [vmem:[%s4916_s1 + $0x110] sm:$0xff]   ;;  %v3790_v11 = vld [vmem:[%s4916_s1 + $0x1c8] sm:$0xff]  }
  0x14   :  { %3356 = vmatpush3.bf16.msra.mxu0 %v3750_v18  ;;  %v593_v50 = vrot.slane %v565_v46, %v4161_v41  ;;  %2345 = vmatprep.mubr.bf16.mxu0 %v586_v48  ;;  %v596_v53 = vcombine.high %v586_v48, %v586_v48  ;;  %v3784_v5 = vld [vmem:[%s4916_s1 + $0x198] sm:$0xff]   ;;  %v3788_v9 = vld [vmem:[%s4916_s1 + $0x190] sm:$0xff]   ;;  %v3791_v12 = vld [vmem:[%s4916_s1 + $0x108] sm:$0xff]   ;;  %v579_v18 = vrot.slane %v4165_v43, %v4161_v41 }
  0x15   :  { %3378 = vmatpush3.bf16.msra.mxu1 %v3751_v19  ;;  %3357 = vmatprep.subr.bf16.mxu0 %v3752_v20  ;;  %v3792_v13 = vld [vmem:[%s4916_s1 + $0x188] sm:$0xff]   ;;  %v3793_v14 = vld [vmem:[%s4916_s1 + $0x140] sm:$0xff]   ;;  %v3797_v19 = vld [vmem:[%s4916_s1 + $0x278] sm:$0xff]  }
  0x16   :  { %3379 = vmatprep.subr.bf16.mxu1 %v3753_v21  ;;  %v597_v56 = vcombine.high %v593_v50, %v593_v50  ;;  %2385 = vmatprep.mubr.bf16.mxu1 %v596_v53  ;;  %v3794_v15 = vld [vmem:[%s4916_s1 + $0x1c0] sm:$0xff]   ;;  %v3798_v20 = vld [vmem:[%s4916_s1 + $0x2f8] sm:$0xff]   ;;  %v3805_v28 = vld [vmem:[%s4916_s1 + $0x268] sm:$0xff]  }
  0x17   :  { %v3795_v16 = vld [vmem:[%s4916_s1 + $0x100] sm:$0xff]   ;;  %v3799_v21 = vld [vmem:[%s4916_s1 + $0x238] sm:$0xff]   ;;  %v3817_v40 = vld [vmem:[%s4916_s1 + $0x250] sm:$0xff]  }
  0x18   :  { %3358 = vmatpush3.bf16.msra.mxu0 %v3754_v22  ;;  %v3796_v17 = vld [vmem:[%s4916_s1 + $0x180] sm:$0xff]   ;;  %v3800_v22 = vld [vmem:[%s4916_s1 + $0x2b8] sm:$0xff]   ;;  %v3818_v42 = vld [vmem:[%s4916_s1 + $0x2d0] sm:$0xff]  }
  0x19   :  { %3380 = vmatpush3.bf16.msra.mxu1 %v3755_v23  ;;  %3359 = vmatprep.subr.bf16.mxu0 %v3756_v24  ;;  %v595_v23 = vcombine.high %v579_v18, %v579_v18  ;;  %v3801_v24 = vld [vmem:[%s4916_s1 + $0x270] sm:$0xff]   ;;  %v3810_v33 = vld [vmem:[%s4916_s1 + $0x2e0] sm:$0xff]   ;;  %v3813_v36 = vld [vmem:[%s4916_s1 + $0x258] sm:$0xff]  }
  0x1a   :  { %3381 = vmatprep.subr.bf16.mxu1 %v3757_v25  ;;  %v3802_v25 = vld [vmem:[%s4916_s1 + $0x2f0] sm:$0xff]   ;;  %v3811_v34 = vld [vmem:[%s4916_s1 + $0x220] sm:$0xff]   ;;  %v3814_v37 = vld [vmem:[%s4916_s1 + $0x2d8] sm:$0xff]  }
  0x1b   :  { %v3816_v39 = vld [vmem:[%s4916_s1 + $0x298] sm:$0xff]   ;;  %v3819_v43 = vld [vmem:[%s4916_s1 + $0x210] sm:$0xff]   ;;  %v23_v46 = vld [vmem:[%s4915_s0 + $0x8] sm:$0xff] }
  0x1c   :  { %3360 = vmatpush3.bf16.msra.mxu0 %v3758_v26  ;;  %v3803_v26 = vld [vmem:[%s4916_s1 + $0x230] sm:$0xff]   ;;  %v605_v48 = vrot.slane %v23_v46, %v4161_v41 }
  0x1d   :  { %3382 = vmatpush3.bf16.msra.mxu1 %v3759_v27  ;;  %3361 = vmatprep.subr.bf16.mxu0 %v3760_v29  ;;  %v3804_v27 = vld [vmem:[%s4916_s1 + $0x2b0] sm:$0xff]   ;;  %v3806_v29 = vld [vmem:[%s4916_s1 + $0x2e8] sm:$0xff]  }
  0x1e   :  { %3383 = vmatprep.subr.bf16.mxu1 %v3761_v30  ;;  %v3807_v30 = vld [vmem:[%s4916_s1 + $0x228] sm:$0xff]   ;;  %v3820_v44 = vld [vmem:[%s4916_s1 + $0x290] sm:$0xff]  }
  0x20   :  { %3362 = vmatpush3.bf16.msra.mxu0 %v3762_v31  ;;  %v3808_v31 = vld [vmem:[%s4916_s1 + $0x2a8] sm:$0xff]  }
  0x21   :  { %3384 = vmatpush3.bf16.msra.mxu1 %v3763_v32  ;;  %3391 = vmatprep.subr.bf16.mxu0 %v3765_v35  ;;  %v3809_v32 = vld [vmem:[%s4916_s1 + $0x260] sm:$0xff]  }
  0x22   :  { %3413 = vmatprep.subr.bf16.mxu1 %v3766_v38  ;;  %v3812_v35 = vld [vmem:[%s4916_s1 + $0x2a0] sm:$0xff]   ;;  %v3815_v38 = vld [vmem:[%s4916_s1 + $0x218] sm:$0xff]  }
  0x23   :  { %2346 = vmatmul.mubr.bf16.vlgmr.msra.gmra.mxu0 %v572_v45  ;;  %v3821_v45 = vld [vmem:[%s4916_s1 + $0x248] sm:$0xff]  }
  0x24   :  { %3392 = vmatpush3.bf16.msra.mxu0 %v3767_v47  ;;  %2386 = vmatmul.mubr.bf16.vlgmr.msra.gmra.mxu1 %v594_v51  ;;  %v3822_v47 = vld [vmem:[%s4916_s1 + $0x2c8] sm:$0xff]  }
  0x25   :  { %3393 = vmatprep.subr.bf16.mxu0 %v3769_v52  ;;  %3414 = vmatpush3.bf16.msra.mxu1 %v3768_v49  ;;  %v598_v49 = vcombine.high %v23_v46, %v23_v46  ;;  %v3824_v51 = vld [vmem:[%s4916_s1 + $0x288] sm:$0xff]   ;;  %v613_v52 = vcombine.high %v605_v48, %v605_v48 }
  0x26   :  { %2425 = vmatprep.mubr.bf16.mxu0 %v593_v50  ;;  %3415 = vmatprep.subr.bf16.mxu1 %v3770_v54  ;;  %v3823_v50 = vld [vmem:[%s4916_s1 + $0x208] sm:$0xff]   ;;  %v3825_v54 = vld [vmem:[%s4916_s1 + $0x240] sm:$0xff]  }
  0x27   :  { %2465 = vmatprep.mubr.bf16.mxu1 %v597_v56  ;;  %v4353_v53 = vrot.slane %v598_v49, %v4161_v41  ;;  %v635_v56 = vrot.slane %v613_v52, %v4161_v41  ;;  %v3872_v46 = vld [vmem:[%s4916_s1 + $0x428] sm:$0xff]   ;;  %v3875_v49 = vld [vmem:[%s4916_s1 + $0x4e0] sm:$0xff]   ;;  %v3878_v52 = vld [vmem:[%s4916_s1 + $0x458] sm:$0xff]  }
  0x28   :  { %3394 = vmatpush3.bf16.msra.mxu0 %v3771_v55  ;;  %v3826_v55 = vld [vmem:[%s4916_s1 + $0x2c0] sm:$0xff]  }
  0x29   :  { %3395 = vmatprep.subr.bf16.mxu0 %v3773_v58  ;;  %3416 = vmatpush3.bf16.msra.mxu1 %v3772_v57  ;;  %v614_v57 = vcombine.high %v4353_v53, %v4353_v53  ;;  %v3827_v58 = vld [vmem:[%s4916_s1 + $0x200] sm:$0xff]  }
  0x2a   :  { %3417 = vmatprep.subr.bf16.mxu1 %v3774_v59  ;;  %v3828_v59 = vld [vmem:[%s4916_s1 + $0x280] sm:$0xff]  }
  0x2c   :  { %3396 = vmatpush3.bf16.msra.mxu0 %v3775_v60  ;;  %v645_v60 = vcombine.high %v635_v56, %v635_v56 }
  0x2d   :  { %3397 = vmatprep.subr.bf16.mxu0 %v3777_v62  ;;  %3418 = vmatpush3.bf16.msra.mxu1 %v3776_v61  ;;  %v621_v61 = vrot.slane %v605_v48, %v4161_v41  ;;  %v3829_v62 = vld [vmem:[%s4916_s1 + $0x378] sm:$0xff]   ;;  %v3874_v48 = vld [vmem:[%s4916_s1 + $0x460] sm:$0xff]  }
  0x2e   :  { %3419 = vmatprep.subr.bf16.mxu1 %v3778_v63  ;;  %v3830_v63 = vld [vmem:[%s4916_s1 + $0x3f8] sm:$0xff]  }
  0x30   :  { %3398 = vmatpush3.bf16.msra.mxu0 %v3779_v0  ;;  %v642_v0 = vrot.slane %v614_v57, %v4161_v41  ;;  %v3883_v57 = vld [vmem:[%s4916_s1 + $0x4d0] sm:$0xff]  }
  0x31   :  { %3399 = vmatprep.subr.bf16.mxu0 %v3781_v2  ;;  %3420 = vmatpush3.bf16.msra.mxu1 %v3780_v1  ;;  %v3831_v1 = vld [vmem:[%s4916_s1 + $0x338] sm:$0xff]  }
  0x32   :  { %3421 = vmatprep.subr.bf16.mxu1 %v3782_v3  ;;  %v3832_v2 = vld [vmem:[%s4916_s1 + $0x3b8] sm:$0xff]   ;;  %v643_v3 = vcombine.high %v621_v61, %v621_v61 }
  0x34   :  { %3400 = vmatpush3.bf16.msra.mxu0 %v3783_v4  ;;  %v3833_v4 = vld [vmem:[%s4916_s1 + $0x370] sm:$0xff]  }
  0x35   :  { %3401 = vmatprep.subr.bf16.mxu0 %v3785_v6  ;;  %3422 = vmatpush3.bf16.msra.mxu1 %v3784_v5  ;;  %v3834_v5 = vld [vmem:[%s4916_s1 + $0x3f0] sm:$0xff]   ;;  %v646_v6 = vcombine.high %v642_v0, %v642_v0 }
  0x36   :  { %3423 = vmatprep.subr.bf16.mxu1 %v3786_v7  ;;  %v3835_v7 = vld [vmem:[%s4916_s1 + $0x330] sm:$0xff]  }
  0x38   :  { %3402 = vmatpush3.bf16.msra.mxu0 %v3787_v8  ;;  %v3836_v8 = vld [vmem:[%s4916_s1 + $0x3b0] sm:$0xff]  }
  0x39   :  { %3403 = vmatprep.subr.bf16.mxu0 %v3789_v10  ;;  %3424 = vmatpush3.bf16.msra.mxu1 %v3788_v9  ;;  %v3837_v9 = vld [vmem:[%s4916_s1 + $0x368] sm:$0xff]  }
  0x3a   :  { %3425 = vmatprep.subr.bf16.mxu1 %v3790_v11  ;;  %v3838_v10 = vld [vmem:[%s4916_s1 + $0x3e8] sm:$0xff]  }
  0x3b   :  { %v3839_v11 = vld [vmem:[%s4916_s1 + $0x328] sm:$0xff]  }
  0x3c   :  { %3404 = vmatpush3.bf16.msra.mxu0 %v3791_v12  ;;  %v3840_v12 = vld [vmem:[%s4916_s1 + $0x3a8] sm:$0xff]  }
  0x3d   :  { %3405 = vmatprep.subr.bf16.mxu0 %v3793_v14  ;;  %3426 = vmatpush3.bf16.msra.mxu1 %v3792_v13  ;;  %v3841_v13 = vld [vmem:[%s4916_s1 + $0x360] sm:$0xff]  }
  0x3e   :  { %3427 = vmatprep.subr.bf16.mxu1 %v3794_v15  ;;  %v3842_v14 = vld [vmem:[%s4916_s1 + $0x3e0] sm:$0xff]  }
  0x3f   :  { %v3843_v15 = vld [vmem:[%s4916_s1 + $0x320] sm:$0xff]  }
  0x40   :  { %3406 = vmatpush3.bf16.msra.mxu0 %v3795_v16  ;;  %v3844_v16 = vld [vmem:[%s4916_s1 + $0x3a0] sm:$0xff]  }
  0x41   :  { %3435 = vmatprep.subr.bf16.mxu0 %v3797_v19  ;;  %3428 = vmatpush3.bf16.msra.mxu1 %v3796_v17  ;;  %v3845_v17 = vld [vmem:[%s4916_s1 + $0x358] sm:$0xff]  }
  0x42   :  { %3457 = vmatprep.subr.bf16.mxu1 %v3798_v20  ;;  %v3847_v19 = vld [vmem:[%s4916_s1 + $0x318] sm:$0xff]  }
  0x43   :  { %2426 = vmatmul.mubr.bf16.vlgmr.msra.gmra.mxu0 %v579_v18  ;;  %v3846_v18 = vld [vmem:[%s4916_s1 + $0x3d8] sm:$0xff]  }
  0x44   :  { %3436 = vmatpush3.bf16.msra.mxu0 %v3799_v21  ;;  %2466 = vmatmul.mubr.bf16.vlgmr.msra.gmra.mxu1 %v595_v23  ;;  %v3848_v20 = vld [vmem:[%s4916_s1 + $0x398] sm:$0xff]   ;;  %v3849_v21 = vld [vmem:[%s4916_s1 + $0x350] sm:$0xff]  }
  0x45   :  { %3437 = vmatprep.subr.bf16.mxu0 %v3801_v24  ;;  %3458 = vmatpush3.bf16.msra.mxu1 %v3800_v22  ;;  %v3850_v22 = vld [vmem:[%s4916_s1 + $0x3d0] sm:$0xff]  }
  0x46   :  { %3459 = vmatprep.subr.bf16.mxu1 %v3802_v25  ;;  %2505 = vmatprep.mubr.bf16.mxu0 %v635_v56  ;;  %v3851_v23 = vld [vmem:[%s4916_s1 + $0x310] sm:$0xff]   ;;  %v3853_v25 = vld [vmem:[%s4916_s1 + $0x348] sm:$0xff]  }
  0x47   :  { %2545 = vmatprep.mubr.bf16.mxu1 %v645_v60  ;;  %v3852_v24 = vld [vmem:[%s4916_s1 + $0x390] sm:$0xff]   ;;  %v3886_v60 = vld [vmem:[%s4916_s1 + $0x448] sm:$0xff]  }
  0x48   :  { %3438 = vmatpush3.bf16.msra.mxu0 %v3803_v26  ;;  %v3854_v26 = vld [vmem:[%s4916_s1 + $0x3c8] sm:$0xff]   ;;  %v3882_v56 = vld [vmem:[%s4916_s1 + $0x450] sm:$0xff]  }
  0x49   :  { %3439 = vmatprep.subr.bf16.mxu0 %v3805_v28  ;;  %3460 = vmatpush3.bf16.msra.mxu1 %v3804_v27  ;;  %v3855_v27 = vld [vmem:[%s4916_s1 + $0x308] sm:$0xff]  }
  0x4a   :  { %3461 = vmatprep.subr.bf16.mxu1 %v3806_v29  ;;  %v3856_v28 = vld [vmem:[%s4916_s1 + $0x388] sm:$0xff]   ;;  %v3857_v29 = vld [vmem:[%s4916_s1 + $0x340] sm:$0xff]  }
  0x4c   :  { %3440 = vmatpush3.bf16.msra.mxu0 %v3807_v30  ;;  %v3858_v30 = vld [vmem:[%s4916_s1 + $0x3c0] sm:$0xff]  }
  0x4d   :  { %3441 = vmatprep.subr.bf16.mxu0 %v3809_v32  ;;  %3462 = vmatpush3.bf16.msra.mxu1 %v3808_v31  ;;  %v3859_v31 = vld [vmem:[%s4916_s1 + $0x300] sm:$0xff]  }
  0x4e   :  { %3463 = vmatprep.subr.bf16.mxu1 %v3810_v33  ;;  %v3860_v32 = vld [vmem:[%s4916_s1 + $0x380] sm:$0xff]   ;;  %v628_v33 = vrot.slane %v4353_v53, %v4161_v41  ;;  %v3879_v53 = vld [vmem:[%s4916_s1 + $0x4d8] sm:$0xff]  }
  0x50   :  { %3442 = vmatpush3.bf16.msra.mxu0 %v3811_v34  ;;  %v3862_v34 = vld [vmem:[%s4916_s1 + $0x478] sm:$0xff]  }
  0x51   :  { %3443 = vmatprep.subr.bf16.mxu0 %v3813_v36  ;;  %3464 = vmatpush3.bf16.msra.mxu1 %v3812_v35  ;;  %v3863_v35 = vld [vmem:[%s4916_s1 + $0x4f8] sm:$0xff]  }
  0x52   :  { %3465 = vmatprep.subr.bf16.mxu1 %v3814_v37  ;;  %v3864_v36 = vld [vmem:[%s4916_s1 + $0x438] sm:$0xff]  }
  0x53   :  { %v3865_v37 = vld [vmem:[%s4916_s1 + $0x4b8] sm:$0xff]  }
  0x54   :  { %3444 = vmatpush3.bf16.msra.mxu0 %v3815_v38  ;;  %v644_v38 = vcombine.high %v628_v33, %v628_v33 }
  0x55   :  { %3445 = vmatprep.subr.bf16.mxu0 %v3817_v40  ;;  %3466 = vmatpush3.bf16.msra.mxu1 %v3816_v39  ;;  %v3866_v39 = vld [vmem:[%s4916_s1 + $0x470] sm:$0xff]  }
  0x56   :  { %3467 = vmatprep.subr.bf16.mxu1 %v3818_v42  ;;  %v3867_v40 = vld [vmem:[%s4916_s1 + $0x4f0] sm:$0xff]  }
  0x57   :  { %v3868_v42 = vld [vmem:[%s4916_s1 + $0x430] sm:$0xff]  }
  0x58   :  { %3446 = vmatpush3.bf16.msra.mxu0 %v3819_v43  ;;  %v3869_v43 = vld [vmem:[%s4916_s1 + $0x4b0] sm:$0xff]  }
  0x59   :  { %3447 = vmatprep.subr.bf16.mxu0 %v3821_v45  ;;  %3468 = vmatpush3.bf16.msra.mxu1 %v3820_v44  ;;  %v3870_v44 = vld [vmem:[%s4916_s1 + $0x468] sm:$0xff]  }
  0x5a   :  { %3469 = vmatprep.subr.bf16.mxu1 %v3822_v47  ;;  %v3871_v45 = vld [vmem:[%s4916_s1 + $0x4e8] sm:$0xff]  }
  0x5b   :  { %v3873_v47 = vld [vmem:[%s4916_s1 + $0x4a8] sm:$0xff]  }
  0x5c   :  { %3448 = vmatpush3.bf16.msra.mxu0 %v3823_v50  ;;  %v3876_v50 = vld [vmem:[%s4916_s1 + $0x420] sm:$0xff]  }
  0x5d   :  { %3449 = vmatprep.subr.bf16.mxu0 %v3825_v54  ;;  %3470 = vmatpush3.bf16.msra.mxu1 %v3824_v51  ;;  %v3877_v51 = vld [vmem:[%s4916_s1 + $0x4a0] sm:$0xff]   ;;  %v3880_v54 = vld [vmem:[%s4916_s1 + $0x418] sm:$0xff]  }
  0x5e   :  { %3471 = vmatprep.subr.bf16.mxu1 %v3826_v55  ;;  %v3881_v55 = vld [vmem:[%s4916_s1 + $0x498] sm:$0xff]  }
  0x60   :  { %3450 = vmatpush3.bf16.msra.mxu0 %v3827_v58  ;;  %v3884_v58 = vld [vmem:[%s4916_s1 + $0x410] sm:$0xff]  }
  0x61   :  { %3479 = vmatprep.subr.bf16.mxu0 %v3829_v62  ;;  %3472 = vmatpush3.bf16.msra.mxu1 %v3828_v59  ;;  %v3885_v59 = vld [vmem:[%s4916_s1 + $0x490] sm:$0xff]   ;;  %v3887_v62 = vld [vmem:[%s4916_s1 + $0x4c8] sm:$0xff]  }
  0x62   :  { %3501 = vmatprep.subr.bf16.mxu1 %v3830_v63 }
  0x63   :  { %2506 = vmatmul.mubr.bf16.vlgmr.msra.gmra.mxu0 %v621_v61  ;;  %v24_v61 = vld [vmem:[%s4915_s0 + $0x10] sm:$0xff] }
  0x64   :  { %3480 = vmatpush3.bf16.msra.mxu0 %v3831_v1  ;;  %2585 = vmatprep.mubr.bf16.mxu0 %v642_v0  ;;  %v654_v63 = vrot.slane %v24_v61, %v4161_v41  ;;  %v647_v0 = vcombine.high %v24_v61, %v24_v61  ;;  %v3888_v1 = vld [vmem:[%s4916_s1 + $0x408] sm:$0xff]  }
  0x65   :  { %2546 = vmatmul.mubr.bf16.vlgmr.msra.gmra.mxu1 %v643_v3  ;;  %3481 = vmatprep.subr.bf16.mxu0 %v3833_v4  ;;  %v3937_v61 = vld [vmem:[%s4916_s1 + $0x628] sm:$0xff]  }
  0x66   :  { %3502 = vmatpush3.bf16.msra.mxu1 %v3832_v2  ;;  %2625 = vmatprep.mubr.bf16.mxu1 %v646_v6  ;;  %v3889_v2 = vld [vmem:[%s4916_s1 + $0x488] sm:$0xff]   ;;  %v662_v3 = vcombine.high %v654_v63, %v654_v63  ;;  %v4559_v4 = vrot.slane %v647_v0, %v4161_v41  ;;  %v3891_v6 = vld [vmem:[%s4916_s1 + $0x4c0] sm:$0xff]  }
  0x67   :  { %3503 = vmatprep.subr.bf16.mxu1 %v3834_v5  ;;  %v3890_v5 = vld [vmem:[%s4916_s1 + $0x440] sm:$0xff]  }
  0x68   :  { %3482 = vmatpush3.bf16.msra.mxu0 %v3835_v7  ;;  %v684_v7 = vrot.slane %v662_v3, %v4161_v41  ;;  %v3940_v0 = vld [vmem:[%s4916_s1 + $0x6e0] sm:$0xff]   ;;  %v3943_v3 = vld [vmem:[%s4916_s1 + $0x658] sm:$0xff]  }
  0x69   :  { %3483 = vmatprep.subr.bf16.mxu0 %v3837_v9  ;;  %v3892_v9 = vld [vmem:[%s4916_s1 + $0x400] sm:$0xff]  }
  0x6a   :  { %3504 = vmatpush3.bf16.msra.mxu1 %v3836_v8  ;;  %v663_v8 = vcombine.high %v4559_v4, %v4559_v4 }
  0x6b   :  { %3505 = vmatprep.subr.bf16.mxu1 %v3838_v10  ;;  %v3893_v10 = vld [vmem:[%s4916_s1 + $0x480] sm:$0xff]  }
  0x6c   :  { %3484 = vmatpush3.bf16.msra.mxu0 %v3839_v11  ;;  %v694_v11 = vcombine.high %v684_v7, %v684_v7 }
  0x6d   :  { %3485 = vmatprep.subr.bf16.mxu0 %v3841_v13  ;;  %v3894_v13 = vld [vmem:[%s4916_s1 + $0x578] sm:$0xff]  }
  0x6e   :  { %3506 = vmatpush3.bf16.msra.mxu1 %v3840_v12  ;;  %v670_v12 = vrot.slane %v654_v63, %v4161_v41  ;;  %v3939_v63 = vld [vmem:[%s4916_s1 + $0x660] sm:$0xff]  }
  0x6f   :  { %3507 = vmatprep.subr.bf16.mxu1 %v3842_v14  ;;  %v3895_v14 = vld [vmem:[%s4916_s1 + $0x5f8] sm:$0xff]  }
  0x70   :  { %3486 = vmatpush3.bf16.msra.mxu0 %v3843_v15  ;;  %v691_v15 = vrot.slane %v663_v8, %v4161_v41  ;;  %v3948_v8 = vld [vmem:[%s4916_s1 + $0x6d0] sm:$0xff]  }
  0x71   :  { %3487 = vmatprep.subr.bf16.mxu0 %v3845_v17  ;;  %v3897_v17 = vld [vmem:[%s4916_s1 + $0x5b8] sm:$0xff]  }
  0x72   :  { %3508 = vmatpush3.bf16.msra.mxu1 %v3844_v16  ;;  %v3896_v16 = vld [vmem:[%s4916_s1 + $0x538] sm:$0xff]  }
  0x73   :  { %3509 = vmatprep.subr.bf16.mxu1 %v3846_v18  ;;  %v692_v18 = vcombine.high %v670_v12, %v670_v12 }
  0x74   :  { %3488 = vmatpush3.bf16.msra.mxu0 %v3847_v19  ;;  %v3898_v19 = vld [vmem:[%s4916_s1 + $0x570] sm:$0xff]  }
  0x75   :  { %3489 = vmatprep.subr.bf16.mxu0 %v3849_v21  ;;  %v695_v21 = vcombine.high %v691_v15, %v691_v15 }
  0x76   :  { %3510 = vmatpush3.bf16.msra.mxu1 %v3848_v20  ;;  %v3899_v20 = vld [vmem:[%s4916_s1 + $0x5f0] sm:$0xff]  }
  0x77   :  { %3511 = vmatprep.subr.bf16.mxu1 %v3850_v22  ;;  %v3900_v22 = vld [vmem:[%s4916_s1 + $0x530] sm:$0xff]  }
  0x78   :  { %3490 = vmatpush3.bf16.msra.mxu0 %v3851_v23  ;;  %v3901_v23 = vld [vmem:[%s4916_s1 + $0x5b0] sm:$0xff]  }
  0x79   :  { %3491 = vmatprep.subr.bf16.mxu0 %v3853_v25  ;;  %v3903_v25 = vld [vmem:[%s4916_s1 + $0x5e8] sm:$0xff]  }
  0x7a   :  { %3512 = vmatpush3.bf16.msra.mxu1 %v3852_v24  ;;  %v3902_v24 = vld [vmem:[%s4916_s1 + $0x568] sm:$0xff]  }
  0x7b   :  { %3513 = vmatprep.subr.bf16.mxu1 %v3854_v26  ;;  %v3904_v26 = vld [vmem:[%s4916_s1 + $0x528] sm:$0xff]  }
  0x7c   :  { %3492 = vmatpush3.bf16.msra.mxu0 %v3855_v27  ;;  %v3905_v27 = vld [vmem:[%s4916_s1 + $0x5a8] sm:$0xff]  }
  0x7d   :  { %3493 = vmatprep.subr.bf16.mxu0 %v3857_v29  ;;  %v3907_v29 = vld [vmem:[%s4916_s1 + $0x5e0] sm:$0xff]  }
  0x7e   :  { %3514 = vmatpush3.bf16.msra.mxu1 %v3856_v28  ;;  %v3906_v28 = vld [vmem:[%s4916_s1 + $0x560] sm:$0xff]  }
  0x7f   :  { %3515 = vmatprep.subr.bf16.mxu1 %v3858_v30  ;;  %v3908_v30 = vld [vmem:[%s4916_s1 + $0x520] sm:$0xff]  }
  0x80   :  { %3494 = vmatpush3.bf16.msra.mxu0 %v3859_v31  ;;  %v3909_v31 = vld [vmem:[%s4916_s1 + $0x5a0] sm:$0xff]  }
  0x81   :  { %3523 = vmatprep.subr.bf16.mxu0 %v3862_v34  ;;  %v3912_v34 = vld [vmem:[%s4916_s1 + $0x518] sm:$0xff]  }
  0x82   :  { %3516 = vmatpush3.bf16.msra.mxu1 %v3860_v32  ;;  %v3910_v32 = vld [vmem:[%s4916_s1 + $0x558] sm:$0xff]  }
  0x83   :  { %2586 = vmatmul.mubr.bf16.vlgmr.msra.gmra.mxu0 %v628_v33  ;;  %3545 = vmatprep.subr.bf16.mxu1 %v3863_v35  ;;  %v3911_v33 = vld [vmem:[%s4916_s1 + $0x5d8] sm:$0xff]  }
  0x84   :  { %3524 = vmatpush3.bf16.msra.mxu0 %v3864_v36  ;;  %2665 = vmatprep.mubr.bf16.mxu0 %v684_v7  ;;  %v3913_v35 = vld [vmem:[%s4916_s1 + $0x598] sm:$0xff]   ;;  %v3914_v36 = vld [vmem:[%s4916_s1 + $0x550] sm:$0xff]  }
  0x85   :  { %2626 = vmatmul.mubr.bf16.vlgmr.msra.gmra.mxu1 %v644_v38  ;;  %3525 = vmatprep.subr.bf16.mxu0 %v3866_v39  ;;  %v3916_v38 = vld [vmem:[%s4916_s1 + $0x510] sm:$0xff]  }
  0x86   :  { %3546 = vmatpush3.bf16.msra.mxu1 %v3865_v37  ;;  %2705 = vmatprep.mubr.bf16.mxu1 %v694_v11  ;;  %v3915_v37 = vld [vmem:[%s4916_s1 + $0x5d0] sm:$0xff]   ;;  %v3951_v11 = vld [vmem:[%s4916_s1 + $0x648] sm:$0xff]  }
  0x87   :  { %3547 = vmatprep.subr.bf16.mxu1 %v3867_v40  ;;  %v3917_v39 = vld [vmem:[%s4916_s1 + $0x590] sm:$0xff]   ;;  %v3918_v40 = vld [vmem:[%s4916_s1 + $0x548] sm:$0xff]  }
  0x88   :  { %3526 = vmatpush3.bf16.msra.mxu0 %v3868_v42  ;;  %v3919_v42 = vld [vmem:[%s4916_s1 + $0x5c8] sm:$0xff]   ;;  %v3947_v7 = vld [vmem:[%s4916_s1 + $0x650] sm:$0xff]  }
  0x89   :  { %3527 = vmatprep.subr.bf16.mxu0 %v3870_v44  ;;  %v3921_v44 = vld [vmem:[%s4916_s1 + $0x588] sm:$0xff]  }
  0x8a   :  { %3548 = vmatpush3.bf16.msra.mxu1 %v3869_v43  ;;  %v3920_v43 = vld [vmem:[%s4916_s1 + $0x508] sm:$0xff]  }
  0x8b   :  { %3549 = vmatprep.subr.bf16.mxu1 %v3871_v45  ;;  %v3922_v45 = vld [vmem:[%s4916_s1 + $0x540] sm:$0xff]  }
  0x8c   :  { %3528 = vmatpush3.bf16.msra.mxu0 %v3872_v46  ;;  %v3923_v46 = vld [vmem:[%s4916_s1 + $0x5c0] sm:$0xff]  }
  0x8d   :  { %3529 = vmatprep.subr.bf16.mxu0 %v3874_v48  ;;  %v3925_v48 = vld [vmem:[%s4916_s1 + $0x580] sm:$0xff]  }
  0x8e   :  { %3550 = vmatpush3.bf16.msra.mxu1 %v3873_v47  ;;  %v3924_v47 = vld [vmem:[%s4916_s1 + $0x500] sm:$0xff]  }
  0x8f   :  { %3551 = vmatprep.subr.bf16.mxu1 %v3875_v49  ;;  %v677_v49 = vrot.slane %v4559_v4, %v4161_v41  ;;  %v3944_v4 = vld [vmem:[%s4916_s1 + $0x6d8] sm:$0xff]  }
  0x90   :  { %3530 = vmatpush3.bf16.msra.mxu0 %v3876_v50  ;;  %v3927_v50 = vld [vmem:[%s4916_s1 + $0x678] sm:$0xff]  }
  0x91   :  { %3531 = vmatprep.subr.bf16.mxu0 %v3878_v52  ;;  %v3929_v52 = vld [vmem:[%s4916_s1 + $0x638] sm:$0xff]  }
  0x92   :  { %3552 = vmatpush3.bf16.msra.mxu1 %v3877_v51  ;;  %v3928_v51 = vld [vmem:[%s4916_s1 + $0x6f8] sm:$0xff]  }
  0x93   :  { %3553 = vmatprep.subr.bf16.mxu1 %v3879_v53  ;;  %v3930_v53 = vld [vmem:[%s4916_s1 + $0x6b8] sm:$0xff]  }
  0x94   :  { %3532 = vmatpush3.bf16.msra.mxu0 %v3880_v54  ;;  %v693_v54 = vcombine.high %v677_v49, %v677_v49 }
  0x95   :  { %3533 = vmatprep.subr.bf16.mxu0 %v3882_v56  ;;  %v3932_v56 = vld [vmem:[%s4916_s1 + $0x6f0] sm:$0xff]  }
  0x96   :  { %3554 = vmatpush3.bf16.msra.mxu1 %v3881_v55  ;;  %v3931_v55 = vld [vmem:[%s4916_s1 + $0x670] sm:$0xff]  }
  0x97   :  { %3555 = vmatprep.subr.bf16.mxu1 %v3883_v57  ;;  %v3933_v57 = vld [vmem:[%s4916_s1 + $0x630] sm:$0xff]  }
  0x98   :  { %3534 = vmatpush3.bf16.msra.mxu0 %v3884_v58  ;;  %v3934_v58 = vld [vmem:[%s4916_s1 + $0x6b0] sm:$0xff]  }
  0x99   :  { %3535 = vmatprep.subr.bf16.mxu0 %v3886_v60  ;;  %v3936_v60 = vld [vmem:[%s4916_s1 + $0x6e8] sm:$0xff]  }
  0x9a   :  { %3556 = vmatpush3.bf16.msra.mxu1 %v3885_v59  ;;  %v3935_v59 = vld [vmem:[%s4916_s1 + $0x668] sm:$0xff]  }
  0x9b   :  { %3557 = vmatprep.subr.bf16.mxu1 %v3887_v62  ;;  %v3938_v62 = vld [vmem:[%s4916_s1 + $0x6a8] sm:$0xff]  }
  0x9c   :  { %3536 = vmatpush3.bf16.msra.mxu0 %v3888_v1  ;;  %v3941_v1 = vld [vmem:[%s4916_s1 + $0x620] sm:$0xff]  }
  0x9d   :  { %3537 = vmatprep.subr.bf16.mxu0 %v3890_v5  ;;  %v3945_v5 = vld [vmem:[%s4916_s1 + $0x618] sm:$0xff]  }
  0x9e   :  { %3558 = vmatpush3.bf16.msra.mxu1 %v3889_v2  ;;  %v3942_v2 = vld [vmem:[%s4916_s1 + $0x6a0] sm:$0xff]  }
  0x9f   :  { %3559 = vmatprep.subr.bf16.mxu1 %v3891_v6  ;;  %v3946_v6 = vld [vmem:[%s4916_s1 + $0x698] sm:$0xff]  }
  0xa0   :  { %3538 = vmatpush3.bf16.msra.mxu0 %v3892_v9  ;;  %v3949_v9 = vld [vmem:[%s4916_s1 + $0x610] sm:$0xff]  }
  0xa1   :  { %3567 = vmatprep.subr.bf16.mxu0 %v3894_v13  ;;  %v3952_v13 = vld [vmem:[%s4916_s1 + $0x6c8] sm:$0xff]  }
  0xa2   :  { %3560 = vmatpush3.bf16.msra.mxu1 %v3893_v10  ;;  %v3950_v10 = vld [vmem:[%s4916_s1 + $0x690] sm:$0xff]  }
  0xa3   :  { %2666 = vmatmul.mubr.bf16.vlgmr.msra.gmra.mxu0 %v670_v12  ;;  %3589 = vmatprep.subr.bf16.mxu1 %v3895_v14  ;;  %v25_v12 = vld [vmem:[%s4915_s0 + $0x18] sm:$0xff] }
  0xa4   :  { %3568 = vmatpush3.bf16.msra.mxu0 %v3896_v16  ;;  %2745 = vmatprep.mubr.bf16.mxu0 %v691_v15  ;;  %v703_v14 = vrot.slane %v25_v12, %v4161_v41  ;;  %v696_v15 = vcombine.high %v25_v12, %v25_v12  ;;  %v3953_v16 = vld [vmem:[%s4916_s1 + $0x608] sm:$0xff]  }
  0xa5   :  { %2706 = vmatmul.mubr.bf16.vlgmr.msra.gmra.mxu1 %v692_v18  ;;  %3569 = vmatprep.subr.bf16.mxu0 %v3898_v19 }
  0xa6   :  { %3590 = vmatpush3.bf16.msra.mxu1 %v3897_v17  ;;  %2785 = vmatprep.mubr.bf16.mxu1 %v695_v21  ;;  %v3955_v17 = vld [vmem:[%s4916_s1 + $0x640] sm:$0xff]   ;;  %v711_v18 = vcombine.high %v703_v14, %v703_v14  ;;  %v4765_v19 = vrot.slane %v696_v15, %v4161_v41 }
  0xa7   :  { %3591 = vmatprep.subr.bf16.mxu1 %v3899_v20  ;;  %v3954_v20 = vld [vmem:[%s4916_s1 + $0x688] sm:$0xff]   ;;  %v3956_v21 = vld [vmem:[%s4916_s1 + $0x6c0] sm:$0xff]  }
  0xa8   :  { %3570 = vmatpush3.bf16.msra.mxu0 %v3900_v22  ;;  %v3957_v22 = vld [vmem:[%s4916_s1 + $0x600] sm:$0xff]  }
  0xa9   :  { %3571 = vmatprep.subr.bf16.mxu0 %v3902_v24  ;;  %v712_v24 = vcombine.high %v4765_v19, %v4765_v19 }
  0xaa   :  { %3592 = vmatpush3.bf16.msra.mxu1 %v3901_v23  ;;  %v733_v23 = vrot.slane %v711_v18, %v4161_v41 }
  0xab   :  { %3593 = vmatprep.subr.bf16.mxu1 %v3903_v25  ;;  %v3958_v25 = vld [vmem:[%s4916_s1 + $0x680] sm:$0xff]  }
  0xac   :  { %3572 = vmatpush3.bf16.msra.mxu0 %v3904_v26  ;;  %v743_v26 = vcombine.high %v733_v23, %v733_v23 }
  0xad   :  { %3573 = vmatprep.subr.bf16.mxu0 %v3906_v28  ;;  %v3959_v28 = vld [vmem:[%s4916_s1 + $0x778] sm:$0xff]  }
  0xae   :  { %3594 = vmatpush3.bf16.msra.mxu1 %v3905_v27  ;;  %v719_v27 = vrot.slane %v703_v14, %v4161_v41 }
  0xaf   :  { %3595 = vmatprep.subr.bf16.mxu1 %v3907_v29  ;;  %v3960_v29 = vld [vmem:[%s4916_s1 + $0x7f8] sm:$0xff]  }
  0xb0   :  { %3574 = vmatpush3.bf16.msra.mxu0 %v3908_v30  ;;  %v740_v30 = vrot.slane %v712_v24, %v4161_v41 }
  0xb1   :  { %3575 = vmatprep.subr.bf16.mxu0 %v3910_v32  ;;  %v3962_v32 = vld [vmem:[%s4916_s1 + $0x7b8] sm:$0xff]  }
  0xb2   :  { %3596 = vmatpush3.bf16.msra.mxu1 %v3909_v31  ;;  %v3961_v31 = vld [vmem:[%s4916_s1 + $0x738] sm:$0xff]  }
  0xb3   :  { %3597 = vmatprep.subr.bf16.mxu1 %v3911_v33  ;;  %v741_v33 = vcombine.high %v719_v27, %v719_v27 }
  0xb4   :  { %3576 = vmatpush3.bf16.msra.mxu0 %v3912_v34  ;;  %v3963_v34 = vld [vmem:[%s4916_s1 + $0x770] sm:$0xff]  }
  0xb5   :  { %3577 = vmatprep.subr.bf16.mxu0 %v3914_v36  ;;  %v744_v36 = vcombine.high %v740_v30, %v740_v30 }
  0xb6   :  { %3598 = vmatpush3.bf16.msra.mxu1 %v3913_v35  ;;  %v3964_v35 = vld [vmem:[%s4916_s1 + $0x7f0] sm:$0xff]  }
  0xb7   :  { %3599 = vmatprep.subr.bf16.mxu1 %v3915_v37 }
  0xb8   :  { %3578 = vmatpush3.bf16.msra.mxu0 %v3916_v38  ;;  %v3081_v38 = vld [vmem:[%s4917_s2] ss:$0 sm:$0xff] }
  0xb9   :  { %3579 = vmatprep.subr.bf16.mxu0 %v3918_v40  ;;  %v3966_v40 = vld [vmem:[%s4916_s1 + $0x7b0] sm:$0xff]  }
  0xba   :  { %3600 = vmatpush3.bf16.msra.mxu1 %v3917_v39  ;;  %v3965_v39 = vld [vmem:[%s4916_s1 + $0x730] sm:$0xff]  }
  0xbb   :  { %3601 = vmatprep.subr.bf16.mxu1 %v3919_v42 }
  0xbc   :  { %3580 = vmatpush3.bf16.msra.mxu0 %v3920_v43 }
  0xbd   :  { %3581 = vmatprep.subr.bf16.mxu0 %v3922_v45 }
  0xbe   :  { %3602 = vmatpush3.bf16.msra.mxu1 %v3921_v44  ;;  %v3967_v44 = vld [vmem:[%s4916_s1 + $0x768] sm:$0xff]  }
  0xbf   :  { %3603 = vmatprep.subr.bf16.mxu1 %v3923_v46  ;;  %v3968_v46 = vld [vmem:[%s4916_s1 + $0x7e8] sm:$0xff]  }
  0xc0   :  { %3582 = vmatpush3.bf16.msra.mxu0 %v3924_v47 }
  0xc1   :  { %3611 = vmatprep.subr.bf16.mxu0 %v3927_v50 }
  0xc2   :  { %3604 = vmatpush3.bf16.msra.mxu1 %v3925_v48 }
  0xc3   :  { %2746 = vmatmul.mubr.bf16.vlgmr.msra.gmra.mxu0 %v677_v49  ;;  %3633 = vmatprep.subr.bf16.mxu1 %v3928_v51  ;;  %v3969_v49 = vld [vmem:[%s4916_s1 + $0x728] sm:$0xff]  }
  0xc4   :  { %3612 = vmatpush3.bf16.msra.mxu0 %v3929_v52  ;;  %2825 = vmatprep.mubr.bf16.mxu0 %v733_v23  ;;  %v3970_v52 = vld [vmem:[%s4916_s1 + $0x7a8] sm:$0xff]  }
  0xc5   :  { %2786 = vmatmul.mubr.bf16.vlgmr.msra.gmra.mxu1 %v693_v54  ;;  %3613 = vmatprep.subr.bf16.mxu0 %v3931_v55  ;;  %v3971_v55 = vld [vmem:[%s4916_s1 + $0x760] sm:$0xff]  }
  0xc6   :  { %3634 = vmatpush3.bf16.msra.mxu1 %v3930_v53  ;;  %2865 = vmatprep.mubr.bf16.mxu1 %v743_v26 }
  0xc7   :  { %3635 = vmatprep.subr.bf16.mxu1 %v3932_v56 }
  0xc8   :  { %3614 = vmatpush3.bf16.msra.mxu0 %v3933_v57  ;;  %v3972_v57 = vld [vmem:[%s4916_s1 + $0x7e0] sm:$0xff]  }
  0xc9   :  { %3615 = vmatprep.subr.bf16.mxu0 %v3935_v59  ;;  %v3973_v59 = vld [vmem:[%s4916_s1 + $0x720] sm:$0xff]  }
  0xca   :  { %3636 = vmatpush3.bf16.msra.mxu1 %v3934_v58 }
  0xcb   :  { %3637 = vmatprep.subr.bf16.mxu1 %v3936_v60  ;;  %v3974_v60 = vld [vmem:[%s4916_s1 + $0x7a0] sm:$0xff]  }
  0xcc   :  { %3616 = vmatpush3.bf16.msra.mxu0 %v3937_v61  ;;  %v3975_v61 = vld [vmem:[%s4916_s1 + $0x758] sm:$0xff]  }
  0xcd   :  { %3617 = vmatprep.subr.bf16.mxu0 %v3939_v63  ;;  %v3977_v63 = vld [vmem:[%s4916_s1 + $0x718] sm:$0xff]  }
  0xce   :  { %3638 = vmatpush3.bf16.msra.mxu1 %v3938_v62  ;;  %v3976_v62 = vld [vmem:[%s4916_s1 + $0x7d8] sm:$0xff]  }
  0xcf   :  { %3639 = vmatprep.subr.bf16.mxu1 %v3940_v0  ;;  %v3978_v0 = vld [vmem:[%s4916_s1 + $0x798] sm:$0xff]  }
  0xd0   :  { %3618 = vmatpush3.bf16.msra.mxu0 %v3941_v1  ;;  %v3979_v1 = vld [vmem:[%s4916_s1 + $0x750] sm:$0xff]  }
  0xd1   :  { %3619 = vmatprep.subr.bf16.mxu0 %v3943_v3  ;;  %v3981_v3 = vld [vmem:[%s4916_s1 + $0x710] sm:$0xff]  }
  0xd2   :  { %3640 = vmatpush3.bf16.msra.mxu1 %v3942_v2  ;;  %v3980_v2 = vld [vmem:[%s4916_s1 + $0x7d0] sm:$0xff]  }
  0xd3   :  { %3641 = vmatprep.subr.bf16.mxu1 %v3944_v4  ;;  %v3982_v4 = vld [vmem:[%s4916_s1 + $0x790] sm:$0xff]  }
  0xd4   :  { %3620 = vmatpush3.bf16.msra.mxu0 %v3945_v5  ;;  %v3983_v5 = vld [vmem:[%s4916_s1 + $0x748] sm:$0xff]  }
  0xd5   :  { %3621 = vmatprep.subr.bf16.mxu0 %v3947_v7  ;;  %v3985_v7 = vld [vmem:[%s4916_s1 + $0x708] sm:$0xff]  }
  0xd6   :  { %3642 = vmatpush3.bf16.msra.mxu1 %v3946_v6  ;;  %v3984_v6 = vld [vmem:[%s4916_s1 + $0x7c8] sm:$0xff]  }
  0xd7   :  { %3643 = vmatprep.subr.bf16.mxu1 %v3948_v8  ;;  %v3987_v8 = vld [vmem:[%s4916_s1 + $0x740] sm:$0xff]  }
  0xd8   :  { %3622 = vmatpush3.bf16.msra.mxu0 %v3949_v9  ;;  %v3986_v9 = vld [vmem:[%s4916_s1 + $0x788] sm:$0xff]  }
  0xd9   :  { %3623 = vmatprep.subr.bf16.mxu0 %v3951_v11  ;;  %v3989_v11 = vld [vmem:[%s4916_s1 + $0x700] sm:$0xff]  }
  0xda   :  { %3644 = vmatpush3.bf16.msra.mxu1 %v3950_v10  ;;  %v3988_v10 = vld [vmem:[%s4916_s1 + $0x7c0] sm:$0xff]  }
  0xdb   :  { %3645 = vmatprep.subr.bf16.mxu1 %v3952_v13 }
  0xdc   :  { %3624 = vmatpush3.bf16.msra.mxu0 %v3953_v16 }
  0xdd   :  { %3625 = vmatprep.subr.bf16.mxu0 %v3955_v17 }
  0xde   :  { %3646 = vmatpush3.bf16.msra.mxu1 %v3954_v20 }
  0xdf   :  { %3647 = vmatprep.subr.bf16.mxu1 %v3956_v21 }
  0xe0   :  { %3626 = vmatpush3.bf16.msra.mxu0 %v3957_v22 }
  0xe1   :  { %3655 = vmatprep.subr.bf16.mxu0 %v3959_v28 }
  0xe2   :  { %3648 = vmatpush3.bf16.msra.mxu1 %v3958_v25 }
  0xe3   :  { %v3363_v37 = vpop.f32.mrf.mxu0  ;;  %2826 = vmatmul.mubr.bf16.vlgmr.msra.gmra.mxu0 %v719_v27  ;;  %3677 = vmatprep.subr.bf16.mxu1 %v3960_v29 }
  0xe4   :  { %3656 = vmatpush3.bf16.msra.mxu0 %v3961_v31  ;;  %2905 = vmatprep.mubr.bf16.mxu0 %v740_v30  ;;  %v3385_v42 = vpop.f32.mrf.mxu1 }
  0xe5   :  { %2866 = vmatmul.mubr.bf16.vlgmr.msra.gmra.mxu1 %v741_v33  ;;  %v3364_v43 = vpop.f32.mrf.mxu0  ;;  %3657 = vmatprep.subr.bf16.mxu0 %v3963_v34 }
  0xe6   :  { %3678 = vmatpush3.bf16.msra.mxu1 %v3962_v32  ;;  %v3365_v45 = vadd.f32 %v3364_v43, %v3363_v37  ;;  %2945 = vmatprep.mubr.bf16.mxu1 %v744_v36  ;;  %v3386_v47 = vpop.f32.mrf.mxu1 }
  0xe7   :  { %v3366_v48 = vpop.f32.mrf.mxu0  ;;  %3679 = vmatprep.subr.bf16.mxu1 %v3964_v35  ;;  %v3387_v51 = vadd.f32 %v3386_v47, %v3385_v42 }
  0xe8   :  { %v2348_v50 = vadd.f32 %v3365_v45, %v3081_v38  ;;  %3658 = vmatpush3.bf16.msra.mxu0 %v3965_v39  ;;  %v3388_v53 = vpop.f32.mrf.mxu1 }
  0xe9   :  { %v3367_v54 = vpop.f32.mrf.mxu0  ;;  %3659 = vmatprep.subr.bf16.mxu0 %v3967_v44 }
  0xea   :  { %v2388_v56 = vadd.f32 %v3387_v51, %v2348_v50  ;;  %3680 = vmatpush3.bf16.msra.mxu1 %v3966_v40  ;;  %v3389_v58 = vpop.f32.mrf.mxu1 }
  0xeb   :  { %3681 = vmatprep.subr.bf16.mxu1 %v3968_v46 }
  0xec   :  { %3660 = vmatpush3.bf16.msra.mxu0 %v3969_v49 }
  0xed   :  { %3661 = vmatprep.subr.bf16.mxu0 %v3971_v55 }
  0xee   :  { %3682 = vmatpush3.bf16.msra.mxu1 %v3970_v52 }
  0xef   :  { %3683 = vmatprep.subr.bf16.mxu1 %v3972_v57 }
  0xf0   :  { %3662 = vmatpush3.bf16.msra.mxu0 %v3973_v59 }
  0xf1   :  { %3663 = vmatprep.subr.bf16.mxu0 %v3975_v61 }
  0xf2   :  { %3684 = vmatpush3.bf16.msra.mxu1 %v3974_v60 }
  0xf3   :  { %3685 = vmatprep.subr.bf16.mxu1 %v3976_v62 }
  0xf4   :  { %3664 = vmatpush3.bf16.msra.mxu0 %v3977_v63 }
  0xf5   :  { %3665 = vmatprep.subr.bf16.mxu0 %v3979_v1 }
  0xf6   :  { %3686 = vmatpush3.bf16.msra.mxu1 %v3978_v0 }
  0xf7   :  { %3687 = vmatprep.subr.bf16.mxu1 %v3980_v2 }
  0xf8   :  { %3666 = vmatpush3.bf16.msra.mxu0 %v3981_v3 }
  0xf9   :  { %3667 = vmatprep.subr.bf16.mxu0 %v3983_v5 }
  0xfa   :  { %3688 = vmatpush3.bf16.msra.mxu1 %v3982_v4 }
  0xfb   :  { %3689 = vmatprep.subr.bf16.mxu1 %v3984_v6 }
  0xfc   :  { %3668 = vmatpush3.bf16.msra.mxu0 %v3985_v7 }
  0xfd   :  { %10 = vsyncpa [#allocation3], 0  ;;  %3669 = vmatprep.subr.bf16.mxu0 %v3987_v8  ;;  %v726_v12 = vrot.slane %v4765_v19, %v4161_v41  ;;  %v3990_v13 = vld [vmem:[%s4916_s1 + $0x780] sm:$0xff]   ;;  %v3992_v38 = vld [vmem:[%s4918_s3 + $0x38] sm:$0xff]   ;;  %v4023_v39 = vmov 0.0   ;;  %vm4024_vm0 = vmmov 0  }
  0xfe   :  { %3690 = vmatpush3.bf16.msra.mxu1 %v3986_v9  ;;  %v3993_v40 = vld [vmem:[%s4918_s3 + $0x30] sm:$0xff]   ;;  %v3994_v42 = vld [vmem:[%s4918_s3 + $0x28] sm:$0xff]   ;;  %v3995_v43 = vld [vmem:[%s4918_s3 + $0x20] sm:$0xff]   ;;  %s4025_s24 = smov [#allocation2]  }
  0xff   :  { %3691 = vmatprep.subr.bf16.mxu1 %v3988_v10  ;;  %v742_v14 = vcombine.high %v726_v12, %v726_v12  ;;  %v3996_v44 = vld [vmem:[%s4918_s3 + $0x18] sm:$0xff]   ;;  %v3997_v48 = vld [vmem:[%s4918_s3 + $0x10] sm:$0xff]   ;;  %v3999_v59 = vld [vmem:[%s4918_s3] sm:$0xff]   ;;  %s3073_s25 = sshll.u32 %s4025_s24, 4  ;;  %s3074_s25 = int_to_ptr.vmem [resolvable:$true] %s3073_s25 }
 0x100   :  { %3670 = vmatpush3.bf16.msra.mxu0 %v3989_v11  ;;  %s4000_s26 = scalar_lea.vmem %s3074_s25, 32  ;;  %p4005_p1 = scmp.lt.s32.totalorder %s3074_s25, %s3074_s25 }
 0x101   :  { %3708 = vmatprep.subr.bf16.mxu0 %v4023_v39  ;;  %p4001_p0 = scmp.ne.s32.totalorder %s3074_s25, %s4000_s26  ;;  %p4006_p2 = scmp.lt.s32.totalorder %s4000_s26, %s4000_s26 }
 0x102   :  { %3692 = vmatpush3.bf16.msra.mxu1 %v3990_v13 }
 0x103   :  { %v3407_v15 = vpop.f32.mrf.mxu0  ;;  %2906 = vmatmul.mubr.bf16.vlgmr.msra.gmra.mxu0 %v726_v12  ;;  %p4007_p3 = por %p4006_p2, %p4005_p1 }
 0x104   :  { %v3429_v16 = vpop.f32.mrf.mxu1  ;;  %3709 = vmatpush3.bf16.msra.mxu0 %v3992_v38  ;;  %3724 = vmatprep.mubr.msk.bf16.mxu0 %vm4024_vm0, %v4023_v39 }
 0x105   :  { %2946 = vmatmul.mubr.bf16.vlgmr.msra.gmra.mxu1 %v742_v14  ;;  %v3408_v17 = vpop.f32.mrf.mxu0  ;;  %3710 = vmatprep.subr.bf16.mxu0 %v4023_v39  ;;  %p4008_p4 = pnand %p4007_p3, %p4001_p0 }
 0x106   :  { %v3409_v18 = vadd.f32 %v3408_v17, %v3407_v15  ;;  %v3430_v20 = vpop.f32.mrf.mxu1 }
 0x107   :  { %v3410_v21 = vpop.f32.mrf.mxu0  ;;  %v3431_v23 = vadd.f32 %v3430_v20, %v3429_v16 }
 0x108   :  { %v2428_v22 = vadd.f32 %v3409_v18, %v2388_v56  ;;  %v3432_v41 = vpop.f32.mrf.mxu1  ;;  %3711 = vmatpush3.bf16.msra.mxu0 %v3993_v40  ;;  %v3998_v56 = vld [vmem:[%s4918_s3 + $0x8] sm:$0xff]  }
 0x109   :  { %v3411_v19 = vpop.f32.mrf.mxu0  ;;  %3712 = vmatprep.subr.bf16.mxu0 %v4023_v39 }
 0x10a   :  { %v2468_v24 = vadd.f32 %v3431_v23, %v2428_v22  ;;  %v3433_v25 = vpop.f32.mrf.mxu1 }
 0x10c   :  { %3713 = vmatpush3.bf16.msra.mxu0 %v3994_v42 }
 0x10d   :  { %3714 = vmatprep.subr.bf16.mxu0 %v4023_v39 }
 0x110   :  { %3715 = vmatpush3.bf16.msra.mxu0 %v3995_v43 }
 0x111   :  { %3716 = vmatprep.subr.bf16.mxu0 %v4023_v39 }
 0x114   :  { %3717 = vmatpush3.bf16.msra.mxu0 %v3996_v44 }
 0x115   :  { %3718 = vmatprep.subr.bf16.mxu0 %v4023_v39 }
 0x118   :  { %3719 = vmatpush3.bf16.msra.mxu0 %v3997_v48 }
 0x119   :  { %3720 = vmatprep.subr.bf16.mxu0 %v4023_v39 }
 0x11c   :  { %3721 = vmatpush3.bf16.msra.mxu0 %v3998_v56 }
 0x11d   :  { %3722 = vmatprep.subr.bf16.mxu0 %v4023_v39 }
 0x120   :  { %3723 = vmatpush3.bf16.msra.mxu0 %v3999_v59 }
 0x123   :  { %v3451_v26 = vpop.f32.mrf.mxu0 }
 0x125   :  { %v3473_v27 = vpop.f32.mrf.mxu1  ;;  %v3452_v28 = vpop.f32.mrf.mxu0 }
 0x126   :  { %v3453_v29 = vadd.f32 %v3452_v28, %v3451_v26 }
 0x127   :  { %v3474_v30 = vpop.f32.mrf.mxu1  ;;  %v3454_v31 = vpop.f32.mrf.mxu0 }
 0x128   :  { %v2508_v32 = vadd.f32 %v3453_v29, %v2468_v24  ;;  %v3475_v33 = vadd.f32 %v3474_v30, %v3473_v27 }
 0x129   :  { %v3476_v34 = vpop.f32.mrf.mxu1  ;;  %v3455_v35 = vpop.f32.mrf.mxu0 }
 0x12a   :  { %v2548_v36 = vadd.f32 %v3475_v33, %v2508_v32 }
 0x12b   :  { %v3477_v37 = vpop.f32.mrf.mxu1 }
 0x143   :  { %v3495_v45 = vpop.f32.mrf.mxu0 }
 0x145   :  { %v3517_v46 = vpop.f32.mrf.mxu1  ;;  %v3496_v47 = vpop.f32.mrf.mxu0 }
 0x146   :  { %v3497_v49 = vadd.f32 %v3496_v47, %v3495_v45 }
 0x147   :  { %v3518_v50 = vpop.f32.mrf.mxu1  ;;  %v3498_v51 = vpop.f32.mrf.mxu0 }
 0x148   :  { %v2588_v52 = vadd.f32 %v3497_v49, %v2548_v36  ;;  %v3519_v53 = vadd.f32 %v3518_v50, %v3517_v46  ;;  %v3338_v46 = vld [vmem:[%s4919_s4] ss:$0 sm:$0xff] }
 0x149   :  { %v3520_v54 = vpop.f32.mrf.mxu1  ;;  %v3499_v55 = vpop.f32.mrf.mxu0 }
 0x14a   :  { %v2628_v57 = vadd.f32 %v3519_v53, %v2588_v52 }
 0x14b   :  { %v3521_v58 = vpop.f32.mrf.mxu1 }
 0x163   :  { %v3539_v60 = vpop.f32.mrf.mxu0 }
 0x165   :  { %v3561_v61 = vpop.f32.mrf.mxu1  ;;  %v3540_v62 = vpop.f32.mrf.mxu0 }
 0x166   :  { %v3541_v63 = vadd.f32 %v3540_v62, %v3539_v60 }
 0x167   :  { %v3562_v0 = vpop.f32.mrf.mxu1  ;;  %v3542_v1 = vpop.f32.mrf.mxu0 }
 0x168   :  { %v2668_v2 = vadd.f32 %v3541_v63, %v2628_v57  ;;  %v3563_v3 = vadd.f32 %v3562_v0, %v3561_v61 }
 0x169   :  { %v3564_v4 = vpop.f32.mrf.mxu1  ;;  %v3543_v5 = vpop.f32.mrf.mxu0 }
 0x16a   :  { %v2708_v6 = vadd.f32 %v3563_v3, %v2668_v2 }
 0x16b   :  { %v3565_v7 = vpop.f32.mrf.mxu1 }
 0x183   :  { %v3583_v8 = vpop.f32.mrf.mxu0 }
 0x185   :  { %v3605_v9 = vpop.f32.mrf.mxu1  ;;  %v3584_v10 = vpop.f32.mrf.mxu0 }
 0x186   :  { %v3585_v19 = vadd.f32 %v3584_v10, %v3583_v8 }
 0x187   :  { %v3606_v11 = vpop.f32.mrf.mxu1  ;;  %v3586_v12 = vpop.f32.mrf.mxu0 }
 0x188   :  { %v2748_v24 = vadd.f32 %v3585_v19, %v2708_v6  ;;  %v3607_v25 = vadd.f32 %v3606_v11, %v3605_v9 }
 0x189   :  { %v3608_v13 = vpop.f32.mrf.mxu1  ;;  %v3587_v14 = vpop.f32.mrf.mxu0 }
 0x18a   :  { %v2788_v27 = vadd.f32 %v3607_v25, %v2748_v24 }
 0x18b   :  { %v3609_v15 = vpop.f32.mrf.mxu1 }
 0x1a3   :  { %v3627_v16 = vpop.f32.mrf.mxu0 }
 0x1a5   :  { %v3649_v17 = vpop.f32.mrf.mxu1  ;;  %v3628_v18 = vpop.f32.mrf.mxu0 }
 0x1a6   :  { %v3629_v26 = vadd.f32 %v3628_v18, %v3627_v16 }
 0x1a7   :  { %v3650_v20 = vpop.f32.mrf.mxu1  ;;  %v3630_v21 = vpop.f32.mrf.mxu0 }
 0x1a8   :  { %v2828_v28 = vadd.f32 %v3629_v26, %v2788_v27  ;;  %v3651_v29 = vadd.f32 %v3650_v20, %v3649_v17 }
 0x1a9   :  { %v3652_v22 = vpop.f32.mrf.mxu1  ;;  %v3631_v23 = vpop.f32.mrf.mxu0 }
 0x1aa   :  { %v2868_v33 = vadd.f32 %v3651_v29, %v2828_v28 }
 0x1ab   :  { %v3653_v41 = vpop.f32.mrf.mxu1 }
 0x1c3   :  { %v3671_v30 = vpop.f32.mrf.mxu0 }
 0x1c5   :  { %v3693_v31 = vpop.f32.mrf.mxu1  ;;  %v3672_v32 = vpop.f32.mrf.mxu0 }
 0x1c6   :  { %v3673_v34 = vadd.f32 %v3672_v32, %v3671_v30 }
 0x1c7   :  { %v3694_v35 = vpop.f32.mrf.mxu1  ;;  %v3674_v36 = vpop.f32.mrf.mxu0 }
 0x1c8   :  { %v2908_v37 = vadd.f32 %v3673_v34, %v2868_v33  ;;  %v3695_v38 = vadd.f32 %v3694_v35, %v3693_v31 }
 0x1c9   :  { %v3696_v39 = vpop.f32.mrf.mxu1  ;;  %v3675_v40 = vpop.f32.mrf.mxu0 }
 0x1ca   :  { %v2948_v42 = vadd.f32 %v3695_v38, %v2908_v37 }
 0x1cb   :  { %v3697_v43 = vpop.f32.mrf.mxu1 }
 0x1cc   :  { %v2953_v44 = vmax.f32 %v2948_v42, 0.0 }
 0x1ce   :  { %v2954_v45 = vpack.c.bf16 %v2953_v44, %v2953_v44 }
 0x1d0   :  { %3725 = vmatmul.mubr.bf16.vlgmr.msra.gmra.mxu0 %v2954_v45 }
 0x290   :  { %v3060_v47 = vpop.f32.mrf.mxu0 }
 0x291   :  { %v3061_v48 = vadd.f32 %v3338_v46, %v3060_v47 }
 0x292   :  { %v3726_v49 = vpop.f32.mrf.mxu0 }
 0x293   :  { %3066 = vst [vmem:[#allocation2] sm:$0x3] %v3061_v48 }
 0x294   :  { %v3063_v50 = vpop.f32.mrf.mxu0 }
 0x295   :  { %4011 = shalt.err (!%p4008_p4)
}
 0x296   :  { %3076 = dma.vmem_to_hbm [thread:$0]  %s3074_s25, 32, %s4920_s5, [#allocation3]   ;;  %v3727_v51 = vpop.f32.mrf.mxu0 }
 0x297   :  { %4020 = dma.done.wait [#allocation3], 32  }
 0x298   :  { %4021 = vsyncadd [#allocation3], 4294967264 }
 0x299   :  { %3080 = vsyncpa [#allocation3], 1 }

</bundles_post_ra>
